<compile_context>
chip_gen: v7x
topology: tpu7x:2x2x1
jax: 0.10.0
libtpu: 0.0.40
codegen_flags: <defaults>
</compile_context>

<pallas_src>
import functools
import math

import jax
import jax.numpy as jnp
import numpy as np
from jax.experimental import pallas as pl
from jax.experimental.pallas import tpu as pltpu

BN_EPS = 1e-5
NEG_MASK_VAL = float(-(2 ** 15) + 1)  # torch uses -32767.0 for masked scores


# ----------------------------------------------------------------------------
# Kernel 1: fused 1x1-conv (matmul) + BatchNorm(train, batch stats) + ReLU
# ----------------------------------------------------------------------------
def _proj_bn_relu_kernel(x_ref, wt_ref, o_ref):
    x = x_ref[...]                       # (M, Din)
    wt = wt_ref[...]                     # (Din, Dout)  (transposed conv weight)
    y = jnp.dot(x, wt, preferred_element_type=jnp.float32)
    # BatchNorm2d training mode: per-channel stats over every (b,t,n) position.
    # One-pass moments: var = E[y^2] - E[y]^2 (channels are independent, so a
    # fused Q|K|V (+zero pad) weight gives identical per-channel statistics).
    m1 = jnp.mean(y, axis=0, keepdims=True)
    m2 = jnp.mean(y * y, axis=0, keepdims=True)
    var = jnp.maximum(m2 - m1 * m1, 0.0)
    y = (y - m1) * jax.lax.rsqrt(var + BN_EPS)        # gamma=1, beta=0
    o_ref[...] = jnp.maximum(y, 0.0)                  # ReLU


def proj_bn_relu(x_flat, wt):
    M, Din = x_flat.shape
    Dout = wt.shape[1]
    return pl.pallas_call(
        _proj_bn_relu_kernel,
        out_shape=jax.ShapeDtypeStruct((M, Dout), jnp.float32),
        grid=(1,),
        in_specs=[
            pl.BlockSpec((M, Din), lambda i: (0, 0)),
            pl.BlockSpec((Din, Dout), lambda i: (0, 0)),
        ],
        out_specs=pl.BlockSpec((M, Dout), lambda i: (0, 0)),
    )(x_flat, wt)


# ----------------------------------------------------------------------------
# Kernel 2: temporal attention over fused q|k|v channels
#   input  block: (Z, T, Cpad)  with Z = (batch*node) rows, time on sublanes
#   output block: (Z, T, K*d)   heads concatenated back on the channel axis
# ----------------------------------------------------------------------------
def _temporal_attn_kernel(qkv_ref, o_ref, *, K, d, use_mask):
    x = qkv_ref[...]                              # (Z, T, Cpad) fp32
    D = K * d
    T = x.shape[1]
    scale = jnp.float32(1.0 / math.sqrt(d))

    causal = None
    if use_mask:                                   # built once, reused per head
        row = jax.lax.broadcasted_iota(jnp.int32, (T, T), 0)
        col = jax.lax.broadcasted_iota(jnp.int32, (T, T), 1)
        causal = (row >= col)[None, :, :]          # tril mask

    heads = []
    for h in range(K):                             # static unroll over heads
        q = x[:, :, h * d:(h + 1) * d]             # (Z, T, d)
        k = x[:, :, D + h * d:D + (h + 1) * d]
        v = x[:, :, 2 * D + h * d:2 * D + (h + 1) * d]
        s = jnp.einsum("ztd,zsd->zts", q, k,
                       preferred_element_type=jnp.float32) * scale
        if use_mask:
            s = jnp.where(causal, s, jnp.float32(NEG_MASK_VAL))
        m = jnp.max(s, axis=-1, keepdims=True)
        e = jnp.exp(s - m)
        p = e / jnp.sum(e, axis=-1, keepdims=True)
        heads.append(jnp.einsum("zts,zsd->ztd", p, v,
                                preferred_element_type=jnp.float32))
    o_ref[...] = jnp.concatenate(heads, axis=-1)   # (Z, T, K*d)


def temporal_attention_heads(qkv, *, K, d, use_mask):
    Z, T, Cpad = qkv.shape
    D = K * d
    # >= 2 parallel grid steps when possible (keeps both v7x TensorCores busy).
    z_tile = Z // 2 if (Z % 2 == 0 and Z >= 2) else Z
    kernel = functools.partial(_temporal_attn_kernel, K=K, d=d, use_mask=use_mask)
    return pl.pallas_call(
        kernel,
        out_shape=jax.ShapeDtypeStruct((Z, T, D), jnp.float32),
        grid=(Z // z_tile,),
        in_specs=[pl.BlockSpec((z_tile, T, Cpad), lambda i: (i, 0, 0))],
        out_specs=pl.BlockSpec((z_tile, T, D), lambda i: (i, 0, 0)),
        compiler_params=pltpu.CompilerParams(dimension_semantics=("parallel",)),
    )(qkv)


# ----------------------------------------------------------------------------
# Full TemporalAttention forward
# ----------------------------------------------------------------------------
def temporal_attention_forward(X, params, K, d, use_mask):
    B, T, N, D = X.shape
    assert D == K * d
    M = B * T * N
    C3 = 3 * D
    Cpad = ((C3 + 127) // 128) * 128          # lane-dense padded channel width

    # Fused, transposed, zero-padded Q|K|V weight:  (D, Cpad)
    wqkv_t = jnp.concatenate(
        [params["Wq"], params["Wk"], params["Wv"]], axis=0).T      # (D, 3D)
    wqkv_t = jnp.pad(wqkv_t, ((0, 0), (0, Cpad - C3)))

    x_flat = X.reshape(M, D)
    qkv = proj_bn_relu(x_flat, wqkv_t)                             # (M, Cpad)

    # (B,T,N,Cpad) -> (B*N, T, Cpad): one row per (batch, node), time on sublanes.
    qkv = qkv.reshape(B, T, N, Cpad).transpose(0, 2, 1, 3).reshape(B * N, T, Cpad)

    attn = temporal_attention_heads(qkv, K=K, d=d, use_mask=use_mask)  # (B*N,T,D)

    # back to (B, T, N, D) row order for the output projection
    o_flat = attn.reshape(B, N, T, D).transpose(0, 2, 1, 3).reshape(M, D)
    out = proj_bn_relu(o_flat, jnp.asarray(params["Wo"]).T)
    return out.reshape(B, T, N, D)


# ----------------------------------------------------------------------------
# Pure-JAX reference (for correctness check)
# ----------------------------------------------------------------------------
def reference_forward(X, params, K, d, use_mask):
    B, T, N, D = X.shape

    def fc(x, w):
        y = jnp.einsum("btnc,oc->btno", x, w)      # bias (=0) cancelled by BN
        mean = jnp.mean(y, axis=(0, 1, 2), keepdims=True)
        var = jnp.mean((y - mean) ** 2, axis=(0, 1, 2), keepdims=True)
        return jnp.maximum((y - mean) * jax.lax.rsqrt(var + BN_EPS), 0.0)

    q = fc(X, params["Wq"])
    k = fc(X, params["Wk"])
    v = fc(X, params["Wv"])

    def split_heads(t):
        return (t.reshape(B, T, N, K, d)
                 .transpose(3, 0, 2, 1, 4)
                 .reshape(K * B, N, T, d))

    qh, kh, vh = map(split_heads, (q, k, v))
    s = jnp.einsum("hntd,hnsd->hnts", qh, kh) / (d ** 0.5)
    if use_mask:
        causal = jnp.tril(jnp.ones((T, T), dtype=bool))
        s = jnp.where(causal[None, None], s, NEG_MASK_VAL)
    p = jax.nn.softmax(s, axis=-1)
    oh = jnp.einsum("hnts,hnsd->hntd", p, vh)
    o = (oh.reshape(K, B, N, T, d)
           .transpose(1, 3, 2, 0, 4)
           .reshape(B, T, N, D))
    return fc(o, params["Wo"])


# ----------------------------------------------------------------------------
# Deterministic parameter init (xavier_uniform weights, zero bias, like torch)
# ----------------------------------------------------------------------------
def xavier_uniform(key, shape):
    fan_out, fan_in = shape  # (out_channels, in_channels) of the 1x1 conv
    bound = math.sqrt(6.0 / (fan_in + fan_out))
    return jax.random.uniform(key, shape, jnp.float32, -bound, bound)


if __name__ == "__main__":
    K, d = 4, 8
    D = K * d
    B, T, N = 2, 8, 16          # batch, num_step, num_nodes
    use_mask = True

    key = jax.random.PRNGKey(0)
    kx, kq, kk, kv, ko = jax.random.split(key, 5)
    X = jax.random.normal(kx, (B, T, N, D), jnp.float32)

    params = {
        # biases exist in the torch module but are zero-init and are cancelled
        # exactly by the training-mode BatchNorm that follows; not used.
        "Wq": xavier_uniform(kq, (D, D)), "bq": jnp.zeros((D,), jnp.float32),
        "Wk": xavier_uniform(kk, (D, D)), "bk": jnp.zeros((D,), jnp.float32),
        "Wv": xavier_uniform(kv, (D, D)), "bv": jnp.zeros((D,), jnp.float32),
        "Wo": xavier_uniform(ko, (D, D)), "bo": jnp.zeros((D,), jnp.float32),
    }

    fwd = jax.jit(functools.partial(temporal_attention_forward,
                                    K=K, d=d, use_mask=use_mask))
    out = jax.block_until_ready(fwd(X, params))

    ref = jax.block_until_ready(reference_forward(X, params, K, d, use_mask))

    if not np.allclose(np.asarray(out), np.asarray(ref), atol=1e-2, rtol=1e-2):
        err = float(np.max(np.abs(np.asarray(out) - np.asarray(ref))))
        raise AssertionError(f"Pallas kernel mismatch vs reference, max err {err}")

    print("KERNEL_OK")
</pallas_src>

<mosaic_0001>
module attributes {stable_mosaic.version = 11 : i64} {
  func.func @_proj_bn_relu_kernel(%arg0: i32, %arg1: memref<256x32xf32, #tpu.memory_space<vmem>>, %arg2: memref<32x128xf32, #tpu.memory_space<vmem>>, %arg3: memref<256x128xf32, #tpu.memory_space<vmem>>) attributes {dimension_semantics = [#tpu.dimension_semantics<arbitrary>], iteration_bounds = array<i64: 1>, scalar_prefetch = 0 : i64, scratch_operands = 0 : i64, tpu.core_type = #tpu.core_type<tc>, window_params = [{pipeline_mode = #tpu.pipeline_mode<synchronous>, transform_indices = @transform_0, window_bounds = array<i64: 256, 32>}, {pipeline_mode = #tpu.pipeline_mode<synchronous>, transform_indices = @transform_1, window_bounds = array<i64: 32, 128>}, {pipeline_mode = #tpu.pipeline_mode<synchronous>, transform_indices = @transform_2, window_bounds = array<i64: 256, 128>}]} {
    %c0 = arith.constant 0 : index
    %c0_0 = arith.constant 0 : index
    %0 = vector.load %arg1[%c0, %c0_0] : memref<256x32xf32, #tpu.memory_space<vmem>>, vector<256x32xf32>
    %c0_1 = arith.constant 0 : index
    %c0_2 = arith.constant 0 : index
    %1 = vector.load %arg2[%c0_1, %c0_2] : memref<32x128xf32, #tpu.memory_space<vmem>>, vector<32x128xf32>
    %cst = arith.constant dense<0.000000e+00> : vector<256x128xf32>
    %2 = tpu.matmul %0, %1, %cst {dimension_numbers = #tpu.dot_dimension_numbers<[1], [0], [0], [1], [0, 0, 1, 1], [], []>} : vector<256x32xf32>, vector<32x128xf32>, vector<256x128xf32> -> vector<256x128xf32>
    %cst_3 = arith.constant dense<0.000000e+00> : vector<128xf32>
    %3 = vector.multi_reduction <add>, %2, %cst_3 [0] : vector<256x128xf32> to vector<128xf32>
    %4 = vector.shape_cast %3 : vector<128xf32> to vector<1x128xf32>
    %cst_4 = arith.constant 2.560000e+02 : f32
    %5 = vector.broadcast %cst_4 : f32 to vector<1x128xf32>
    %6 = arith.divf %4, %5 : vector<1x128xf32>
    %7 = arith.mulf %2, %2 : vector<256x128xf32>
    %cst_5 = arith.constant dense<0.000000e+00> : vector<128xf32>
    %8 = vector.multi_reduction <add>, %7, %cst_5 [0] : vector<256x128xf32> to vector<128xf32>
    %9 = vector.shape_cast %8 : vector<128xf32> to vector<1x128xf32>
    %cst_6 = arith.constant 2.560000e+02 : f32
    %10 = vector.broadcast %cst_6 : f32 to vector<1x128xf32>
    %11 = arith.divf %9, %10 : vector<1x128xf32>
    %12 = arith.mulf %6, %6 : vector<1x128xf32>
    %13 = arith.subf %11, %12 : vector<1x128xf32>
    %cst_7 = arith.constant 0.000000e+00 : f32
    %14 = vector.broadcast %cst_7 : f32 to vector<1x128xf32>
    %15 = arith.maximumf %13, %14 : vector<1x128xf32>
    %16 = vector.broadcast %6 : vector<1x128xf32> to vector<256x128xf32>
    %17 = arith.subf %2, %16 : vector<256x128xf32>
    %cst_8 = arith.constant 9.99999974E-6 : f32
    %18 = vector.broadcast %cst_8 : f32 to vector<1x128xf32>
    %19 = arith.addf %15, %18 : vector<1x128xf32>
    %20 = math.rsqrt %19 : vector<1x128xf32>
    %21 = vector.broadcast %20 : vector<1x128xf32> to vector<256x128xf32>
    %22 = arith.mulf %17, %21 : vector<256x128xf32>
    %cst_9 = arith.constant 0.000000e+00 : f32
    %23 = vector.broadcast %cst_9 : f32 to vector<256x128xf32>
    %24 = arith.maximumf %22, %23 : vector<256x128xf32>
    %c0_10 = arith.constant 0 : index
    %c0_11 = arith.constant 0 : index
    %25 = vector.load %arg3[%c0_10, %c0_11] : memref<256x128xf32, #tpu.memory_space<vmem>>, vector<256x128xf32>
    tpu.vector_store %arg3[%c0_10, %c0_11], %24 {strides = array<i32>} : memref<256x128xf32, #tpu.memory_space<vmem>>, vector<256x128xf32>,
    return
  }
  func.func @transform_0(%arg0: i32) -> (i32, i32) {
    %c0_i32 = arith.constant 0 : i32
    %c0_i32_0 = arith.constant 0 : i32
    %c0_i32_1 = arith.constant 0 : i32
    return %c0_i32, %c0_i32_0 : i32, i32
  }
  func.func @transform_1(%arg0: i32) -> (i32, i32) {
    %c0_i32 = arith.constant 0 : i32
    %c0_i32_0 = arith.constant 0 : i32
    %c0_i32_1 = arith.constant 0 : i32
    return %c0_i32, %c0_i32_0 : i32, i32
  }
  func.func @transform_2(%arg0: i32) -> (i32, i32) {
    %c0_i32 = arith.constant 0 : i32
    %c0_i32_0 = arith.constant 0 : i32
    %c0_i32_1 = arith.constant 0 : i32
    return %c0_i32, %c0_i32_0 : i32, i32
  }
}

module attributes {stable_mosaic.version = 11 : i64} {
  func.func @_temporal_attn_kernel(%arg0: i32, %arg1: memref<16x8x128xf32, #tpu.memory_space<vmem>>, %arg2: memref<16x8x32xf32, #tpu.memory_space<vmem>>) attributes {dimension_semantics = [#tpu.dimension_semantics<parallel>], iteration_bounds = array<i64: 2>, scalar_prefetch = 0 : i64, scratch_operands = 0 : i64, tpu.core_type = #tpu.core_type<tc>, window_params = [{transform_indices = @transform_0, window_bounds = array<i64: 16, 8, 128>}, {transform_indices = @transform_1, window_bounds = array<i64: 16, 8, 32>}]} {
    %c0 = arith.constant 0 : index
    %c0_0 = arith.constant 0 : index
    %c0_1 = arith.constant 0 : index
    %0 = vector.load %arg1[%c0, %c0_0, %c0_1] : memref<16x8x128xf32, #tpu.memory_space<vmem>>, vector<16x8x128xf32>
    %1 = tpu.iota {dimensions = array<i32: 0>} : vector<8x8xi32>
    %2 = tpu.iota {dimensions = array<i32: 1>} : vector<8x8xi32>
    %3 = arith.cmpi sge, %1, %2 : vector<8x8xi32>
    %4 = vector.shape_cast %3 : vector<8x8xi1> to vector<1x8x8xi1>
    %5 = vector.extract_strided_slice %0 {offsets = [0, 0, 0], sizes = [16, 8, 8], strides = [1, 1, 1]} : vector<16x8x128xf32> to vector<16x8x8xf32>
    %6 = vector.extract_strided_slice %0 {offsets = [0, 0, 32], sizes = [16, 8, 8], strides = [1, 1, 1]} : vector<16x8x128xf32> to vector<16x8x8xf32>
    %7 = vector.extract_strided_slice %0 {offsets = [0, 0, 64], sizes = [16, 8, 8], strides = [1, 1, 1]} : vector<16x8x128xf32> to vector<16x8x8xf32>
    "tpu.trace_start"() <{level = 10 : i32, message = "ztd,zsd->zts"}> : () -> ()
    %cst = arith.constant dense<0.000000e+00> : vector<16x8x8xf32>
    %8 = tpu.matmul %5, %6, %cst {dimension_numbers = #tpu.dot_dimension_numbers<[2], [2], [1], [1], [0, 0, 0, 1, 1, 1], [0], [0]>} : vector<16x8x8xf32>, vector<16x8x8xf32>, vector<16x8x8xf32> -> vector<16x8x8xf32>
    "tpu.trace_stop"() : () -> ()
    %cst_2 = arith.constant 0.353553385 : f32
    %9 = vector.broadcast %cst_2 : f32 to vector<16x8x8xf32>
    %10 = arith.mulf %8, %9 : vector<16x8x8xf32>
    %cst_3 = arith.constant -3.276700e+04 : f32
    %11 = vector.shape_cast %4 : vector<1x8x8xi1> to vector<1x8x8xi1>
    %12 = vector.broadcast %11 : vector<1x8x8xi1> to vector<16x8x8xi1>
    %13 = vector.broadcast %cst_3 : f32 to vector<16x8x8xf32>
    %14 = arith.select %12, %10, %13 : vector<16x8x8xi1>, vector<16x8x8xf32>
    %cst_4 = arith.constant dense<0xFF800000> : vector<16x8xf32>
    %15 = vector.multi_reduction <maximumf>, %14, %cst_4 [2] : vector<16x8x8xf32> to vector<16x8xf32>
    %16 = vector.shape_cast %15 : vector<16x8xf32> to vector<16x8x1xf32>
    %17 = vector.broadcast %16 : vector<16x8x1xf32> to vector<16x8x8xf32>
    %18 = arith.subf %14, %17 : vector<16x8x8xf32>
    %19 = math.exp %18 : vector<16x8x8xf32>
    %cst_5 = arith.constant dense<0.000000e+00> : vector<16x8xf32>
    %20 = vector.multi_reduction <add>, %19, %cst_5 [2] : vector<16x8x8xf32> to vector<16x8xf32>
    %21 = vector.shape_cast %20 : vector<16x8xf32> to vector<16x8x1xf32>
    %22 = vector.broadcast %21 : vector<16x8x1xf32> to vector<16x8x8xf32>
    %23 = arith.divf %19, %22 : vector<16x8x8xf32>
    "tpu.trace_start"() <{level = 10 : i32, message = "zts,zsd->ztd"}> : () -> ()
    %cst_6 = arith.constant dense<0.000000e+00> : vector<16x8x8xf32>
    %24 = tpu.matmul %23, %7, %cst_6 {dimension_numbers = #tpu.dot_dimension_numbers<[2], [1], [1], [2], [0, 0, 0, 1, 1, 2], [0], [0]>} : vector<16x8x8xf32>, vector<16x8x8xf32>, vector<16x8x8xf32> -> vector<16x8x8xf32>
    "tpu.trace_stop"() : () -> ()
    %25 = vector.extract_strided_slice %0 {offsets = [0, 0, 8], sizes = [16, 8, 8], strides = [1, 1, 1]} : vector<16x8x128xf32> to vector<16x8x8xf32>
    %26 = vector.extract_strided_slice %0 {offsets = [0, 0, 40], sizes = [16, 8, 8], strides = [1, 1, 1]} : vector<16x8x128xf32> to vector<16x8x8xf32>
    %27 = vector.extract_strided_slice %0 {offsets = [0, 0, 72], sizes = [16, 8, 8], strides = [1, 1, 1]} : vector<16x8x128xf32> to vector<16x8x8xf32>
    "tpu.trace_start"() <{level = 10 : i32, message = "ztd,zsd->zts"}> : () -> ()
    %cst_7 = arith.constant dense<0.000000e+00> : vector<16x8x8xf32>
    %28 = tpu.matmul %25, %26, %cst_7 {dimension_numbers = #tpu.dot_dimension_numbers<[2], [2], [1], [1], [0, 0, 0, 1, 1, 1], [0], [0]>} : vector<16x8x8xf32>, vector<16x8x8xf32>, vector<16x8x8xf32> -> vector<16x8x8xf32>
    "tpu.trace_stop"() : () -> ()
    %cst_8 = arith.constant 0.353553385 : f32
    %29 = vector.broadcast %cst_8 : f32 to vector<16x8x8xf32>
    %30 = arith.mulf %28, %29 : vector<16x8x8xf32>
    %cst_9 = arith.constant -3.276700e+04 : f32
    %31 = vector.shape_cast %4 : vector<1x8x8xi1> to vector<1x8x8xi1>
    %32 = vector.broadcast %31 : vector<1x8x8xi1> to vector<16x8x8xi1>
    %33 = vector.broadcast %cst_9 : f32 to vector<16x8x8xf32>
    %34 = arith.select %32, %30, %33 : vector<16x8x8xi1>, vector<16x8x8xf32>
    %cst_10 = arith.constant dense<0xFF800000> : vector<16x8xf32>
    %35 = vector.multi_reduction <maximumf>, %34, %cst_10 [2] : vector<16x8x8xf32> to vector<16x8xf32>
    %36 = vector.shape_cast %35 : vector<16x8xf32> to vector<16x8x1xf32>
    %37 = vector.broadcast %36 : vector<16x8x1xf32> to vector<16x8x8xf32>
    %38 = arith.subf %34, %37 : vector<16x8x8xf32>
    %39 = math.exp %38 : vector<16x8x8xf32>
    %cst_11 = arith.constant dense<0.000000e+00> : vector<16x8xf32>
    %40 = vector.multi_reduction <add>, %39, %cst_11 [2] : vector<16x8x8xf32> to vector<16x8xf32>
    %41 = vector.shape_cast %40 : vector<16x8xf32> to vector<16x8x1xf32>
    %42 = vector.broadcast %41 : vector<16x8x1xf32> to vector<16x8x8xf32>
    %43 = arith.divf %39, %42 : vector<16x8x8xf32>
    "tpu.trace_start"() <{level = 10 : i32, message = "zts,zsd->ztd"}> : () -> ()
    %cst_12 = arith.constant dense<0.000000e+00> : vector<16x8x8xf32>
    %44 = tpu.matmul %43, %27, %cst_12 {dimension_numbers = #tpu.dot_dimension_numbers<[2], [1], [1], [2], [0, 0, 0, 1, 1, 2], [0], [0]>} : vector<16x8x8xf32>, vector<16x8x8xf32>, vector<16x8x8xf32> -> vector<16x8x8xf32>
    "tpu.trace_stop"() : () -> ()
    %45 = vector.extract_strided_slice %0 {offsets = [0, 0, 16], sizes = [16, 8, 8], strides = [1, 1, 1]} : vector<16x8x128xf32> to vector<16x8x8xf32>
    %46 = vector.extract_strided_slice %0 {offsets = [0, 0, 48], sizes = [16, 8, 8], strides = [1, 1, 1]} : vector<16x8x128xf32> to vector<16x8x8xf32>
    %47 = vector.extract_strided_slice %0 {offsets = [0, 0, 80], sizes = [16, 8, 8], strides = [1, 1, 1]} : vector<16x8x128xf32> to vector<16x8x8xf32>
    "tpu.trace_start"() <{level = 10 : i32, message = "ztd,zsd->zts"}> : () -> ()
    %cst_13 = arith.constant dense<0.000000e+00> : vector<16x8x8xf32>
    %48 = tpu.matmul %45, %46, %cst_13 {dimension_numbers = #tpu.dot_dimension_numbers<[2], [2], [1], [1], [0, 0, 0, 1, 1, 1], [0], [0]>} : vector<16x8x8xf32>, vector<16x8x8xf32>, vector<16x8x8xf32> -> vector<16x8x8xf32>
    "tpu.trace_stop"() : () -> ()
    %cst_14 = arith.constant 0.353553385 : f32
    %49 = vector.broadcast %cst_14 : f32 to vector<16x8x8xf32>
    %50 = arith.mulf %48, %49 : vector<16x8x8xf32>
    %cst_15 = arith.constant -3.276700e+04 : f32
    %51 = vector.shape_cast %4 : vector<1x8x8xi1> to vector<1x8x8xi1>
    %52 = vector.broadcast %51 : vector<1x8x8xi1> to vector<16x8x8xi1>
    %53 = vector.broadcast %cst_15 : f32 to vector<16x8x8xf32>
    %54 = arith.select %52, %50, %53 : vector<16x8x8xi1>, vector<16x8x8xf32>
    %cst_16 = arith.constant dense<0xFF800000> : vector<16x8xf32>
    %55 = vector.multi_reduction <maximumf>, %54, %cst_16 [2] : vector<16x8x8xf32> to vector<16x8xf32>
    %56 = vector.shape_cast %55 : vector<16x8xf32> to vector<16x8x1xf32>
    %57 = vector.broadcast %56 : vector<16x8x1xf32> to vector<16x8x8xf32>
    %58 = arith.subf %54, %57 : vector<16x8x8xf32>
    %59 = math.exp %58 : vector<16x8x8xf32>
    %cst_17 = arith.constant dense<0.000000e+00> : vector<16x8xf32>
    %60 = vector.multi_reduction <add>, %59, %cst_17 [2] : vector<16x8x8xf32> to vector<16x8xf32>
    %61 = vector.shape_cast %60 : vector<16x8xf32> to vector<16x8x1xf32>
    %62 = vector.broadcast %61 : vector<16x8x1xf32> to vector<16x8x8xf32>
    %63 = arith.divf %59, %62 : vector<16x8x8xf32>
    "tpu.trace_start"() <{level = 10 : i32, message = "zts,zsd->ztd"}> : () -> ()
    %cst_18 = arith.constant dense<0.000000e+00> : vector<16x8x8xf32>
    %64 = tpu.matmul %63, %47, %cst_18 {dimension_numbers = #tpu.dot_dimension_numbers<[2], [1], [1], [2], [0, 0, 0, 1, 1, 2], [0], [0]>} : vector<16x8x8xf32>, vector<16x8x8xf32>, vector<16x8x8xf32> -> vector<16x8x8xf32>
    "tpu.trace_stop"() : () -> ()
    %65 = vector.extract_strided_slice %0 {offsets = [0, 0, 24], sizes = [16, 8, 8], strides = [1, 1, 1]} : vector<16x8x128xf32> to vector<16x8x8xf32>
    %66 = vector.extract_strided_slice %0 {offsets = [0, 0, 56], sizes = [16, 8, 8], strides = [1, 1, 1]} : vector<16x8x128xf32> to vector<16x8x8xf32>
    %67 = vector.extract_strided_slice %0 {offsets = [0, 0, 88], sizes = [16, 8, 8], strides = [1, 1, 1]} : vector<16x8x128xf32> to vector<16x8x8xf32>
    "tpu.trace_start"() <{level = 10 : i32, message = "ztd,zsd->zts"}> : () -> ()
    %cst_19 = arith.constant dense<0.000000e+00> : vector<16x8x8xf32>
    %68 = tpu.matmul %65, %66, %cst_19 {dimension_numbers = #tpu.dot_dimension_numbers<[2], [2], [1], [1], [0, 0, 0, 1, 1, 1], [0], [0]>} : vector<16x8x8xf32>, vector<16x8x8xf32>, vector<16x8x8xf32> -> vector<16x8x8xf32>
    "tpu.trace_stop"() : () -> ()
    %cst_20 = arith.constant 0.353553385 : f32
    %69 = vector.broadcast %cst_20 : f32 to vector<16x8x8xf32>
    %70 = arith.mulf %68, %69 : vector<16x8x8xf32>
    %cst_21 = arith.constant -3.276700e+04 : f32
    %71 = vector.shape_cast %4 : vector<1x8x8xi1> to vector<1x8x8xi1>
    %72 = vector.broadcast %71 : vector<1x8x8xi1> to vector<16x8x8xi1>
    %73 = vector.broadcast %cst_21 : f32 to vector<16x8x8xf32>
    %74 = arith.select %72, %70, %73 : vector<16x8x8xi1>, vector<16x8x8xf32>
    %cst_22 = arith.constant dense<0xFF800000> : vector<16x8xf32>
    %75 = vector.multi_reduction <maximumf>, %74, %cst_22 [2] : vector<16x8x8xf32> to vector<16x8xf32>
    %76 = vector.shape_cast %75 : vector<16x8xf32> to vector<16x8x1xf32>
    %77 = vector.broadcast %76 : vector<16x8x1xf32> to vector<16x8x8xf32>
    %78 = arith.subf %74, %77 : vector<16x8x8xf32>
    %79 = math.exp %78 : vector<16x8x8xf32>
    %cst_23 = arith.constant dense<0.000000e+00> : vector<16x8xf32>
    %80 = vector.multi_reduction <add>, %79, %cst_23 [2] : vector<16x8x8xf32> to vector<16x8xf32>
    %81 = vector.shape_cast %80 : vector<16x8xf32> to vector<16x8x1xf32>
    %82 = vector.broadcast %81 : vector<16x8x1xf32> to vector<16x8x8xf32>
    %83 = arith.divf %79, %82 : vector<16x8x8xf32>
    "tpu.trace_start"() <{level = 10 : i32, message = "zts,zsd->ztd"}> : () -> ()
    %cst_24 = arith.constant dense<0.000000e+00> : vector<16x8x8xf32>
    %84 = tpu.matmul %83, %67, %cst_24 {dimension_numbers = #tpu.dot_dimension_numbers<[2], [1], [1], [2], [0, 0, 0, 1, 1, 2], [0], [0]>} : vector<16x8x8xf32>, vector<16x8x8xf32>, vector<16x8x8xf32> -> vector<16x8x8xf32>
    "tpu.trace_stop"() : () -> ()
    %85 = tpu.concatenate %24, %44, %64, %84 in 2 : vector<16x8x8xf32>, vector<16x8x8xf32>, vector<16x8x8xf32>, vector<16x8x8xf32> -> vector<16x8x32xf32>
    %c0_25 = arith.constant 0 : index
    %c0_26 = arith.constant 0 : index
    %c0_27 = arith.constant 0 : index
    %86 = vector.load %arg2[%c0_25, %c0_26, %c0_27] : memref<16x8x32xf32, #tpu.memory_space<vmem>>, vector<16x8x32xf32>
    tpu.vector_store %arg2[%c0_25, %c0_26, %c0_27], %85 {strides = array<i32>} : memref<16x8x32xf32, #tpu.memory_space<vmem>>, vector<16x8x32xf32>,
    return
  }
  func.func @transform_0(%arg0: i32) -> (i32, i32, i32) {
    %c0_i32 = arith.constant 0 : i32
    %c0_i32_0 = arith.constant 0 : i32
    %c0_i32_1 = arith.constant 0 : i32
    return %arg0, %c0_i32, %c0_i32_0 : i32, i32, i32
  }
  func.func @transform_1(%arg0: i32) -> (i32, i32, i32) {
    %c0_i32 = arith.constant 0 : i32
    %c0_i32_0 = arith.constant 0 : i32
    %c0_i32_1 = arith.constant 0 : i32
    return %arg0, %c0_i32, %c0_i32_0 : i32, i32, i32
  }
}

module attributes {stable_mosaic.version = 11 : i64} {
  func.func @_proj_bn_relu_kernel(%arg0: i32, %arg1: memref<256x32xf32, #tpu.memory_space<vmem>>, %arg2: memref<32x32xf32, #tpu.memory_space<vmem>>, %arg3: memref<256x32xf32, #tpu.memory_space<vmem>>) attributes {dimension_semantics = [#tpu.dimension_semantics<arbitrary>], iteration_bounds = array<i64: 1>, scalar_prefetch = 0 : i64, scratch_operands = 0 : i64, tpu.core_type = #tpu.core_type<tc>, window_params = [{pipeline_mode = #tpu.pipeline_mode<synchronous>, transform_indices = @transform_0, window_bounds = array<i64: 256, 32>}, {pipeline_mode = #tpu.pipeline_mode<synchronous>, transform_indices = @transform_1, window_bounds = array<i64: 32, 32>}, {pipeline_mode = #tpu.pipeline_mode<synchronous>, transform_indices = @transform_2, window_bounds = array<i64: 256, 32>}]} {
    %c0 = arith.constant 0 : index
    %c0_0 = arith.constant 0 : index
    %0 = vector.load %arg1[%c0, %c0_0] : memref<256x32xf32, #tpu.memory_space<vmem>>, vector<256x32xf32>
    %c0_1 = arith.constant 0 : index
    %c0_2 = arith.constant 0 : index
    %1 = vector.load %arg2[%c0_1, %c0_2] : memref<32x32xf32, #tpu.memory_space<vmem>>, vector<32x32xf32>
    %cst = arith.constant dense<0.000000e+00> : vector<256x32xf32>
    %2 = tpu.matmul %0, %1, %cst {dimension_numbers = #tpu.dot_dimension_numbers<[1], [0], [0], [1], [0, 0, 1, 1], [], []>} : vector<256x32xf32>, vector<32x32xf32>, vector<256x32xf32> -> vector<256x32xf32>
    %cst_3 = arith.constant dense<0.000000e+00> : vector<32xf32>
    %3 = vector.multi_reduction <add>, %2, %cst_3 [0] : vector<256x32xf32> to vector<32xf32>
    %4 = vector.shape_cast %3 : vector<32xf32> to vector<1x32xf32>
    %cst_4 = arith.constant 2.560000e+02 : f32
    %5 = vector.broadcast %cst_4 : f32 to vector<1x32xf32>
    %6 = arith.divf %4, %5 : vector<1x32xf32>
    %7 = arith.mulf %2, %2 : vector<256x32xf32>
    %cst_5 = arith.constant dense<0.000000e+00> : vector<32xf32>
    %8 = vector.multi_reduction <add>, %7, %cst_5 [0] : vector<256x32xf32> to vector<32xf32>
    %9 = vector.shape_cast %8 : vector<32xf32> to vector<1x32xf32>
    %cst_6 = arith.constant 2.560000e+02 : f32
    %10 = vector.broadcast %cst_6 : f32 to vector<1x32xf32>
    %11 = arith.divf %9, %10 : vector<1x32xf32>
    %12 = arith.mulf %6, %6 : vector<1x32xf32>
    %13 = arith.subf %11, %12 : vector<1x32xf32>
    %cst_7 = arith.constant 0.000000e+00 : f32
    %14 = vector.broadcast %cst_7 : f32 to vector<1x32xf32>
    %15 = arith.maximumf %13, %14 : vector<1x32xf32>
    %16 = vector.broadcast %6 : vector<1x32xf32> to vector<256x32xf32>
    %17 = arith.subf %2, %16 : vector<256x32xf32>
    %cst_8 = arith.constant 9.99999974E-6 : f32
    %18 = vector.broadcast %cst_8 : f32 to vector<1x32xf32>
    %19 = arith.addf %15, %18 : vector<1x32xf32>
    %20 = math.rsqrt %19 : vector<1x32xf32>
    %21 = vector.broadcast %20 : vector<1x32xf32> to vector<256x32xf32>
    %22 = arith.mulf %17, %21 : vector<256x32xf32>
    %cst_9 = arith.constant 0.000000e+00 : f32
    %23 = vector.broadcast %cst_9 : f32 to vector<256x32xf32>
    %24 = arith.maximumf %22, %23 : vector<256x32xf32>
    %c0_10 = arith.constant 0 : index
    %c0_11 = arith.constant 0 : index
    %25 = vector.load %arg3[%c0_10, %c0_11] : memref<256x32xf32, #tpu.memory_space<vmem>>, vector<256x32xf32>
    tpu.vector_store %arg3[%c0_10, %c0_11], %24 {strides = array<i32>} : memref<256x32xf32, #tpu.memory_space<vmem>>, vector<256x32xf32>,
    return
  }
  func.func @transform_0(%arg0: i32) -> (i32, i32) {
    %c0_i32 = arith.constant 0 : i32
    %c0_i32_0 = arith.constant 0 : i32
    %c0_i32_1 = arith.constant 0 : i32
    return %c0_i32, %c0_i32_0 : i32, i32
  }
  func.func @transform_1(%arg0: i32) -> (i32, i32) {
    %c0_i32 = arith.constant 0 : i32
    %c0_i32_0 = arith.constant 0 : i32
    %c0_i32_1 = arith.constant 0 : i32
    return %c0_i32, %c0_i32_0 : i32, i32
  }
  func.func @transform_2(%arg0: i32) -> (i32, i32) {
    %c0_i32 = arith.constant 0 : i32
    %c0_i32_0 = arith.constant 0 : i32
    %c0_i32_1 = arith.constant 0 : i32
    return %c0_i32, %c0_i32_0 : i32, i32
  }
}

</mosaic_0001>

<bundles_post_ra>
// kernel: temporal_attention_forward.3
= control target key start
LH: loop header
LB: loop body
LE: loop exit
PB: predicated region body
PF: predicated region fallthrough
CT: control target
= control target key end

     0   :  { %vm47_vm0 = vcmask 261120   ;;  %s1268_s1 = inlined_call_operand.vmem [shape: f32[32,128], index: 1, kind: input, shape index: {}]   ;;  %s1269_s0 = inlined_call_operand.vmem [shape: f32[256,32], index: 0, kind: input, shape index: {}]   ;;  %s1270_s2 = inlined_call_operand.vmem [shape: f32[256,128], index: 2, kind: output, shape index: {}]  }
   0x1   :  { %v43_v0 = vld [vmem:[%s1268_s1] sm:$0xff]  ;;  %v44_v1 = vld [vmem:[%s1268_s1 + $0x8] sm:$0xff]  ;;  %v45_v2 = vld [vmem:[%s1268_s1 + $0x10] sm:$0xff] }
   0x2   :  { %v739_v3 = vpack.c.bf16 %v44_v1, %v43_v0  ;;  %v46_v4 = vld [vmem:[%s1268_s1 + $0x18] sm:$0xff]  ;;  %v11_v5 = vld [vmem:[%s1269_s0] sm:$0xff]  ;;  %v12_v8 = vld [vmem:[%s1269_s0 + $0x8] sm:$0xff] }
   0x3   :  { %v743_v6 = vpack.c.bf16 %v46_v4, %v45_v2  ;;  %691 = vmatprep.mubr.msk.f32.mxu0 %vm47_vm0, %v11_v5  ;;  %v27_v7 = vld [vmem:[%s1269_s0 + $0x80] sm:$0xff]  ;;  %v28_v9 = vld [vmem:[%s1269_s0 + $0x88] sm:$0xff]  ;;  %v13_v10 = vld [vmem:[%s1269_s0 + $0x10] sm:$0xff] }
   0x4   :  { %740 = vmatprep.subr.bf16.mxu0 %v739_v3  ;;  %747 = vmatprep.subr.bf16.mxu1 %v739_v3  ;;  %v29_v11 = vld [vmem:[%s1269_s0 + $0x90] sm:$0xff]  ;;  %v14_v12 = vld [vmem:[%s1269_s0 + $0x18] sm:$0xff]  ;;  %v15_v14 = vld [vmem:[%s1269_s0 + $0x20] sm:$0xff] }
   0x5   :  { %742 = vmatpush3.bf16.msra.mxu0 %v739_v3  ;;  %749 = vmatpush3.bf16.msra.mxu1 %v739_v3  ;;  %v30_v13 = vld [vmem:[%s1269_s0 + $0x98] sm:$0xff]  ;;  %v31_v15 = vld [vmem:[%s1269_s0 + $0xa0] sm:$0xff]  ;;  %v16_v16 = vld [vmem:[%s1269_s0 + $0x28] sm:$0xff] }
   0x6   :  { %744 = vmatprep.subr.bf16.mxu0 %v743_v6  ;;  %748 = vmatprep.subr.bf16.mxu1 %v743_v6  ;;  %v32_v17 = vld [vmem:[%s1269_s0 + $0xa8] sm:$0xff]  ;;  %v17_v18 = vld [vmem:[%s1269_s0 + $0x30] sm:$0xff]  ;;  %v18_v20 = vld [vmem:[%s1269_s0 + $0x38] sm:$0xff] }
   0x7   :  { %715 = vmatprep.mubr.msk.f32.mxu1 %vm47_vm0, %v27_v7  ;;  %v33_v19 = vld [vmem:[%s1269_s0 + $0xb0] sm:$0xff]  ;;  %v34_v21 = vld [vmem:[%s1269_s0 + $0xb8] sm:$0xff]  ;;  %v19_v22 = vld [vmem:[%s1269_s0 + $0x40] sm:$0xff] }
   0x8   :  { %v35_v23 = vld [vmem:[%s1269_s0 + $0xc0] sm:$0xff]  ;;  %v20_v24 = vld [vmem:[%s1269_s0 + $0x48] sm:$0xff]  ;;  %v21_v26 = vld [vmem:[%s1269_s0 + $0x50] sm:$0xff] }
   0x9   :  { %746 = vmatpush3.bf16.msra.mxu0 %v743_v6  ;;  %750 = vmatpush3.bf16.msra.mxu1 %v743_v6  ;;  %v36_v25 = vld [vmem:[%s1269_s0 + $0xc8] sm:$0xff]  ;;  %v37_v27 = vld [vmem:[%s1269_s0 + $0xd0] sm:$0xff]  ;;  %v22_v28 = vld [vmem:[%s1269_s0 + $0x58] sm:$0xff] }
   0xa   :  { %v38_v29 = vld [vmem:[%s1269_s0 + $0xd8] sm:$0xff]  ;;  %v23_v30 = vld [vmem:[%s1269_s0 + $0x60] sm:$0xff]  ;;  %v24_v32 = vld [vmem:[%s1269_s0 + $0x68] sm:$0xff] }
   0xb   :  { %v39_v31 = vld [vmem:[%s1269_s0 + $0xe0] sm:$0xff]  ;;  %v40_v33 = vld [vmem:[%s1269_s0 + $0xe8] sm:$0xff]  ;;  %v25_v34 = vld [vmem:[%s1269_s0 + $0x70] sm:$0xff] }
   0xc   :  { %692 = vmatmul.mubr.msk.f32.vlgmr.msra.gmra.mrb[0].mxu0 %vm47_vm0, %v12_v8  ;;  %716 = vmatmul.mubr.msk.f32.vlgmr.msra.gmra.mrb[0].mxu1 %vm47_vm0, %v28_v9  ;;  %v41_v35 = vld [vmem:[%s1269_s0 + $0xf0] sm:$0xff]  ;;  %v26_v36 = vld [vmem:[%s1269_s0 + $0x78] sm:$0xff] }
   0xd   :  { %694 = vmatprep.mubr.msk.f32.mxu0 %vm47_vm0, %v13_v10  ;;  %718 = vmatprep.mubr.msk.f32.mxu1 %vm47_vm0, %v29_v11  ;;  %v42_v37 = vld [vmem:[%s1269_s0 + $0xf8] sm:$0xff] }
  0x10   :  { %695 = vmatmul.mubr.msk.f32.gmra.mrb[2].mxu0 %vm47_vm0, %v14_v12  ;;  %719 = vmatmul.mubr.msk.f32.gmra.mrb[2].mxu1 %vm47_vm0, %v30_v13 }
  0x11   :  { %697 = vmatprep.mubr.msk.f32.mxu0 %vm47_vm0, %v15_v14  ;;  %721 = vmatprep.mubr.msk.f32.mxu1 %vm47_vm0, %v31_v15 }
  0x14   :  { %698 = vmatmul.mubr.msk.f32.gmra.mrb[4].mxu0 %vm47_vm0, %v16_v16  ;;  %722 = vmatmul.mubr.msk.f32.gmra.mrb[4].mxu1 %vm47_vm0, %v32_v17 }
  0x15   :  { %700 = vmatprep.mubr.msk.f32.mxu0 %vm47_vm0, %v17_v18  ;;  %724 = vmatprep.mubr.msk.f32.mxu1 %vm47_vm0, %v33_v19 }
  0x18   :  { %701 = vmatmul.mubr.msk.f32.gmra.mrb[6].mxu0 %vm47_vm0, %v18_v20  ;;  %725 = vmatmul.mubr.msk.f32.gmra.mrb[6].mxu1 %vm47_vm0, %v34_v21 }
  0x19   :  { %703 = vmatprep.mubr.msk.f32.mxu0 %vm47_vm0, %v19_v22  ;;  %727 = vmatprep.mubr.msk.f32.mxu1 %vm47_vm0, %v35_v23 }
  0x1c   :  { %704 = vmatmul.mubr.msk.f32.gmra.mrb[8].mxu0 %vm47_vm0, %v20_v24  ;;  %728 = vmatmul.mubr.msk.f32.gmra.mrb[8].mxu1 %vm47_vm0, %v36_v25 }
  0x1d   :  { %706 = vmatprep.mubr.msk.f32.mxu0 %vm47_vm0, %v21_v26  ;;  %730 = vmatprep.mubr.msk.f32.mxu1 %vm47_vm0, %v37_v27 }
  0x20   :  { %707 = vmatmul.mubr.msk.f32.gmra.mrb[10].mxu0 %vm47_vm0, %v22_v28  ;;  %731 = vmatmul.mubr.msk.f32.gmra.mrb[10].mxu1 %vm47_vm0, %v38_v29 }
  0x21   :  { %709 = vmatprep.mubr.msk.f32.mxu0 %vm47_vm0, %v23_v30  ;;  %733 = vmatprep.mubr.msk.f32.mxu1 %vm47_vm0, %v39_v31 }
  0x24   :  { %710 = vmatmul.mubr.msk.f32.gmra.mrb[12].mxu0 %vm47_vm0, %v24_v32  ;;  %734 = vmatmul.mubr.msk.f32.gmra.mrb[12].mxu1 %vm47_vm0, %v40_v33 }
  0x25   :  { %712 = vmatprep.mubr.msk.f32.mxu0 %vm47_vm0, %v25_v34  ;;  %736 = vmatprep.mubr.msk.f32.mxu1 %vm47_vm0, %v41_v35 }
  0x28   :  { %713 = vmatmul.mubr.msk.f32.gmra.mrb[14].mxu0 %vm47_vm0, %v26_v36  ;;  %737 = vmatmul.mubr.msk.f32.gmra.mrb[14].mxu1 %vm47_vm0, %v42_v37 }
  0xdf   :  { %v908_v38 = vpop.f32.mrb[0].mxu0  ;;  %v910_v39 = vpop.f32.mrb[0].mxu1 }
  0xe0   :  { %v409_v40 = vmul.f32 %v908_v38, %v908_v38  ;;  %v914_v41 = vpop.f32.mrb[1].mxu0  ;;  %v916_v42 = vpop.f32.mrb[1].mxu1 }
  0xe1   :  { %v369_v43 = vadd.f32 %v908_v38, %v914_v41  ;;  %v408_v44 = vmul.f32 %v914_v41, %v914_v41 }
  0xe3   :  { %v440_v45 = vadd.f32 %v409_v40, %v408_v44  ;;  %v922_v46 = vpop.f32.mrb[2].mxu0  ;;  %v924_v47 = vpop.f32.mrb[2].mxu1 }
  0xe4   :  { %v926_v48 = vpop.f32.mrb[3].mxu0  ;;  %v928_v49 = vpop.f32.mrb[3].mxu1  ;;  %v411_v52 = vmul.f32 %v922_v46, %v922_v46 }
  0xe5   :  { %v370_v50 = vadd.f32 %v369_v43, %v926_v48  ;;  %v410_v51 = vmul.f32 %v926_v48, %v926_v48 }
  0xe7   :  { %v441_v53 = vadd.f32 %v440_v45, %v410_v51  ;;  %v935_v54 = vpop.f32.mrb[4].mxu0  ;;  %v371_v55 = vadd.f32 %v922_v46, %v370_v50  ;;  %v938_v56 = vpop.f32.mrb[4].mxu1 }
  0xe8   :  { %v940_v57 = vpop.f32.mrb[5].mxu0  ;;  %v942_v58 = vpop.f32.mrb[5].mxu1  ;;  %v413_v62 = vmul.f32 %v935_v54, %v935_v54 }
  0xe9   :  { %v372_v59 = vadd.f32 %v371_v55, %v940_v57  ;;  %v412_v60 = vmul.f32 %v940_v57, %v940_v57  ;;  %v442_v61 = vadd.f32 %v441_v53, %v411_v52 }
  0xeb   :  { %v443_v63 = vadd.f32 %v442_v61, %v412_v60  ;;  %v949_v0 = vpop.f32.mrb[6].mxu0  ;;  %v373_v1 = vadd.f32 %v935_v54, %v372_v59  ;;  %v952_v2 = vpop.f32.mrb[6].mxu1 }
  0xec   :  { %v954_v3 = vpop.f32.mrb[7].mxu0  ;;  %v956_v4 = vpop.f32.mrb[7].mxu1  ;;  %v415_v8 = vmul.f32 %v949_v0, %v949_v0 }
  0xed   :  { %v374_v5 = vadd.f32 %v373_v1, %v954_v3  ;;  %v414_v6 = vmul.f32 %v954_v3, %v954_v3  ;;  %v444_v7 = vadd.f32 %v443_v63, %v413_v62  ;;  %v424_v63 = vmul.f32 %v916_v42, %v916_v42 }
  0xef   :  { %v445_v9 = vadd.f32 %v444_v7, %v414_v6  ;;  %v963_v10 = vpop.f32.mrb[8].mxu0  ;;  %v375_v11 = vadd.f32 %v949_v0, %v374_v5  ;;  %v966_v12 = vpop.f32.mrb[8].mxu1  ;;  %v425_v6 = vmul.f32 %v910_v39, %v910_v39 }
  0xf0   :  { %v968_v13 = vpop.f32.mrb[9].mxu0  ;;  %v970_v14 = vpop.f32.mrb[9].mxu1  ;;  %v417_v18 = vmul.f32 %v963_v10, %v963_v10 }
  0xf1   :  { %v376_v15 = vadd.f32 %v375_v11, %v968_v13  ;;  %v416_v16 = vmul.f32 %v968_v13, %v968_v13  ;;  %v446_v17 = vadd.f32 %v445_v9, %v415_v8  ;;  %v426_v9 = vmul.f32 %v928_v49, %v928_v49 }
  0xf3   :  { %v447_v19 = vadd.f32 %v446_v17, %v416_v16  ;;  %v977_v20 = vpop.f32.mrb[10].mxu0  ;;  %v377_v21 = vadd.f32 %v963_v10, %v376_v15  ;;  %v980_v22 = vpop.f32.mrb[10].mxu1  ;;  %v427_v16 = vmul.f32 %v924_v47, %v924_v47 }
  0xf4   :  { %v982_v23 = vpop.f32.mrb[11].mxu0  ;;  %v984_v24 = vpop.f32.mrb[11].mxu1  ;;  %v419_v28 = vmul.f32 %v977_v20, %v977_v20 }
  0xf5   :  { %v378_v25 = vadd.f32 %v377_v21, %v982_v23  ;;  %v418_v26 = vmul.f32 %v982_v23, %v982_v23  ;;  %v448_v27 = vadd.f32 %v447_v19, %v417_v18  ;;  %v428_v19 = vmul.f32 %v942_v58, %v942_v58 }
  0xf7   :  { %v449_v29 = vadd.f32 %v448_v27, %v418_v26  ;;  %v991_v30 = vpop.f32.mrb[12].mxu0  ;;  %v379_v31 = vadd.f32 %v977_v20, %v378_v25  ;;  %v994_v32 = vpop.f32.mrb[12].mxu1  ;;  %v429_v26 = vmul.f32 %v938_v56, %v938_v56 }
  0xf8   :  { %v996_v33 = vpop.f32.mrb[13].mxu0  ;;  %v998_v34 = vpop.f32.mrb[13].mxu1  ;;  %v421_v40 = vmul.f32 %v991_v30, %v991_v30 }
  0xf9   :  { %v380_v35 = vadd.f32 %v379_v31, %v996_v33  ;;  %v420_v36 = vmul.f32 %v996_v33, %v996_v33  ;;  %v450_v37 = vadd.f32 %v449_v29, %v419_v28  ;;  %v430_v29 = vmul.f32 %v956_v4, %v956_v4 }
  0xfb   :  { %v451_v43 = vadd.f32 %v450_v37, %v420_v36  ;;  %v1005_v44 = vpop.f32.mrb[14].mxu0  ;;  %v381_v45 = vadd.f32 %v991_v30, %v380_v35  ;;  %v1008_v50 = vpop.f32.mrb[14].mxu1  ;;  %v431_v36 = vmul.f32 %v952_v2, %v952_v2 }
  0xfc   :  { %v1010_v51 = vpop.f32.mrb[15].mxu0  ;;  %v1012_v52 = vpop.f32.mrb[15].mxu1  ;;  %v423_v60 = vmul.f32 %v1005_v44, %v1005_v44 }
  0xfd   :  { %v382_v53 = vadd.f32 %v381_v45, %v1010_v51  ;;  %v422_v55 = vmul.f32 %v1010_v51, %v1010_v51  ;;  %v452_v59 = vadd.f32 %v451_v43, %v421_v40  ;;  %v432_v43 = vmul.f32 %v970_v14, %v970_v14 }
  0xff   :  { %v383_v61 = vadd.f32 %v1005_v44, %v382_v53  ;;  %v453_v62 = vadd.f32 %v452_v59, %v422_v55  ;;  %v433_v55 = vmul.f32 %v966_v12, %v966_v12 }
 0x101   :  { %v454_v1 = vadd.f32 %v453_v62, %v423_v60  ;;  %v384_v5 = vadd.f32 %v383_v61, %v916_v42  ;;  %v434_v61 = vmul.f32 %v984_v24, %v984_v24 }
 0x103   :  { %v455_v7 = vadd.f32 %v454_v1, %v424_v63  ;;  %v385_v8 = vadd.f32 %v910_v39, %v384_v5  ;;  %v435_v1 = vmul.f32 %v980_v22, %v980_v22 }
 0x105   :  { %v386_v11 = vadd.f32 %v385_v8, %v928_v49  ;;  %v456_v15 = vadd.f32 %v455_v7, %v425_v6  ;;  %v436_v7 = vmul.f32 %v998_v34, %v998_v34 }
 0x107   :  { %v457_v17 = vadd.f32 %v456_v15, %v426_v9  ;;  %v387_v18 = vadd.f32 %v924_v47, %v386_v11  ;;  %v437_v11 = vmul.f32 %v994_v32, %v994_v32 }
 0x109   :  { %v388_v21 = vadd.f32 %v387_v18, %v942_v58  ;;  %v458_v25 = vadd.f32 %v457_v17, %v427_v16  ;;  %v438_v17 = vmul.f32 %v1012_v52, %v1012_v52 }
 0x10b   :  { %v459_v27 = vadd.f32 %v458_v25, %v428_v19  ;;  %v389_v28 = vadd.f32 %v938_v56, %v388_v21  ;;  %v439_v21 = vmul.f32 %v1008_v50, %v1008_v50 }
 0x10d   :  { %v390_v31 = vadd.f32 %v389_v28, %v956_v4  ;;  %v460_v35 = vadd.f32 %v459_v27, %v429_v26 }
 0x10f   :  { %v461_v37 = vadd.f32 %v460_v35, %v430_v29  ;;  %v391_v40 = vadd.f32 %v952_v2, %v390_v31 }
 0x111   :  { %v392_v45 = vadd.f32 %v391_v40, %v970_v14  ;;  %v462_v53 = vadd.f32 %v461_v37, %v431_v36 }
 0x113   :  { %v463_v59 = vadd.f32 %v462_v53, %v432_v43  ;;  %v393_v60 = vadd.f32 %v966_v12, %v392_v45 }
 0x115   :  { %v394_v62 = vadd.f32 %v393_v60, %v984_v24  ;;  %v464_v63 = vadd.f32 %v463_v59, %v433_v55 }
 0x117   :  { %v465_v5 = vadd.f32 %v464_v63, %v434_v61  ;;  %v395_v6 = vadd.f32 %v980_v22, %v394_v62 }
 0x119   :  { %v396_v8 = vadd.f32 %v395_v6, %v998_v34  ;;  %v466_v9 = vadd.f32 %v465_v5, %v435_v1 }
 0x11b   :  { %v467_v15 = vadd.f32 %v466_v9, %v436_v7  ;;  %v397_v16 = vadd.f32 %v994_v32, %v396_v8 }
 0x11d   :  { %v398_v18 = vadd.f32 %v397_v16, %v1012_v52  ;;  %v468_v19 = vadd.f32 %v467_v15, %v437_v11 }
 0x11f   :  { %v399_v25 = vadd.f32 %v1008_v50, %v398_v18  ;;  %v469_v26 = vadd.f32 %v468_v19, %v438_v17 }
 0x121   :  { %v400_v27 = vrot.slane %v399_v25, 4  ;;  %v470_v28 = vadd.f32 %v469_v26, %v439_v21 }
 0x123   :  { %v401_v29 = vadd.f32 %v400_v27, %v399_v25  ;;  %v471_v31 = vrot.slane %v470_v28, 4 }
 0x125   :  { %v402_v35 = vrot.slane %v401_v29, 2  ;;  %v472_v36 = vadd.f32 %v471_v31, %v470_v28 }
 0x127   :  { %v403_v37 = vadd.f32 %v402_v35, %v401_v29  ;;  %v473_v40 = vrot.slane %v472_v36, 2 }
 0x129   :  { %v404_v43 = vrot.slane %v403_v37, 1  ;;  %v474_v45 = vadd.f32 %v473_v40, %v472_v36 }
 0x12b   :  { %v405_v53 = vadd.f32 %v404_v43, %v403_v37  ;;  %v475_v55 = vrot.slane %v474_v45, 1 }
 0x12d   :  { %v1068_v59 = vmul.f32 0.00390625, %v405_v53  ;;  %v476_v60 = vadd.f32 %v475_v55, %v474_v45 }
 0x12f   :  { %v477_v61 = vmul.f32 0.00390625, %v476_v60  ;;  %v478_v62 = vmul.f32 %v1068_v59, %v1068_v59  ;;  %v481_v63 = vsub.f32 %v914_v41, %v1068_v59  ;;  %v482_v1 = vsub.f32 %v908_v38, %v1068_v59 }
 0x130   :  { %v483_v5 = vsub.f32 %v926_v48, %v1068_v59  ;;  %v484_v6 = vsub.f32 %v922_v46, %v1068_v59  ;;  %v485_v7 = vsub.f32 %v940_v57, %v1068_v59  ;;  %v486_v8 = vsub.f32 %v935_v54, %v1068_v59 }
 0x131   :  { %v479_v9 = vsub.f32 %v477_v61, %v478_v62  ;;  %v487_v11 = vsub.f32 %v954_v3, %v1068_v59  ;;  %v488_v41 = vsub.f32 %v949_v0, %v1068_v59  ;;  %v489_v38 = vsub.f32 %v968_v13, %v1068_v59 }
 0x132   :  { %v490_v48 = vsub.f32 %v963_v10, %v1068_v59  ;;  %v491_v46 = vsub.f32 %v982_v23, %v1068_v59  ;;  %v492_v57 = vsub.f32 %v977_v20, %v1068_v59  ;;  %v493_v54 = vsub.f32 %v996_v33, %v1068_v59 }
 0x133   :  { %v480_v15 = vmax.f32 %v479_v9, 0.0  ;;  %v494_v3 = vsub.f32 %v991_v30, %v1068_v59  ;;  %v495_v0 = vsub.f32 %v1010_v51, %v1068_v59  ;;  %v496_v13 = vsub.f32 %v1005_v44, %v1068_v59 }
 0x134   :  { %v497_v10 = vsub.f32 %v916_v42, %v1068_v59  ;;  %v498_v23 = vsub.f32 %v910_v39, %v1068_v59  ;;  %v499_v20 = vsub.f32 %v928_v49, %v1068_v59  ;;  %v500_v33 = vsub.f32 %v924_v47, %v1068_v59 }
 0x135   :  { %v501_v30 = vsub.f32 %v942_v58, %v1068_v59  ;;  %v502_v51 = vsub.f32 %v938_v56, %v1068_v59  ;;  %v503_v44 = vsub.f32 %v956_v4, %v1068_v59  ;;  %v504_v42 = vsub.f32 %v952_v2, %v1068_v59 }
 0x136   :  { %v505_v39 = vsub.f32 %v970_v14, %v1068_v59  ;;  %v506_v49 = vsub.f32 %v966_v12, %v1068_v59  ;;  %v507_v47 = vsub.f32 %v984_v24, %v1068_v59  ;;  %v508_v58 = vsub.f32 %v980_v22, %v1068_v59 }
 0x137   :  { %v509_v56 = vsub.f32 %v998_v34, %v1068_v59  ;;  %v510_v4 = vsub.f32 %v994_v32, %v1068_v59  ;;  %v511_v2 = vsub.f32 %v1012_v52, %v1068_v59  ;;  %v512_v14 = vsub.f32 %v1008_v50, %v1068_v59 }
 0x138   :  { %v513_v16 = vadd.f32 1e-05, %v480_v15 }
 0x13a   :  { %751 = vrsqrt.f32 %v513_v16 }
 0x144   :  { %v752_v12 = vpop.eup %751 }
 0x145   :  { %v515_v17 = vmul.f32 %v752_v12, %v481_v63  ;;  %v516_v24 = vmul.f32 %v752_v12, %v482_v1  ;;  %v517_v18 = vmul.f32 %v752_v12, %v483_v5  ;;  %v518_v19 = vmul.f32 %v752_v12, %v484_v6 }
 0x146   :  { %v519_v22 = vmul.f32 %v752_v12, %v485_v7  ;;  %v520_v21 = vmul.f32 %v752_v12, %v486_v8  ;;  %v521_v25 = vmul.f32 %v752_v12, %v487_v11  ;;  %v522_v34 = vmul.f32 %v752_v12, %v488_v41 }
 0x147   :  { %v523_v26 = vmul.f32 %v752_v12, %v489_v38  ;;  %v524_v27 = vmul.f32 %v752_v12, %v490_v48  ;;  %v525_v32 = vmul.f32 %v752_v12, %v491_v46  ;;  %v526_v28 = vmul.f32 %v752_v12, %v492_v57 }
 0x148   :  { %v527_v29 = vmul.f32 %v752_v12, %v493_v54  ;;  %v528_v52 = vmul.f32 %v752_v12, %v494_v3  ;;  %v529_v31 = vmul.f32 %v752_v12, %v495_v0  ;;  %v530_v35 = vmul.f32 %v752_v12, %v496_v13 }
 0x149   :  { %v531_v50 = vmul.f32 %v752_v12, %v497_v10  ;;  %v532_v36 = vmul.f32 %v752_v12, %v498_v23  ;;  %v533_v37 = vmul.f32 %v752_v12, %v499_v20  ;;  %v534_v40 = vmul.f32 %v752_v12, %v500_v33 }
 0x14a   :  { %v1136_v43 = vmul.f32 %v752_v12, %v501_v30  ;;  %v1138_v45 = vmul.f32 %v752_v12, %v502_v51  ;;  %v1140_v53 = vmul.f32 %v752_v12, %v503_v44  ;;  %v1142_v55 = vmul.f32 %v752_v12, %v504_v42 }
 0x14b   :  { %v1144_v59 = vmul.f32 %v752_v12, %v505_v39  ;;  %v1146_v60 = vmul.f32 %v752_v12, %v506_v49  ;;  %v1148_v61 = vmul.f32 %v752_v12, %v507_v47  ;;  %v1150_v62 = vmul.f32 %v752_v12, %v508_v58 }
 0x14c   :  { %v1152_v63 = vmul.f32 %v752_v12, %v509_v56  ;;  %v1154_v1 = vmul.f32 %v752_v12, %v510_v4  ;;  %v1156_v5 = vmul.f32 %v752_v12, %v511_v2  ;;  %v1158_v6 = vmul.f32 %v752_v12, %v512_v14 }
 0x14d   :  { %v547_v7 = vmax.f32 %v515_v17, 0.0  ;;  %v548_v8 = vmax.f32 %v516_v24, 0.0  ;;  %v549_v9 = vmax.f32 %v517_v18, 0.0  ;;  %v550_v11 = vmax.f32 %v518_v19, 0.0 }
 0x14e   :  { %v551_v41 = vmax.f32 %v519_v22, 0.0  ;;  %v552_v38 = vmax.f32 %v520_v21, 0.0  ;;  %v553_v48 = vmax.f32 %v521_v25, 0.0  ;;  %v554_v46 = vmax.f32 %v522_v34, 0.0 }
 0x14f   :  { %v555_v57 = vmax.f32 %v523_v26, 0.0  ;;  %v556_v54 = vmax.f32 %v524_v27, 0.0  ;;  %v557_v15 = vmax.f32 %v525_v32, 0.0  ;;  %v558_v3 = vmax.f32 %v526_v28, 0.0  ;;  %579 = vst [vmem:[%s1270_s2] sm:$0xff] %v547_v7  ;;  %580 = vst [vmem:[%s1270_s2 + $0x8] sm:$0xff] %v548_v8 }
 0x150   :  { %581 = vst [vmem:[%s1270_s2 + $0x10] sm:$0xff] %v549_v9  ;;  %582 = vst [vmem:[%s1270_s2 + $0x18] sm:$0xff] %v550_v11  ;;  %v559_v0 = vmax.f32 %v527_v29, 0.0  ;;  %v560_v13 = vmax.f32 %v528_v52, 0.0  ;;  %v561_v10 = vmax.f32 %v529_v31, 0.0  ;;  %v562_v23 = vmax.f32 %v530_v35, 0.0 }
 0x151   :  { %583 = vst [vmem:[%s1270_s2 + $0x20] sm:$0xff] %v551_v41  ;;  %584 = vst [vmem:[%s1270_s2 + $0x28] sm:$0xff] %v552_v38  ;;  %v563_v20 = vmax.f32 %v531_v50, 0.0  ;;  %v564_v33 = vmax.f32 %v532_v36, 0.0  ;;  %v565_v30 = vmax.f32 %v533_v37, 0.0  ;;  %v566_v51 = vmax.f32 %v534_v40, 0.0 }
 0x152   :  { %585 = vst [vmem:[%s1270_s2 + $0x30] sm:$0xff] %v553_v48  ;;  %586 = vst [vmem:[%s1270_s2 + $0x38] sm:$0xff] %v554_v46  ;;  %v567_v44 = vmax.f32 %v1136_v43, 0.0  ;;  %v568_v42 = vmax.f32 %v1138_v45, 0.0  ;;  %v569_v39 = vmax.f32 %v1140_v53, 0.0  ;;  %v570_v49 = vmax.f32 %v1142_v55, 0.0 }
 0x153   :  { %587 = vst [vmem:[%s1270_s2 + $0x40] sm:$0xff] %v555_v57  ;;  %588 = vst [vmem:[%s1270_s2 + $0x48] sm:$0xff] %v556_v54  ;;  %v571_v47 = vmax.f32 %v1144_v59, 0.0  ;;  %v572_v58 = vmax.f32 %v1146_v60, 0.0  ;;  %v573_v56 = vmax.f32 %v1148_v61, 0.0  ;;  %v574_v4 = vmax.f32 %v1150_v62, 0.0 }
 0x154   :  { %589 = vst [vmem:[%s1270_s2 + $0x50] sm:$0xff] %v557_v15  ;;  %590 = vst [vmem:[%s1270_s2 + $0x58] sm:$0xff] %v558_v3  ;;  %v575_v2 = vmax.f32 %v1152_v63, 0.0  ;;  %v576_v14 = vmax.f32 %v1154_v1, 0.0  ;;  %v577_v16 = vmax.f32 %v1156_v5, 0.0  ;;  %v578_v12 = vmax.f32 %v1158_v6, 0.0 }
 0x155   :  { %591 = vst [vmem:[%s1270_s2 + $0x60] sm:$0xff] %v559_v0  ;;  %592 = vst [vmem:[%s1270_s2 + $0x68] sm:$0xff] %v560_v13 }
 0x156   :  { %593 = vst [vmem:[%s1270_s2 + $0x70] sm:$0xff] %v561_v10  ;;  %594 = vst [vmem:[%s1270_s2 + $0x78] sm:$0xff] %v562_v23 }
 0x157   :  { %595 = vst [vmem:[%s1270_s2 + $0x80] sm:$0xff] %v563_v20  ;;  %596 = vst [vmem:[%s1270_s2 + $0x88] sm:$0xff] %v564_v33 }
 0x158   :  { %597 = vst [vmem:[%s1270_s2 + $0x90] sm:$0xff] %v565_v30  ;;  %598 = vst [vmem:[%s1270_s2 + $0x98] sm:$0xff] %v566_v51 }
 0x159   :  { %599 = vst [vmem:[%s1270_s2 + $0xa0] sm:$0xff] %v567_v44  ;;  %600 = vst [vmem:[%s1270_s2 + $0xa8] sm:$0xff] %v568_v42 }
 0x15a   :  { %601 = vst [vmem:[%s1270_s2 + $0xb0] sm:$0xff] %v569_v39  ;;  %602 = vst [vmem:[%s1270_s2 + $0xb8] sm:$0xff] %v570_v49 }
 0x15b   :  { %603 = vst [vmem:[%s1270_s2 + $0xc0] sm:$0xff] %v571_v47  ;;  %604 = vst [vmem:[%s1270_s2 + $0xc8] sm:$0xff] %v572_v58 }
 0x15c   :  { %605 = vst [vmem:[%s1270_s2 + $0xd0] sm:$0xff] %v573_v56  ;;  %606 = vst [vmem:[%s1270_s2 + $0xd8] sm:$0xff] %v574_v4 }
 0x15d   :  { %607 = vst [vmem:[%s1270_s2 + $0xe0] sm:$0xff] %v575_v2  ;;  %608 = vst [vmem:[%s1270_s2 + $0xe8] sm:$0xff] %v576_v14 }
 0x15e   :  { %609 = vst [vmem:[%s1270_s2 + $0xf0] sm:$0xff] %v577_v16  ;;  %610 = vst [vmem:[%s1270_s2 + $0xf8] sm:$0xff] %v578_v12 }

// kernel: temporal_attention_forward.5
= control target key start
LH: loop header
LB: loop body
LE: loop exit
PB: predicated region body
PF: predicated region fallthrough
CT: control target
= control target key end

     0   :  { %vm48_vm0 = vcmask 261120   ;;  %s1394_s0 = inlined_call_operand.vmem [shape: f32[256,32], index: 0, kind: input, shape index: {}]   ;;  %s1395_s1 = inlined_call_operand.vmem [shape: f32[32,32], index: 1, kind: input, shape index: {}]   ;;  %s1396_s2 = inlined_call_operand.hbm [shape: f32[256,32], index: 2, kind: output, shape index: {}]  }
   0x1   :  { %v44_v0 = vld [vmem:[%s1395_s1] sm:$0xff]  ;;  %v45_v1 = vld [vmem:[%s1395_s1 + $0x8] sm:$0xff]  ;;  %v46_v2 = vld [vmem:[%s1395_s1 + $0x10] sm:$0xff] }
   0x2   :  { %v816_v3 = vpack.c.bf16 %v45_v1, %v44_v0  ;;  %v47_v4 = vld [vmem:[%s1395_s1 + $0x18] sm:$0xff]  ;;  %v12_v5 = vld [vmem:[%s1394_s0] sm:$0xff]  ;;  %v13_v8 = vld [vmem:[%s1394_s0 + $0x8] sm:$0xff] }
   0x3   :  { %v820_v6 = vpack.c.bf16 %v47_v4, %v46_v2  ;;  %768 = vmatprep.mubr.msk.f32.mxu0 %vm48_vm0, %v12_v5  ;;  %v28_v7 = vld [vmem:[%s1394_s0 + $0x80] sm:$0xff]  ;;  %v29_v9 = vld [vmem:[%s1394_s0 + $0x88] sm:$0xff]  ;;  %v14_v10 = vld [vmem:[%s1394_s0 + $0x10] sm:$0xff] }
   0x4   :  { %817 = vmatprep.subr.bf16.mxu0 %v816_v3  ;;  %824 = vmatprep.subr.bf16.mxu1 %v816_v3  ;;  %v30_v11 = vld [vmem:[%s1394_s0 + $0x90] sm:$0xff]  ;;  %v15_v12 = vld [vmem:[%s1394_s0 + $0x18] sm:$0xff] }
   0x5   :  { %819 = vmatpush3.bf16.msra.mxu0 %v816_v3  ;;  %826 = vmatpush3.bf16.msra.mxu1 %v816_v3  ;;  %v31_v13 = vld [vmem:[%s1394_s0 + $0x98] sm:$0xff] }
   0x6   :  { %821 = vmatprep.subr.bf16.mxu0 %v820_v6  ;;  %825 = vmatprep.subr.bf16.mxu1 %v820_v6 }
   0x7   :  { %792 = vmatprep.mubr.msk.f32.mxu1 %vm48_vm0, %v28_v7 }
   0x9   :  { %823 = vmatpush3.bf16.msra.mxu0 %v820_v6  ;;  %827 = vmatpush3.bf16.msra.mxu1 %v820_v6 }
   0xc   :  { %769 = vmatmul.mubr.msk.f32.vlgmr.msra.gmra.mrb[0].mxu0 %vm48_vm0, %v13_v8  ;;  %793 = vmatmul.mubr.msk.f32.vlgmr.msra.gmra.mrb[0].mxu1 %vm48_vm0, %v29_v9 }
   0xd   :  { %771 = vmatprep.mubr.msk.f32.mxu0 %vm48_vm0, %v14_v10  ;;  %795 = vmatprep.mubr.msk.f32.mxu1 %vm48_vm0, %v30_v11 }
   0xe   :  { %7 = vsyncpa [#allocation3], 0  ;;  %v16_v14 = vld [vmem:[%s1394_s0 + $0x20] sm:$0xff]  ;;  %v17_v16 = vld [vmem:[%s1394_s0 + $0x28] sm:$0xff] }
   0xf   :  { %v32_v15 = vld [vmem:[%s1394_s0 + $0xa0] sm:$0xff]  ;;  %v33_v17 = vld [vmem:[%s1394_s0 + $0xa8] sm:$0xff]  ;;  %v18_v18 = vld [vmem:[%s1394_s0 + $0x30] sm:$0xff] }
  0x10   :  { %772 = vmatmul.mubr.msk.f32.gmra.mrb[2].mxu0 %vm48_vm0, %v15_v12  ;;  %796 = vmatmul.mubr.msk.f32.gmra.mrb[2].mxu1 %vm48_vm0, %v31_v13  ;;  %v34_v19 = vld [vmem:[%s1394_s0 + $0xb0] sm:$0xff]  ;;  %v19_v20 = vld [vmem:[%s1394_s0 + $0x38] sm:$0xff]  ;;  %v20_v22 = vld [vmem:[%s1394_s0 + $0x40] sm:$0xff] }
  0x11   :  { %774 = vmatprep.mubr.msk.f32.mxu0 %vm48_vm0, %v16_v14  ;;  %798 = vmatprep.mubr.msk.f32.mxu1 %vm48_vm0, %v32_v15  ;;  %v35_v21 = vld [vmem:[%s1394_s0 + $0xb8] sm:$0xff]  ;;  %v36_v23 = vld [vmem:[%s1394_s0 + $0xc0] sm:$0xff]  ;;  %v21_v24 = vld [vmem:[%s1394_s0 + $0x48] sm:$0xff] }
  0x12   :  { %v37_v25 = vld [vmem:[%s1394_s0 + $0xc8] sm:$0xff]  ;;  %v22_v26 = vld [vmem:[%s1394_s0 + $0x50] sm:$0xff]  ;;  %v23_v28 = vld [vmem:[%s1394_s0 + $0x58] sm:$0xff] }
  0x13   :  { %v38_v27 = vld [vmem:[%s1394_s0 + $0xd0] sm:$0xff]  ;;  %v39_v29 = vld [vmem:[%s1394_s0 + $0xd8] sm:$0xff]  ;;  %v24_v30 = vld [vmem:[%s1394_s0 + $0x60] sm:$0xff] }
  0x14   :  { %775 = vmatmul.mubr.msk.f32.gmra.mrb[4].mxu0 %vm48_vm0, %v17_v16  ;;  %799 = vmatmul.mubr.msk.f32.gmra.mrb[4].mxu1 %vm48_vm0, %v33_v17  ;;  %v40_v31 = vld [vmem:[%s1394_s0 + $0xe0] sm:$0xff]  ;;  %v25_v32 = vld [vmem:[%s1394_s0 + $0x68] sm:$0xff]  ;;  %v26_v34 = vld [vmem:[%s1394_s0 + $0x70] sm:$0xff] }
  0x15   :  { %777 = vmatprep.mubr.msk.f32.mxu0 %vm48_vm0, %v18_v18  ;;  %801 = vmatprep.mubr.msk.f32.mxu1 %vm48_vm0, %v34_v19  ;;  %v41_v33 = vld [vmem:[%s1394_s0 + $0xe8] sm:$0xff]  ;;  %v42_v35 = vld [vmem:[%s1394_s0 + $0xf0] sm:$0xff]  ;;  %v27_v36 = vld [vmem:[%s1394_s0 + $0x78] sm:$0xff] }
  0x16   :  { %v43_v37 = vld [vmem:[%s1394_s0 + $0xf8] sm:$0xff]  ;;  %s857_s0 = smov [#allocation2]  }
  0x17   :  { %s681_s22 = sshll.u32 %s857_s0, 4  ;;  %s1359_s22 = int_to_ptr.vmem [resolvable:$true] %s681_s22 }
  0x18   :  { %778 = vmatmul.mubr.msk.f32.gmra.mrb[6].mxu0 %vm48_vm0, %v19_v20  ;;  %802 = vmatmul.mubr.msk.f32.gmra.mrb[6].mxu1 %vm48_vm0, %v35_v21  ;;  %s833_s23 = scalar_lea.vmem %s1359_s22, 4096  ;;  %p838_p1 = scmp.lt.s32.totalorder %s1359_s22, %s1359_s22 }
  0x19   :  { %780 = vmatprep.mubr.msk.f32.mxu0 %vm48_vm0, %v20_v22  ;;  %804 = vmatprep.mubr.msk.f32.mxu1 %vm48_vm0, %v36_v23  ;;  %p834_p0 = scmp.ne.s32.totalorder %s1359_s22, %s833_s23  ;;  %p839_p2 = scmp.lt.s32.totalorder %s833_s23, %s833_s23 }
  0x1b   :  { %p840_p3 = por %p839_p2, %p838_p1 }
  0x1c   :  { %781 = vmatmul.mubr.msk.f32.gmra.mrb[8].mxu0 %vm48_vm0, %v21_v24  ;;  %805 = vmatmul.mubr.msk.f32.gmra.mrb[8].mxu1 %vm48_vm0, %v37_v25 }
  0x1d   :  { %783 = vmatprep.mubr.msk.f32.mxu0 %vm48_vm0, %v22_v26  ;;  %807 = vmatprep.mubr.msk.f32.mxu1 %vm48_vm0, %v38_v27  ;;  %p841_p4 = pnand %p840_p3, %p834_p0 }
  0x20   :  { %784 = vmatmul.mubr.msk.f32.gmra.mrb[10].mxu0 %vm48_vm0, %v23_v28  ;;  %808 = vmatmul.mubr.msk.f32.gmra.mrb[10].mxu1 %vm48_vm0, %v39_v29 }
  0x21   :  { %786 = vmatprep.mubr.msk.f32.mxu0 %vm48_vm0, %v24_v30  ;;  %810 = vmatprep.mubr.msk.f32.mxu1 %vm48_vm0, %v40_v31 }
  0x24   :  { %787 = vmatmul.mubr.msk.f32.gmra.mrb[12].mxu0 %vm48_vm0, %v25_v32  ;;  %811 = vmatmul.mubr.msk.f32.gmra.mrb[12].mxu1 %vm48_vm0, %v41_v33 }
  0x25   :  { %789 = vmatprep.mubr.msk.f32.mxu0 %vm48_vm0, %v26_v34  ;;  %813 = vmatprep.mubr.msk.f32.mxu1 %vm48_vm0, %v42_v35 }
  0x28   :  { %790 = vmatmul.mubr.msk.f32.gmra.mrb[14].mxu0 %vm48_vm0, %v27_v36  ;;  %814 = vmatmul.mubr.msk.f32.gmra.mrb[14].mxu1 %vm48_vm0, %v43_v37 }
  0xdf   :  { %v1015_v38 = vpop.f32.mrb[0].mxu0  ;;  %v1017_v39 = vpop.f32.mrb[0].mxu1 }
  0xe0   :  { %v371_v40 = vsel %vm48_vm0, %v1015_v38, 0.0  ;;  %v442_v41 = vmul.f32 %v1015_v38, %v1015_v38  ;;  %v1023_v42 = vpop.f32.mrb[1].mxu0  ;;  %v1025_v43 = vpop.f32.mrb[1].mxu1 }
  0xe1   :  { %v370_v44 = vsel %vm48_vm0, %v1023_v42, 0.0  ;;  %v441_v45 = vmul.f32 %v1023_v42, %v1023_v42 }
  0xe2   :  { %v474_v46 = vsel %vm48_vm0, %v442_v41, 0.0  ;;  %v372_v47 = vadd.f32 %v371_v40, %v370_v44 }
  0xe3   :  { %v473_v48 = vsel %vm48_vm0, %v441_v45, 0.0  ;;  %v1033_v49 = vpop.f32.mrb[2].mxu0  ;;  %v1035_v50 = vpop.f32.mrb[2].mxu1 }
  0xe4   :  { %v475_v51 = vadd.f32 %v474_v46, %v473_v48  ;;  %v1037_v52 = vpop.f32.mrb[3].mxu0  ;;  %v1039_v53 = vpop.f32.mrb[3].mxu1  ;;  %v444_v54 = vmul.f32 %v1033_v49, %v1033_v49  ;;  %v375_v58 = vsel %vm48_vm0, %v1033_v49, 0.0 }
  0xe5   :  { %v373_v55 = vsel %vm48_vm0, %v1037_v52, 0.0  ;;  %v443_v56 = vmul.f32 %v1037_v52, %v1037_v52 }
  0xe6   :  { %v374_v57 = vadd.f32 %v373_v55, %v372_v47  ;;  %v478_v2 = vsel %vm48_vm0, %v444_v54, 0.0 }
  0xe7   :  { %v476_v59 = vsel %vm48_vm0, %v443_v56, 0.0  ;;  %v1050_v60 = vpop.f32.mrb[4].mxu0  ;;  %v1052_v61 = vpop.f32.mrb[4].mxu1 }
  0xe8   :  { %v477_v62 = vadd.f32 %v476_v59, %v475_v51  ;;  %v1054_v63 = vpop.f32.mrb[5].mxu0  ;;  %v376_v0 = vadd.f32 %v375_v58, %v374_v57  ;;  %v1056_v1 = vpop.f32.mrb[5].mxu1  ;;  %v446_v3 = vmul.f32 %v1050_v60, %v1050_v60  ;;  %v379_v8 = vsel %vm48_vm0, %v1050_v60, 0.0 }
  0xe9   :  { %v377_v4 = vsel %vm48_vm0, %v1054_v63, 0.0  ;;  %v445_v5 = vmul.f32 %v1054_v63, %v1054_v63 }
  0xea   :  { %v378_v6 = vadd.f32 %v377_v4, %v376_v0  ;;  %v479_v7 = vadd.f32 %v478_v2, %v477_v62  ;;  %v482_v16 = vsel %vm48_vm0, %v446_v3, 0.0 }
  0xeb   :  { %v480_v9 = vsel %vm48_vm0, %v445_v5, 0.0  ;;  %v1068_v10 = vpop.f32.mrb[6].mxu0  ;;  %v1070_v11 = vpop.f32.mrb[6].mxu1 }
  0xec   :  { %v481_v12 = vadd.f32 %v480_v9, %v479_v7  ;;  %v1072_v13 = vpop.f32.mrb[7].mxu0  ;;  %v380_v14 = vadd.f32 %v379_v8, %v378_v6  ;;  %v1074_v15 = vpop.f32.mrb[7].mxu1  ;;  %v448_v17 = vmul.f32 %v1068_v10, %v1068_v10  ;;  %v383_v22 = vsel %vm48_vm0, %v1068_v10, 0.0 }
  0xed   :  { %v381_v18 = vsel %vm48_vm0, %v1072_v13, 0.0  ;;  %v447_v19 = vmul.f32 %v1072_v13, %v1072_v13 }
  0xee   :  { %v382_v20 = vadd.f32 %v381_v18, %v380_v14  ;;  %v483_v21 = vadd.f32 %v482_v16, %v481_v12  ;;  %v486_v30 = vsel %vm48_vm0, %v448_v17, 0.0 }
  0xef   :  { %v484_v23 = vsel %vm48_vm0, %v447_v19, 0.0  ;;  %v1086_v24 = vpop.f32.mrb[8].mxu0  ;;  %v1088_v25 = vpop.f32.mrb[8].mxu1 }
  0xf0   :  { %v485_v26 = vadd.f32 %v484_v23, %v483_v21  ;;  %v1090_v27 = vpop.f32.mrb[9].mxu0  ;;  %v384_v28 = vadd.f32 %v383_v22, %v382_v20  ;;  %v1092_v29 = vpop.f32.mrb[9].mxu1  ;;  %v450_v31 = vmul.f32 %v1086_v24, %v1086_v24  ;;  %v387_v36 = vsel %vm48_vm0, %v1086_v24, 0.0 }
  0xf1   :  { %v385_v32 = vsel %vm48_vm0, %v1090_v27, 0.0  ;;  %v449_v33 = vmul.f32 %v1090_v27, %v1090_v27  ;;  %v457_v23 = vmul.f32 %v1025_v43, %v1025_v43 }
  0xf2   :  { %v386_v34 = vadd.f32 %v385_v32, %v384_v28  ;;  %v487_v35 = vadd.f32 %v486_v30, %v485_v26  ;;  %v490_v48 = vsel %vm48_vm0, %v450_v31, 0.0 }
  0xf3   :  { %v488_v37 = vsel %vm48_vm0, %v449_v33, 0.0  ;;  %v1104_v40 = vpop.f32.mrb[10].mxu0  ;;  %v1106_v41 = vpop.f32.mrb[10].mxu1 }
  0xf4   :  { %v489_v44 = vadd.f32 %v488_v37, %v487_v35  ;;  %v1108_v45 = vpop.f32.mrb[11].mxu0  ;;  %v388_v46 = vadd.f32 %v387_v36, %v386_v34  ;;  %v1110_v47 = vpop.f32.mrb[11].mxu1  ;;  %v452_v51 = vmul.f32 %v1104_v40, %v1104_v40  ;;  %v391_v58 = vsel %vm48_vm0, %v1104_v40, 0.0 }
  0xf5   :  { %v389_v54 = vsel %vm48_vm0, %v1108_v45, 0.0  ;;  %v451_v55 = vmul.f32 %v1108_v45, %v1108_v45  ;;  %v401_v37 = vsel %vm48_vm0, %v1025_v43, 0.0 }
  0xf6   :  { %v390_v56 = vadd.f32 %v389_v54, %v388_v46  ;;  %v491_v57 = vadd.f32 %v490_v48, %v489_v44  ;;  %v494_v6 = vsel %vm48_vm0, %v452_v51, 0.0  ;;  %v458_v51 = vmul.f32 %v1017_v39, %v1017_v39 }
  0xf7   :  { %v492_v59 = vsel %vm48_vm0, %v451_v55, 0.0  ;;  %v1122_v62 = vpop.f32.mrb[12].mxu0  ;;  %v1124_v0 = vpop.f32.mrb[12].mxu1  ;;  %v504_v54 = vsel %vm48_vm0, %v457_v23, 0.0  ;;  %v459_v55 = vmul.f32 %v1039_v53, %v1039_v53 }
  0xf8   :  { %v493_v2 = vadd.f32 %v492_v59, %v491_v57  ;;  %v1126_v3 = vpop.f32.mrb[13].mxu0  ;;  %v392_v4 = vadd.f32 %v391_v58, %v390_v56  ;;  %v1128_v5 = vpop.f32.mrb[13].mxu1  ;;  %v454_v7 = vmul.f32 %v1122_v62, %v1122_v62  ;;  %v395_v16 = vsel %vm48_vm0, %v1122_v62, 0.0 }
  0xf9   :  { %v393_v8 = vsel %vm48_vm0, %v1126_v3, 0.0  ;;  %v453_v9 = vmul.f32 %v1126_v3, %v1126_v3  ;;  %v403_v58 = vsel %vm48_vm0, %v1017_v39, 0.0  ;;  %v405_v59 = vsel %vm48_vm0, %v1039_v53, 0.0 }
  0xfa   :  { %v394_v12 = vadd.f32 %v393_v8, %v392_v4  ;;  %v495_v14 = vadd.f32 %v494_v6, %v493_v2  ;;  %v498_v28 = vsel %vm48_vm0, %v454_v7, 0.0  ;;  %v506_v6 = vsel %vm48_vm0, %v458_v51, 0.0 }
  0xfb   :  { %v496_v17 = vsel %vm48_vm0, %v453_v9, 0.0  ;;  %v1140_v18 = vpop.f32.mrb[14].mxu0  ;;  %v1142_v19 = vpop.f32.mrb[14].mxu1  ;;  %v460_v7 = vmul.f32 %v1035_v50, %v1035_v50  ;;  %v508_v8 = vsel %vm48_vm0, %v459_v55, 0.0  ;;  %v461_v9 = vmul.f32 %v1056_v1, %v1056_v1 }
  0xfc   :  { %v497_v20 = vadd.f32 %v496_v17, %v495_v14  ;;  %v1144_v21 = vpop.f32.mrb[15].mxu0  ;;  %v396_v22 = vadd.f32 %v395_v16, %v394_v12  ;;  %v1148_v26 = vpop.f32.mrb[15].mxu1  ;;  %v456_v30 = vmul.f32 %v1140_v18, %v1140_v18  ;;  %v399_v35 = vsel %vm48_vm0, %v1140_v18, 0.0 }
  0xfd   :  { %v397_v31 = vsel %vm48_vm0, %v1144_v21, 0.0  ;;  %v455_v32 = vmul.f32 %v1144_v21, %v1144_v21  ;;  %v407_v16 = vsel %vm48_vm0, %v1035_v50, 0.0  ;;  %v409_v17 = vsel %vm48_vm0, %v1056_v1, 0.0 }
  0xfe   :  { %v398_v33 = vadd.f32 %v397_v31, %v396_v22  ;;  %v499_v34 = vadd.f32 %v498_v28, %v497_v20  ;;  %v502_v48 = vsel %vm48_vm0, %v456_v30, 0.0  ;;  %v510_v23 = vsel %vm48_vm0, %v460_v7, 0.0 }
  0xff   :  { %v500_v36 = vsel %vm48_vm0, %v455_v32, 0.0  ;;  %v462_v28 = vmul.f32 %v1052_v61, %v1052_v61  ;;  %v512_v30 = vsel %vm48_vm0, %v461_v9, 0.0  ;;  %v463_v31 = vmul.f32 %v1074_v15, %v1074_v15 }
 0x100   :  { %v400_v44 = vadd.f32 %v399_v35, %v398_v33  ;;  %v501_v46 = vadd.f32 %v500_v36, %v499_v34  ;;  %v411_v34 = vsel %vm48_vm0, %v1052_v61, 0.0  ;;  %v413_v35 = vsel %vm48_vm0, %v1074_v15, 0.0 }
 0x101   :  { %v465_v51 = vmul.f32 %v1092_v29, %v1092_v29  ;;  %v467_v7 = vmul.f32 %v1110_v47, %v1110_v47 }
 0x102   :  { %v503_v56 = vadd.f32 %v502_v48, %v501_v46  ;;  %v402_v57 = vadd.f32 %v401_v37, %v400_v44  ;;  %v514_v44 = vsel %vm48_vm0, %v462_v28, 0.0  ;;  %v464_v46 = vmul.f32 %v1070_v11, %v1070_v11 }
 0x103   :  { %v516_v48 = vsel %vm48_vm0, %v463_v31, 0.0  ;;  %v469_v28 = vmul.f32 %v1128_v5, %v1128_v5 }
 0x104   :  { %v505_v2 = vadd.f32 %v504_v54, %v503_v56  ;;  %v404_v4 = vadd.f32 %v403_v58, %v402_v57  ;;  %v415_v56 = vsel %vm48_vm0, %v1070_v11, 0.0  ;;  %v417_v57 = vsel %vm48_vm0, %v1092_v29, 0.0 }
 0x106   :  { %v406_v12 = vadd.f32 %v405_v59, %v404_v4  ;;  %v507_v14 = vadd.f32 %v506_v6, %v505_v2  ;;  %v518_v2 = vsel %vm48_vm0, %v464_v46, 0.0  ;;  %v466_v4 = vmul.f32 %v1088_v25, %v1088_v25 }
 0x107   :  { %v520_v6 = vsel %vm48_vm0, %v465_v51, 0.0  ;;  %v471_v46 = vmul.f32 %v1148_v26, %v1148_v26 }
 0x108   :  { %v509_v20 = vadd.f32 %v508_v8, %v507_v14  ;;  %v408_v22 = vadd.f32 %v407_v16, %v406_v12  ;;  %v419_v12 = vsel %vm48_vm0, %v1088_v25, 0.0  ;;  %v421_v14 = vsel %vm48_vm0, %v1110_v47, 0.0 }
 0x10a   :  { %v410_v32 = vadd.f32 %v409_v17, %v408_v22  ;;  %v511_v33 = vadd.f32 %v510_v23, %v509_v20  ;;  %v522_v20 = vsel %vm48_vm0, %v466_v4, 0.0  ;;  %v468_v22 = vmul.f32 %v1106_v41, %v1106_v41 }
 0x10b   :  { %v524_v23 = vsel %vm48_vm0, %v467_v7, 0.0  ;;  %v431_v7 = vsel %vm48_vm0, %v1142_v19, 0.0 }
 0x10c   :  { %v513_v36 = vadd.f32 %v512_v30, %v511_v33  ;;  %v412_v37 = vadd.f32 %v411_v34, %v410_v32  ;;  %v423_v32 = vsel %vm48_vm0, %v1106_v41, 0.0  ;;  %v425_v33 = vsel %vm48_vm0, %v1128_v5, 0.0 }
 0x10e   :  { %v414_v54 = vadd.f32 %v413_v35, %v412_v37  ;;  %v515_v55 = vadd.f32 %v514_v44, %v513_v36  ;;  %v526_v36 = vsel %vm48_vm0, %v468_v22, 0.0  ;;  %v470_v37 = vmul.f32 %v1124_v0, %v1124_v0 }
 0x10f   :  { %v528_v44 = vsel %vm48_vm0, %v469_v28, 0.0 }
 0x110   :  { %v517_v58 = vadd.f32 %v516_v48, %v515_v55  ;;  %v416_v59 = vadd.f32 %v415_v56, %v414_v54  ;;  %v427_v54 = vsel %vm48_vm0, %v1124_v0, 0.0  ;;  %v429_v55 = vsel %vm48_vm0, %v1148_v26, 0.0 }
 0x112   :  { %v418_v8 = vadd.f32 %v417_v57, %v416_v59  ;;  %v519_v9 = vadd.f32 %v518_v2, %v517_v58  ;;  %v530_v58 = vsel %vm48_vm0, %v470_v37, 0.0  ;;  %v472_v59 = vmul.f32 %v1142_v19, %v1142_v19 }
 0x113   :  { %v532_v2 = vsel %vm48_vm0, %v471_v46, 0.0 }
 0x114   :  { %v521_v16 = vadd.f32 %v520_v6, %v519_v9  ;;  %v420_v17 = vadd.f32 %v419_v12, %v418_v8  ;;  %v534_v12 = vsel %vm48_vm0, %v472_v59, 0.0 }
 0x116   :  { %v422_v30 = vadd.f32 %v421_v14, %v420_v17  ;;  %v523_v31 = vadd.f32 %v522_v20, %v521_v16 }
 0x118   :  { %v525_v34 = vadd.f32 %v524_v23, %v523_v31  ;;  %v424_v35 = vadd.f32 %v423_v32, %v422_v30 }
 0x11a   :  { %v426_v48 = vadd.f32 %v425_v33, %v424_v35  ;;  %v527_v51 = vadd.f32 %v526_v36, %v525_v34 }
 0x11c   :  { %v529_v56 = vadd.f32 %v528_v44, %v527_v51  ;;  %v428_v57 = vadd.f32 %v427_v54, %v426_v48 }
 0x11e   :  { %v430_v4 = vadd.f32 %v429_v55, %v428_v57  ;;  %v531_v6 = vadd.f32 %v530_v58, %v529_v56 }
 0x120   :  { %v432_v8 = vadd.f32 %v431_v7, %v430_v4  ;;  %v533_v9 = vadd.f32 %v532_v2, %v531_v6 }
 0x122   :  { %v433_v14 = vrot.slane %v432_v8, 4  ;;  %v535_v16 = vadd.f32 %v534_v12, %v533_v9 }
 0x124   :  { %v434_v17 = vadd.f32 %v433_v14, %v432_v8  ;;  %v536_v20 = vrot.slane %v535_v16, 4 }
 0x126   :  { %v435_v22 = vrot.slane %v434_v17, 2  ;;  %v537_v23 = vadd.f32 %v536_v20, %v535_v16 }
 0x128   :  { %v436_v28 = vadd.f32 %v435_v22, %v434_v17  ;;  %v538_v30 = vrot.slane %v537_v23, 2 }
 0x12a   :  { %v437_v31 = vrot.slane %v436_v28, 1  ;;  %v539_v32 = vadd.f32 %v538_v30, %v537_v23 }
 0x12c   :  { %v438_v33 = vadd.f32 %v437_v31, %v436_v28  ;;  %v540_v34 = vrot.slane %v539_v32, 1 }
 0x12e   :  { %v1239_v35 = vmul.f32 0.00390625, %v438_v33  ;;  %v541_v36 = vadd.f32 %v540_v34, %v539_v32 }
 0x130   :  { %v542_v37 = vmul.f32 0.00390625, %v541_v36  ;;  %v543_v44 = vmul.f32 %v1239_v35, %v1239_v35  ;;  %v576_v46 = vsub.f32 %v1148_v26, %v1239_v35  ;;  %v546_v48 = vsub.f32 %v1023_v42, %v1239_v35 }
 0x131   :  { %v547_v51 = vsub.f32 %v1015_v38, %v1239_v35  ;;  %v548_v54 = vsub.f32 %v1037_v52, %v1239_v35  ;;  %v549_v55 = vsub.f32 %v1033_v49, %v1239_v35  ;;  %v550_v56 = vsub.f32 %v1054_v63, %v1239_v35 }
 0x132   :  { %v544_v57 = vsub.f32 %v542_v37, %v543_v44  ;;  %v551_v58 = vsub.f32 %v1050_v60, %v1239_v35  ;;  %v552_v26 = vsub.f32 %v1072_v13, %v1239_v35  ;;  %v553_v42 = vsub.f32 %v1068_v10, %v1239_v35 }
 0x133   :  { %v554_v38 = vsub.f32 %v1090_v27, %v1239_v35  ;;  %v555_v52 = vsub.f32 %v1086_v24, %v1239_v35  ;;  %v556_v49 = vsub.f32 %v1108_v45, %v1239_v35  ;;  %v557_v63 = vsub.f32 %v1104_v40, %v1239_v35 }
 0x134   :  { %v545_v59 = vmax.f32 %v544_v57, 0.0  ;;  %v558_v60 = vsub.f32 %v1126_v3, %v1239_v35  ;;  %v559_v13 = vsub.f32 %v1122_v62, %v1239_v35  ;;  %v560_v10 = vsub.f32 %v1144_v21, %v1239_v35 }
 0x135   :  { %v561_v27 = vsub.f32 %v1140_v18, %v1239_v35  ;;  %v562_v24 = vsub.f32 %v1025_v43, %v1239_v35  ;;  %v563_v45 = vsub.f32 %v1017_v39, %v1239_v35  ;;  %v564_v40 = vsub.f32 %v1039_v53, %v1239_v35 }
 0x136   :  { %v578_v2 = vadd.f32 1e-05, %v545_v59  ;;  %v565_v3 = vsub.f32 %v1035_v50, %v1239_v35  ;;  %v566_v62 = vsub.f32 %v1056_v1, %v1239_v35  ;;  %v567_v21 = vsub.f32 %v1052_v61, %v1239_v35 }
 0x137   :  { %v568_v18 = vsub.f32 %v1074_v15, %v1239_v35  ;;  %v569_v43 = vsub.f32 %v1070_v11, %v1239_v35  ;;  %v570_v39 = vsub.f32 %v1092_v29, %v1239_v35  ;;  %v571_v53 = vsub.f32 %v1088_v25, %v1239_v35 }
 0x138   :  { %831 = vrsqrt.f32 %v578_v2  ;;  %v572_v50 = vsub.f32 %v1110_v47, %v1239_v35  ;;  %v573_v1 = vsub.f32 %v1106_v41, %v1239_v35  ;;  %v574_v61 = vsub.f32 %v1128_v5, %v1239_v35 }
 0x139   :  { %v575_v15 = vsub.f32 %v1124_v0, %v1239_v35  ;;  %v577_v11 = vsub.f32 %v1142_v19, %v1239_v35 }
 0x142   :  { %v832_v29 = vpop.eup %831 }
 0x143   :  { %v610_v4 = vmul.f32 %v832_v29, %v576_v46  ;;  %v580_v6 = vmul.f32 %v832_v29, %v546_v48  ;;  %v581_v25 = vmul.f32 %v832_v29, %v547_v51  ;;  %v582_v7 = vmul.f32 %v832_v29, %v548_v54 }
 0x144   :  { %v583_v8 = vmul.f32 %v832_v29, %v549_v55  ;;  %v584_v9 = vmul.f32 %v832_v29, %v550_v56  ;;  %v585_v47 = vmul.f32 %v832_v29, %v551_v58  ;;  %v586_v12 = vmul.f32 %v832_v29, %v552_v26 }
 0x145   :  { %v642_v14 = vmax.f32 %v610_v4, 0.0  ;;  %v587_v41 = vmul.f32 %v832_v29, %v553_v42  ;;  %v588_v16 = vmul.f32 %v832_v29, %v554_v38  ;;  %v589_v17 = vmul.f32 %v832_v29, %v555_v52 }
 0x146   :  { %v590_v5 = vmul.f32 %v832_v29, %v556_v49  ;;  %v591_v20 = vmul.f32 %v832_v29, %v557_v63  ;;  %v592_v22 = vmul.f32 %v832_v29, %v558_v60  ;;  %v593_v0 = vmul.f32 %v832_v29, %v559_v13 }
 0x147   :  { %674 = vst.msk [vmem:[#allocation2 + $0xf0] sm:$0xff] %vm48_vm0, %v642_v14  ;;  %v594_v19 = vmul.f32 %v832_v29, %v560_v10  ;;  %v595_v23 = vmul.f32 %v832_v29, %v561_v27  ;;  %v596_v28 = vmul.f32 %v832_v29, %v562_v24  ;;  %v597_v30 = vmul.f32 %v832_v29, %v563_v45 }
 0x148   :  { %v598_v31 = vmul.f32 %v832_v29, %v564_v40  ;;  %v1308_v32 = vmul.f32 %v832_v29, %v565_v3  ;;  %v1310_v33 = vmul.f32 %v832_v29, %v566_v62  ;;  %v1312_v34 = vmul.f32 %v832_v29, %v567_v21 }
 0x149   :  { %v1314_v35 = vmul.f32 %v832_v29, %v568_v18  ;;  %v1316_v36 = vmul.f32 %v832_v29, %v569_v43  ;;  %v1318_v37 = vmul.f32 %v832_v29, %v570_v39  ;;  %v1320_v44 = vmul.f32 %v832_v29, %v571_v53 }
 0x14a   :  { %v1322_v46 = vmul.f32 %v832_v29, %v572_v50  ;;  %v1324_v48 = vmul.f32 %v832_v29, %v573_v1  ;;  %v1326_v51 = vmul.f32 %v832_v29, %v574_v61  ;;  %v1328_v54 = vmul.f32 %v832_v29, %v575_v15 }
 0x14b   :  { %v1330_v55 = vmul.f32 %v832_v29, %v577_v11  ;;  %v612_v56 = vmax.f32 %v580_v6, 0.0  ;;  %v613_v57 = vmax.f32 %v581_v25, 0.0  ;;  %v614_v58 = vmax.f32 %v582_v7, 0.0 }
 0x14c   :  { %v615_v26 = vmax.f32 %v583_v8, 0.0  ;;  %v616_v42 = vmax.f32 %v584_v9, 0.0  ;;  %v617_v38 = vmax.f32 %v585_v47, 0.0  ;;  %v618_v52 = vmax.f32 %v586_v12, 0.0 }
 0x14d   :  { %v619_v49 = vmax.f32 %v587_v41, 0.0  ;;  %v620_v63 = vmax.f32 %v588_v16, 0.0  ;;  %v621_v59 = vmax.f32 %v589_v17, 0.0  ;;  %v622_v60 = vmax.f32 %v590_v5, 0.0  ;;  %644 = vst.msk [vmem:[#allocation2] sm:$0xff] %vm48_vm0, %v612_v56  ;;  %645 = vst.msk [vmem:[#allocation2 + $0x8] sm:$0xff] %vm48_vm0, %v613_v57 }
 0x14e   :  { %646 = vst.msk [vmem:[#allocation2 + $0x10] sm:$0xff] %vm48_vm0, %v614_v58  ;;  %v623_v13 = vmax.f32 %v591_v20, 0.0  ;;  %v624_v10 = vmax.f32 %v592_v22, 0.0  ;;  %v625_v27 = vmax.f32 %v593_v0, 0.0  ;;  %v626_v24 = vmax.f32 %v594_v19, 0.0  ;;  %647 = vst.msk [vmem:[#allocation2 + $0x18] sm:$0xff] %vm48_vm0, %v615_v26 }
 0x14f   :  { %648 = vst.msk [vmem:[#allocation2 + $0x20] sm:$0xff] %vm48_vm0, %v616_v42  ;;  %649 = vst.msk [vmem:[#allocation2 + $0x28] sm:$0xff] %vm48_vm0, %v617_v38  ;;  %v627_v45 = vmax.f32 %v595_v23, 0.0  ;;  %v628_v40 = vmax.f32 %v596_v28, 0.0  ;;  %v629_v2 = vmax.f32 %v597_v30, 0.0  ;;  %v630_v3 = vmax.f32 %v598_v31, 0.0 }
 0x150   :  { %650 = vst.msk [vmem:[#allocation2 + $0x30] sm:$0xff] %vm48_vm0, %v618_v52  ;;  %651 = vst.msk [vmem:[#allocation2 + $0x38] sm:$0xff] %vm48_vm0, %v619_v49  ;;  %v631_v62 = vmax.f32 %v1308_v32, 0.0  ;;  %v632_v21 = vmax.f32 %v1310_v33, 0.0  ;;  %v633_v18 = vmax.f32 %v1312_v34, 0.0  ;;  %v634_v43 = vmax.f32 %v1314_v35, 0.0 }
 0x151   :  { %652 = vst.msk [vmem:[#allocation2 + $0x40] sm:$0xff] %vm48_vm0, %v620_v63  ;;  %653 = vst.msk [vmem:[#allocation2 + $0x48] sm:$0xff] %vm48_vm0, %v621_v59  ;;  %v635_v39 = vmax.f32 %v1316_v36, 0.0  ;;  %v636_v53 = vmax.f32 %v1318_v37, 0.0  ;;  %v637_v50 = vmax.f32 %v1320_v44, 0.0  ;;  %v638_v1 = vmax.f32 %v1322_v46, 0.0 }
 0x152   :  { %654 = vst.msk [vmem:[#allocation2 + $0x50] sm:$0xff] %vm48_vm0, %v622_v60  ;;  %655 = vst.msk [vmem:[#allocation2 + $0x58] sm:$0xff] %vm48_vm0, %v623_v13  ;;  %v639_v61 = vmax.f32 %v1324_v48, 0.0  ;;  %v640_v15 = vmax.f32 %v1326_v51, 0.0  ;;  %v641_v11 = vmax.f32 %v1328_v54, 0.0  ;;  %v643_v29 = vmax.f32 %v1330_v55, 0.0 }
 0x153   :  { %656 = vst.msk [vmem:[#allocation2 + $0x60] sm:$0xff] %vm48_vm0, %v624_v10  ;;  %657 = vst.msk [vmem:[#allocation2 + $0x68] sm:$0xff] %vm48_vm0, %v625_v27 }
 0x154   :  { %658 = vst.msk [vmem:[#allocation2 + $0x70] sm:$0xff] %vm48_vm0, %v626_v24  ;;  %659 = vst.msk [vmem:[#allocation2 + $0x78] sm:$0xff] %vm48_vm0, %v627_v45 }
 0x155   :  { %660 = vst.msk [vmem:[#allocation2 + $0x80] sm:$0xff] %vm48_vm0, %v628_v40  ;;  %661 = vst.msk [vmem:[#allocation2 + $0x88] sm:$0xff] %vm48_vm0, %v629_v2 }
 0x156   :  { %662 = vst.msk [vmem:[#allocation2 + $0x90] sm:$0xff] %vm48_vm0, %v630_v3  ;;  %663 = vst.msk [vmem:[#allocation2 + $0x98] sm:$0xff] %vm48_vm0, %v631_v62 }
 0x157   :  { %664 = vst.msk [vmem:[#allocation2 + $0xa0] sm:$0xff] %vm48_vm0, %v632_v21  ;;  %665 = vst.msk [vmem:[#allocation2 + $0xa8] sm:$0xff] %vm48_vm0, %v633_v18 }
 0x158   :  { %666 = vst.msk [vmem:[#allocation2 + $0xb0] sm:$0xff] %vm48_vm0, %v634_v43  ;;  %667 = vst.msk [vmem:[#allocation2 + $0xb8] sm:$0xff] %vm48_vm0, %v635_v39 }
 0x159   :  { %668 = vst.msk [vmem:[#allocation2 + $0xc0] sm:$0xff] %vm48_vm0, %v636_v53  ;;  %669 = vst.msk [vmem:[#allocation2 + $0xc8] sm:$0xff] %vm48_vm0, %v637_v50 }
 0x15a   :  { %670 = vst.msk [vmem:[#allocation2 + $0xd0] sm:$0xff] %vm48_vm0, %v638_v1  ;;  %671 = vst.msk [vmem:[#allocation2 + $0xd8] sm:$0xff] %vm48_vm0, %v639_v61 }
 0x15b   :  { %672 = vst.msk [vmem:[#allocation2 + $0xe0] sm:$0xff] %vm48_vm0, %v640_v15  ;;  %673 = vst.msk [vmem:[#allocation2 + $0xe8] sm:$0xff] %vm48_vm0, %v641_v11 }
 0x15c   :  { %675 = vst.msk [vmem:[#allocation2 + $0xf8] sm:$0xff] %vm48_vm0, %v643_v29 }
 0x15d   :  { %844 = shalt.err (!%p841_p4)
}
 0x15e   :  { %s845_s26 = scalar_lea.hbm %s1396_s2, 4096 }
 0x15f   :  { %p846_p5 = scmp.ne.s32.totalorder %s1396_s2, %s845_s26  ;;  %p849_p6 = scmp.lt.u32.totalorder %s845_s26, %s1396_s2 }
 0x161   :  { %p851_p7 = pnand %p849_p6, %p846_p5 }
 0x163   :  { %854 = shalt.err (!%p851_p7)
}
 0x164   :  { %s858_s3 = smov 128   ;;  %s859_s4 = smov 8  }
 0x165   :  { %687 = dma.vmem_to_hbm [thread:$0]  %s1359_s22, 4096, %s1396_s2, [#allocation3], %s858_s3, %s858_s3, %s859_s4  }
 0x166   :  { %855 = dma.done.wait [#allocation3], 4096  }
 0x167   :  { %856 = vsyncadd [#allocation3], 4294963200 }
 0x168   :  { %691 = vsyncpa [#allocation3], 1 }

// kernel: temporal_attention_forward.4
= control target key start
LH: loop header
LB: loop body
LE: loop exit
PB: predicated region body
PF: predicated region fallthrough
CT: control target
= control target key end

     0   :  { %s12576_s6 = smov 0   ;;  %s14904_s0 = inlined_call_operand.vmem [shape: f32[32,8,128], index: 0, kind: input, shape index: {}]   ;;  %s14905_s1 = inlined_call_operand.vmem [shape: f32[32,8,32], index: 1, kind: output, shape index: {}]  }
   0x1 LB: > { %s11131_s7 = sadd.s32 4294967295, %s12548_s6   ;;  %p11135_p0 = scmp.ge.s32.totalorder %s12548_s6, 1  ;;  %s12548_s6 = sphi %s12576_s6, %s11_s6  }
   0x2   : > { %p88_p1 = scmp.lt.s32.totalorder %s12548_s6, 3 }
   0x4   : > { %p89_p2 = pnand %p11135_p0, %p88_p1 }
   0x6   : > { %92 = sbr.rel (%p89_p2) target bundleno = 2771 (0xad3), region = 24 }
   0xd   : > { %s11136_s8 = sshll.u32 %s11131_s7, 4  ;;  %v14906_v0 = vmov 0.0   ;;  %vm12551_vm0 = vmmov 0   ;;  %s12552_s13 = smov 96   ;;  %vm144_vm1 = vcmask 64512   ;;  %v136_v35 = vlaneseq }
   0xe   : > { %p109_p3 = scmp.lt.s32.totalorder %s11136_s8, 31  ;;  %11590 = vmatprep.subr.mxu0 %v14906_v0  ;;  %11592 = vmatprep.mubr.msk.f32.mxu0 %vm12551_vm0, %v14906_v0  ;;  %s12553_s14 = smov 64   ;;  %v14912_v39 = vmov 0  ;;  %vm11041_vm3 = vcmask 195584   ;;  %vm11024_vm4 = vcmask 130048   ;;  %vm11058_vm5 = vcmask 261120  }
   0xf   : > { %11595 = vmatprep.subr.mxu1 %v14906_v0  ;;  %11597 = vmatprep.mubr.msk.f32.mxu1 %vm12551_vm0, %v14906_v0  ;;  %s12554_s15 = smov 88   ;;  %s12555_s16 = smov 120   ;;  %v137_v36 = vshrl.u32 %v136_v35, 7  ;;  %v139_v37 = vand.u32 127, %v136_v35 }
  0x10   : > { %s14994_s8 = smov (!%p109_p3, %s11136_s8), 31  ;;  %s12556_s17 = smov 56  }
  0x11   : > { %s11137_s9 = sshll.u32 %s14994_s8, 3  ;;  %vm12794_vm2 = vcmp.ge.s32.totalorder %v137_v36, %v139_v37  ;;  %s12557_s18 = smov 80  }
  0x12   : > { %s12598_s12 = scalar_lea.vmem %s14904_s0, %s11137_s9  ;;  %v14913_v39 = vsel %vm12794_vm2, 4294967295, %v14912_v39  ;;  %s12558_s19 = smov 112  }
  0x13   : > { %v12601_v1 = vld [vmem:[%s12598_s12] sm:$0xff]  ;;  %v12604_v2 = vld [vmem:[%s12598_s12 + $0x10] sm:$0xff]  ;;  %v12609_v3 = vld [vmem:[%s12598_s12 + $0x8] sm:$0xff]  ;;  %14914 = vst [vmem:[#allocation2_spill] sm:$0xff] %v14913_v39  ;;  %s12559_s20 = smov 48   ;;  %s12560_s21 = smov 72  }
  0x14   : > { %142 = vrot.lane.b32.xlu0 %v12601_v1, %s12552_s13  ;;  %297 = vrot.lane.b32.xlu1 %v12604_v2, %s12552_s13  ;;  %v12612_v4 = vld [vmem:[%s12598_s12 + $0x18] sm:$0xff]  ;;  %v12617_v5 = vld [vmem:[%s12598_s12 + $0x20] sm:$0xff]  ;;  %s12561_s22 = smov 104   ;;  %s12562_s23 = smov 40  }
  0x15   : > { %v12620_v6 = vld [vmem:[%s12598_s12 + $0x28] sm:$0xff]  ;;  %v12625_v7 = vld [vmem:[%s12598_s12 + $0x30] sm:$0xff]  ;;  %v12628_v8 = vld [vmem:[%s12598_s12 + $0x38] sm:$0xff]  ;;  %s12563_s24 = smov 8   ;;  %s12564_s25 = smov 16  }
  0x16   : > { %v12633_v9 = vld [vmem:[%s12598_s12 + $0x40] sm:$0xff]  ;;  %v12636_v10 = vld [vmem:[%s12598_s12 + $0x48] sm:$0xff]  ;;  %v12641_v11 = vld [vmem:[%s12598_s12 + $0x50] sm:$0xff]  ;;  %s12565_s26 = smov 24   ;;  %s14789_s29 = scalar_lea.vmem %s14905_s1, %s11137_s9 }
  0x17   : > { %v12644_v12 = vld [vmem:[%s12598_s12 + $0x58] sm:$0xff]  ;;  %v12649_v13 = vld [vmem:[%s12598_s12 + $0x60] sm:$0xff]  ;;  %v12652_v14 = vld [vmem:[%s12598_s12 + $0x68] sm:$0xff] }
  0x18   : > { %220 = vrot.lane.b32.xlu0 %v12609_v3, %s12552_s13  ;;  %374 = vrot.lane.b32.xlu1 %v12612_v4, %s12552_s13  ;;  %v12657_v15 = vld [vmem:[%s12598_s12 + $0x70] sm:$0xff]  ;;  %v12660_v16 = vld [vmem:[%s12598_s12 + $0x78] sm:$0xff] }
  0x1c   : > { %451 = vrot.lane.b32.xlu0 %v12617_v5, %s12552_s13  ;;  %528 = vrot.lane.b32.xlu1 %v12620_v6, %s12552_s13 }
  0x20   : > { %605 = vrot.lane.b32.xlu0 %v12625_v7, %s12552_s13  ;;  %682 = vrot.lane.b32.xlu1 %v12628_v8, %s12552_s13 }
  0x24   : > { %759 = vrot.lane.b32.xlu0 %v12633_v9, %s12552_s13  ;;  %836 = vrot.lane.b32.xlu1 %v12636_v10, %s12552_s13 }
  0x28   : > { %913 = vrot.lane.b32.xlu0 %v12641_v11, %s12552_s13  ;;  %990 = vrot.lane.b32.xlu1 %v12644_v12, %s12552_s13 }
  0x2c   : > { %1067 = vrot.lane.b32.xlu0 %v12649_v13, %s12552_s13  ;;  %1144 = vrot.lane.b32.xlu1 %v12652_v14, %s12552_s13 }
  0x30   : > { %1221 = vrot.lane.b32.xlu0 %v12657_v15, %s12552_s13  ;;  %1298 = vrot.lane.b32.xlu1 %v12660_v16, %s12552_s13 }
  0x34   : > { %1584 = vrot.lane.b32.xlu1 %v12601_v1, %s12553_s14  ;;  %1660 = vrot.lane.b32.xlu0 %v12609_v3, %s12553_s14 }
  0x38   : > { %1736 = vrot.lane.b32.xlu1 %v12604_v2, %s12553_s14  ;;  %1812 = vrot.lane.b32.xlu0 %v12612_v4, %s12553_s14 }
  0x3c   : > { %1888 = vrot.lane.b32.xlu1 %v12617_v5, %s12553_s14  ;;  %2040 = vrot.lane.b32.xlu0 %v12625_v7, %s12553_s14 }
  0x40   : > { %1964 = vrot.lane.b32.xlu1 %v12620_v6, %s12553_s14  ;;  %2192 = vrot.lane.b32.xlu0 %v12633_v9, %s12553_s14 }
  0x44   : > { %2116 = vrot.lane.b32.xlu1 %v12628_v8, %s12553_s14  ;;  %2344 = vrot.lane.b32.xlu0 %v12641_v11, %s12553_s14 }
  0x48   : > { %2268 = vrot.lane.b32.xlu1 %v12636_v10, %s12553_s14  ;;  %2496 = vrot.lane.b32.xlu0 %v12649_v13, %s12553_s14 }
  0x4c   : > { %2420 = vrot.lane.b32.xlu1 %v12644_v12, %s12553_s14  ;;  %2648 = vrot.lane.b32.xlu0 %v12657_v15, %s12553_s14 }
  0x50   : > { %2572 = vrot.lane.b32.xlu1 %v12652_v14, %s12553_s14  ;;  %2802 = vrot.lane.b32.xlu0 %v12601_v1, %s12554_s15 }
  0x54   : > { %2724 = vrot.lane.b32.xlu1 %v12660_v16, %s12553_s14  ;;  %2800 = vrot.lane.b32.xlu0 %v12601_v1, %s12555_s16 }
  0x58   : > { %2880 = vrot.lane.b32.xlu1 %v12609_v3, %s12554_s15  ;;  %2958 = vrot.lane.b32.xlu0 %v12604_v2, %s12554_s15 }
  0x5c   : > { %2878 = vrot.lane.b32.xlu1 %v12609_v3, %s12555_s16  ;;  %2956 = vrot.lane.b32.xlu0 %v12604_v2, %s12555_s16 }
  0x60   : > { %3036 = vrot.lane.b32.xlu1 %v12612_v4, %s12554_s15 }
  0x64   : > { %3034 = vrot.lane.b32.xlu1 %v12612_v4, %s12555_s16 }
  0x86   : > { %v143_v17 = vpop.permute.xlu0 %142  ;;  %v298_v18 = vpop.permute.xlu1 %297 }
  0x87   : > { %11591 = vmatpush3.xpose.msk.msra.mxu0 %vm144_vm1, %v143_v17 }
  0x88   : > { %11600 = vmatprep.subr.mxu0 %v14906_v0 }
  0x8a   : > { %11593 = vmatmul.mubr.msk.f32.vlgmr.msra.gmra.mrb[0].mxu0 %vm144_vm1, %v12601_v1  ;;  %v221_v19 = vpop.permute.xlu0 %220  ;;  %v375_v20 = vpop.permute.xlu1 %374 }
  0x8b   : > { %11596 = vmatpush3.xpose.msk.msra.mxu1 %vm144_vm1, %v221_v19  ;;  %11601 = vmatpush3.xpose.msk.msra.mxu0 %vm144_vm1, %v298_v18 }
  0x8c   : > { %11602 = vmatprep.mubr.msk.f32.mxu0 %vm12551_vm0, %v14906_v0  ;;  %11605 = vmatprep.subr.mxu1 %v14906_v0 }
  0x8d   : > { %11610 = vmatprep.subr.mxu0 %v14906_v0 }
  0x8e   : > { %11598 = vmatmul.mubr.msk.f32.vlgmr.msra.gmra.mrb[0].mxu1 %vm144_vm1, %v12609_v3  ;;  %11603 = vmatmul.mubr.msk.f32.vlgmr.msra.gmra.mrb[2].mxu0 %vm144_vm1, %v12604_v2  ;;  %v452_v21 = vpop.permute.xlu0 %451  ;;  %v529_v22 = vpop.permute.xlu1 %528 }
  0x8f   : > { %11606 = vmatpush3.xpose.msk.msra.mxu1 %vm144_vm1, %v375_v20  ;;  %11611 = vmatpush3.xpose.msk.msra.mxu0 %vm144_vm1, %v452_v21 }
  0x90   : > { %11607 = vmatprep.mubr.msk.f32.mxu1 %vm12551_vm0, %v14906_v0  ;;  %11612 = vmatprep.mubr.msk.f32.mxu0 %vm12551_vm0, %v14906_v0 }
  0x91   : > { %11615 = vmatprep.subr.mxu1 %v14906_v0  ;;  %11620 = vmatprep.subr.mxu0 %v14906_v0 }
  0x92   : > { %11608 = vmatmul.mubr.msk.f32.vlgmr.msra.gmra.mrb[2].mxu1 %vm144_vm1, %v12612_v4  ;;  %11613 = vmatmul.mubr.msk.f32.vlgmr.msra.gmra.mrb[4].mxu0 %vm144_vm1, %v12617_v5  ;;  %v606_v23 = vpop.permute.xlu0 %605  ;;  %v683_v24 = vpop.permute.xlu1 %682 }
  0x93   : > { %11616 = vmatpush3.xpose.msk.msra.mxu1 %vm144_vm1, %v529_v22  ;;  %11621 = vmatpush3.xpose.msk.msra.mxu0 %vm144_vm1, %v606_v23 }
  0x94   : > { %11617 = vmatprep.mubr.msk.f32.mxu1 %vm12551_vm0, %v14906_v0  ;;  %11622 = vmatprep.mubr.msk.f32.mxu0 %vm12551_vm0, %v14906_v0 }
  0x95   : > { %11625 = vmatprep.subr.mxu1 %v14906_v0  ;;  %11630 = vmatprep.subr.mxu0 %v14906_v0 }
  0x96   : > { %11618 = vmatmul.mubr.msk.f32.vlgmr.msra.gmra.mrb[4].mxu1 %vm144_vm1, %v12620_v6  ;;  %11623 = vmatmul.mubr.msk.f32.vlgmr.msra.gmra.mrb[6].mxu0 %vm144_vm1, %v12625_v7  ;;  %v760_v25 = vpop.permute.xlu0 %759  ;;  %v837_v26 = vpop.permute.xlu1 %836 }
  0x97   : > { %11626 = vmatpush3.xpose.msk.msra.mxu1 %vm144_vm1, %v683_v24  ;;  %11631 = vmatpush3.xpose.msk.msra.mxu0 %vm144_vm1, %v760_v25 }
  0x98   : > { %11627 = vmatprep.mubr.msk.f32.mxu1 %vm12551_vm0, %v14906_v0  ;;  %11632 = vmatprep.mubr.msk.f32.mxu0 %vm12551_vm0, %v14906_v0 }
  0x99   : > { %11635 = vmatprep.subr.mxu1 %v14906_v0  ;;  %11640 = vmatprep.subr.mxu0 %v14906_v0 }
  0x9a   : > { %11628 = vmatmul.mubr.msk.f32.vlgmr.msra.gmra.mrb[6].mxu1 %vm144_vm1, %v12628_v8  ;;  %11633 = vmatmul.mubr.msk.f32.vlgmr.msra.gmra.mrb[8].mxu0 %vm144_vm1, %v12633_v9  ;;  %v914_v27 = vpop.permute.xlu0 %913  ;;  %v991_v28 = vpop.permute.xlu1 %990 }
  0x9b   : > { %11636 = vmatpush3.xpose.msk.msra.mxu1 %vm144_vm1, %v837_v26  ;;  %11641 = vmatpush3.xpose.msk.msra.mxu0 %vm144_vm1, %v914_v27 }
  0x9c   : > { %11637 = vmatprep.mubr.msk.f32.mxu1 %vm12551_vm0, %v14906_v0  ;;  %11642 = vmatprep.mubr.msk.f32.mxu0 %vm12551_vm0, %v14906_v0 }
  0x9d   : > { %11645 = vmatprep.subr.mxu1 %v14906_v0  ;;  %11650 = vmatprep.subr.mxu0 %v14906_v0 }
  0x9e   : > { %11638 = vmatmul.mubr.msk.f32.vlgmr.msra.gmra.mrb[8].mxu1 %vm144_vm1, %v12636_v10  ;;  %11643 = vmatmul.mubr.msk.f32.vlgmr.msra.gmra.mrb[10].mxu0 %vm144_vm1, %v12641_v11  ;;  %v1068_v29 = vpop.permute.xlu0 %1067  ;;  %v1145_v30 = vpop.permute.xlu1 %1144 }
  0x9f   : > { %11646 = vmatpush3.xpose.msk.msra.mxu1 %vm144_vm1, %v991_v28  ;;  %11651 = vmatpush3.xpose.msk.msra.mxu0 %vm144_vm1, %v1068_v29 }
  0xa0   : > { %11647 = vmatprep.mubr.msk.f32.mxu1 %vm12551_vm0, %v14906_v0  ;;  %11652 = vmatprep.mubr.msk.f32.mxu0 %vm12551_vm0, %v14906_v0 }
  0xa1   : > { %11655 = vmatprep.subr.mxu1 %v14906_v0  ;;  %11660 = vmatprep.subr.mxu0 %v14906_v0 }
  0xa2   : > { %11648 = vmatmul.mubr.msk.f32.vlgmr.msra.gmra.mrb[10].mxu1 %vm144_vm1, %v12644_v12  ;;  %11653 = vmatmul.mubr.msk.f32.vlgmr.msra.gmra.mrb[12].mxu0 %vm144_vm1, %v12649_v13  ;;  %v1222_v31 = vpop.permute.xlu0 %1221  ;;  %v1299_v32 = vpop.permute.xlu1 %1298 }
  0xa3   : > { %11656 = vmatpush3.xpose.msk.msra.mxu1 %vm144_vm1, %v1145_v30  ;;  %11661 = vmatpush3.xpose.msk.msra.mxu0 %vm144_vm1, %v1222_v31 }
  0xa4   : > { %11657 = vmatprep.mubr.msk.f32.mxu1 %vm12551_vm0, %v14906_v0  ;;  %11662 = vmatprep.mubr.msk.f32.mxu0 %vm12551_vm0, %v14906_v0 }
  0xa5   : > { %11665 = vmatprep.subr.mxu1 %v14906_v0  ;;  %11670 = vmatprep.subr.mxu0 %v14906_v0 }
  0xa6   : > { %11658 = vmatmul.mubr.msk.f32.vlgmr.msra.gmra.mrb[12].mxu1 %vm144_vm1, %v12652_v14  ;;  %11663 = vmatmul.mubr.msk.f32.vlgmr.msra.gmra.mrb[14].mxu0 %vm144_vm1, %v12657_v15  ;;  %v1585_v33 = vpop.permute.xlu1 %1584  ;;  %v1661_v34 = vpop.permute.xlu0 %1660 }
  0xa7   : > { %11666 = vmatpush3.xpose.msk.msra.mxu1 %vm144_vm1, %v1299_v32  ;;  %11667 = vmatprep.mubr.msk.f32.mxu1 %vm12551_vm0, %v14906_v0 }
  0xa8   : > { %11675 = vmatprep.subr.mxu1 %v14906_v0  ;;  %11672 = vmatprep.mubr.msk.f32.mxu0 %vm12551_vm0, %v14906_v0 }
  0xa9   : > { %11671 = vmatpush3.msra.mxu0 %v1585_v33 }
  0xaa   : > { %11668 = vmatmul.mubr.msk.f32.vlgmr.msra.gmra.mrb[14].mxu1 %vm144_vm1, %v12660_v16  ;;  %11680 = vmatprep.subr.mxu0 %v14906_v0 }
  0xab   : > { %11677 = vmatprep.mubr.msk.f32.mxu1 %vm12551_vm0, %v14906_v0  ;;  %11676 = vmatpush3.msra.mxu1 %v1661_v34 }
  0xac   : > { %11685 = vmatprep.subr.mxu1 %v14906_v0 }
 0x15d   : > { %v215_v38 = vpop.f32.mrb[0].mxu0 }
 0x15e   : > { %v1374_v40 = vmul.f32 0.35355338, %v215_v38  ;;  %v11594_v41 = vpop.f32.mrb[1].mxu0 }
 0x160   : > { %v12800_v42 = vsel %vm12794_vm2, %v1374_v40, -32767.0 }
 0x161   : > { %v292_v43 = vpop.f32.mrb[0].mxu1  ;;  %v369_v44 = vpop.f32.mrb[2].mxu0  ;;  %v1408_v45 = vsel %vm144_vm1, %v12800_v42, -inf }
 0x162   : > { %v1375_v46 = vmul.f32 0.35355338, %v292_v43  ;;  %v1376_v47 = vmul.f32 0.35355338, %v369_v44  ;;  %1409 = vmax.xlane.f32.xlu0 %v1408_v45  ;;  %v11599_v48 = vpop.f32.mrb[1].mxu1  ;;  %v11604_v49 = vpop.f32.mrb[3].mxu0 }
 0x164   : > { %v12806_v50 = vsel %vm12794_vm2, %v1376_v47, -32767.0  ;;  %v12810_v51 = vsel %vm12794_vm2, %v1375_v46, -32767.0 }
 0x165   : > { %v446_v52 = vpop.f32.mrb[2].mxu1  ;;  %v523_v53 = vpop.f32.mrb[4].mxu0  ;;  %v1414_v54 = vsel %vm144_vm1, %v12806_v50, -inf  ;;  %v1411_v55 = vsel %vm144_vm1, %v12810_v51, -inf }
 0x166   : > { %v1377_v56 = vmul.f32 0.35355338, %v446_v52  ;;  %v1378_v57 = vmul.f32 0.35355338, %v523_v53  ;;  %1415 = vmax.xlane.f32.xlu0 %v1414_v54  ;;  %1412 = vmax.xlane.f32.xlu1 %v1411_v55  ;;  %v11609_v58 = vpop.f32.mrb[3].mxu1  ;;  %v11614_v59 = vpop.f32.mrb[5].mxu0 }
 0x168   : > { %v12818_v60 = vsel %vm12794_vm2, %v1377_v56, -32767.0  ;;  %v12822_v61 = vsel %vm12794_vm2, %v1378_v57, -32767.0 }
 0x169   : > { %v600_v62 = vpop.f32.mrb[4].mxu1  ;;  %v677_v63 = vpop.f32.mrb[6].mxu0  ;;  %v1417_v17 = vsel %vm144_vm1, %v12818_v60, -inf  ;;  %v1420_v18 = vsel %vm144_vm1, %v12822_v61, -inf }
 0x16a   : > { %v1379_v19 = vmul.f32 0.35355338, %v600_v62  ;;  %v1380_v20 = vmul.f32 0.35355338, %v677_v63  ;;  %1418 = vmax.xlane.f32.xlu0 %v1417_v17  ;;  %v11619_v21 = vpop.f32.mrb[5].mxu1  ;;  %1421 = vmax.xlane.f32.xlu1 %v1420_v18  ;;  %v11624_v22 = vpop.f32.mrb[7].mxu0 }
 0x16c   : > { %v12830_v23 = vsel %vm12794_vm2, %v1379_v19, -32767.0  ;;  %v12834_v24 = vsel %vm12794_vm2, %v1380_v20, -32767.0 }
 0x16d   : > { %v754_v25 = vpop.f32.mrb[6].mxu1  ;;  %v831_v26 = vpop.f32.mrb[8].mxu0  ;;  %v1423_v27 = vsel %vm144_vm1, %v12830_v23, -inf  ;;  %v1426_v28 = vsel %vm144_vm1, %v12834_v24, -inf }
 0x16e   : > { %v1381_v29 = vmul.f32 0.35355338, %v754_v25  ;;  %v1382_v30 = vmul.f32 0.35355338, %v831_v26  ;;  %1424 = vmax.xlane.f32.xlu0 %v1423_v27  ;;  %v11629_v31 = vpop.f32.mrb[7].mxu1  ;;  %1427 = vmax.xlane.f32.xlu1 %v1426_v28  ;;  %v11634_v32 = vpop.f32.mrb[9].mxu0 }
 0x170   : > { %v12842_v33 = vsel %vm12794_vm2, %v1381_v29, -32767.0  ;;  %v12846_v34 = vsel %vm12794_vm2, %v1382_v30, -32767.0 }
 0x171   : > { %v908_v35 = vpop.f32.mrb[8].mxu1  ;;  %v985_v36 = vpop.f32.mrb[10].mxu0  ;;  %v1429_v37 = vsel %vm144_vm1, %v12842_v33, -inf  ;;  %v1432_v38 = vsel %vm144_vm1, %v12846_v34, -inf }
 0x172   : > { %v1383_v40 = vmul.f32 0.35355338, %v908_v35  ;;  %v1384_v41 = vmul.f32 0.35355338, %v985_v36  ;;  %1430 = vmax.xlane.f32.xlu0 %v1429_v37  ;;  %v11639_v43 = vpop.f32.mrb[9].mxu1  ;;  %1433 = vmax.xlane.f32.xlu1 %v1432_v38  ;;  %v11644_v44 = vpop.f32.mrb[11].mxu0 }
 0x173   : > { %v12906_v35 = vpop.permute.xlu1 %1736  ;;  %v12910_v37 = vpop.permute.xlu0 %1812 }
 0x174   : > { %v12854_v45 = vsel %vm12794_vm2, %v1383_v40, -32767.0  ;;  %v12858_v46 = vsel %vm12794_vm2, %v1384_v41, -32767.0 }
 0x175   : > { %v1062_v47 = vpop.f32.mrb[10].mxu1  ;;  %v1139_v48 = vpop.f32.mrb[12].mxu0  ;;  %v1435_v49 = vsel %vm144_vm1, %v12854_v45, -inf  ;;  %v1438_v52 = vsel %vm144_vm1, %v12858_v46, -inf }
 0x176   : > { %v1385_v53 = vmul.f32 0.35355338, %v1062_v47  ;;  %v1386_v54 = vmul.f32 0.35355338, %v1139_v48  ;;  %1436 = vmax.xlane.f32.xlu0 %v1435_v49  ;;  %v11649_v55 = vpop.f32.mrb[11].mxu1  ;;  %1439 = vmax.xlane.f32.xlu1 %v1438_v52  ;;  %v11654_v56 = vpop.f32.mrb[13].mxu0 }
 0x177   : > { %v12908_v36 = vpop.permute.xlu1 %1888  ;;  %v12914_v40 = vpop.permute.xlu0 %2040 }
 0x178   : > { %v12866_v57 = vsel %vm12794_vm2, %v1385_v53, -32767.0  ;;  %v12870_v58 = vsel %vm12794_vm2, %v1386_v54, -32767.0 }
 0x179   : > { %v1216_v59 = vpop.f32.mrb[12].mxu1  ;;  %v1293_v62 = vpop.f32.mrb[14].mxu0  ;;  %v1441_v63 = vsel %vm144_vm1, %v12866_v57, -inf  ;;  %v1444_v17 = vsel %vm144_vm1, %v12870_v58, -inf }
 0x17a   : > { %v1387_v18 = vmul.f32 0.35355338, %v1216_v59  ;;  %v1388_v19 = vmul.f32 0.35355338, %v1293_v62  ;;  %1442 = vmax.xlane.f32.xlu0 %v1441_v63  ;;  %v11659_v20 = vpop.f32.mrb[13].mxu1  ;;  %1445 = vmax.xlane.f32.xlu1 %v1444_v17  ;;  %v11664_v21 = vpop.f32.mrb[15].mxu0 }
 0x17b   : > { %v12912_v38 = vpop.permute.xlu1 %1964  ;;  %v12918_v43 = vpop.permute.xlu0 %2192 }
 0x17c   : > { %v12878_v22 = vsel %vm12794_vm2, %v1387_v18, -32767.0  ;;  %v12882_v25 = vsel %vm12794_vm2, %v1388_v19, -32767.0 }
 0x17d   : > { %v1370_v26 = vpop.f32.mrb[14].mxu1  ;;  %v1447_v27 = vsel %vm144_vm1, %v12878_v22, -inf  ;;  %v1450_v28 = vsel %vm144_vm1, %v12882_v25, -inf }
 0x17e   : > { %v1389_v29 = vmul.f32 0.35355338, %v1370_v26  ;;  %1448 = vmax.xlane.f32.xlu0 %v1447_v27  ;;  %1451 = vmax.xlane.f32.xlu1 %v1450_v28  ;;  %v11669_v30 = vpop.f32.mrb[15].mxu1 }
 0x17f   : > { %v12916_v41 = vpop.permute.xlu1 %2116  ;;  %v12922_v47 = vpop.permute.xlu0 %2344 }
 0x180   : > { %v12890_v31 = vsel %vm12794_vm2, %v1389_v29, -32767.0 }
 0x181   : > { %v1453_v32 = vsel %vm144_vm1, %v12890_v31, -inf }
 0x182   : > { %1454 = vmax.xlane.f32.xlu0 %v1453_v32 }
 0x183   : > { %v12920_v44 = vpop.permute.xlu1 %2268  ;;  %v12926_v49 = vpop.permute.xlu0 %2496 }
 0x187   : > { %v12924_v48 = vpop.permute.xlu1 %2420  ;;  %v12930_v53 = vpop.permute.xlu0 %2648 }
 0x18b   : > { %v12928_v52 = vpop.permute.xlu1 %2572  ;;  %v12934_v55 = vpop.permute.xlu0 %2802 }
 0x18f   : > { %3192 = vrot.lane.b32.xlu1 %v12620_v6, %s12554_s15  ;;  %v12932_v54 = vpop.permute.xlu1 %2724  ;;  %v12938_v59 = vpop.permute.xlu0 %2800 }
 0x193   : > { %3190 = vrot.lane.b32.xlu1 %v12620_v6, %s12555_s16  ;;  %v12936_v56 = vpop.permute.xlu1 %2880  ;;  %v12942_v63 = vpop.permute.xlu0 %2958 }
 0x197   : > { %3348 = vrot.lane.b32.xlu1 %v12628_v8, %s12554_s15  ;;  %v12940_v62 = vpop.permute.xlu1 %2878  ;;  %v12946_v18 = vpop.permute.xlu0 %2956 }
 0x198   : > { %3114 = vrot.lane.b32.xlu0 %v12617_v5, %s12554_s15  ;;  %14915 = vst [vmem:[#allocation3_spill] sm:$0xff] %v12940_v62  ;;  %14917 = vst [vmem:[#allocation5_spill] sm:$0xff] %v12946_v18 }
 0x19b   : > { %v12944_v17 = vpop.permute.xlu1 %3036 }
 0x19c   : > { %3112 = vrot.lane.b32.xlu0 %v12617_v5, %s12555_s16  ;;  %14916 = vst [vmem:[#allocation4_spill] sm:$0xff] %v12944_v17 }
 0x19f   : > { %v12948_v19 = vpop.permute.xlu1 %3034 }
 0x1a0   : > { %3270 = vrot.lane.b32.xlu0 %v12625_v7, %s12554_s15  ;;  %14918 = vst [vmem:[#allocation6_spill] sm:$0xff] %v12948_v19 }
 0x1ef   : > { %v1410_v20 = vpop.xlane.xlu0 %1409 }
 0x1f0   : > { %v1456_v21 = vsub.f32 %v12800_v42, %v1410_v20 }
 0x1f2   : > { %v1472_v26 = vmul.f32 1.442695, %v1456_v21 }
 0x1f3   : > { %v1413_v27 = vpop.xlane.xlu1 %1412  ;;  %v1416_v28 = vpop.xlane.xlu0 %1415 }
 0x1f4   : > { %12254 = vpow2.f32 %v1472_v26  ;;  %v1457_v29 = vsub.f32 %v12810_v51, %v1413_v27  ;;  %v1458_v30 = vsub.f32 %v12806_v50, %v1416_v28 }
 0x1f6   : > { %v1474_v32 = vmul.f32 1.442695, %v1457_v29  ;;  %v1476_v0 = vmul.f32 1.442695, %v1458_v30 }
 0x1f7   : > { %v1422_v39 = vpop.xlane.xlu1 %1421  ;;  %v1419_v62 = vpop.xlane.xlu0 %1418 }
 0x1f8   : > { %12256 = vpow2.f32 %v1474_v32  ;;  %v1460_v17 = vsub.f32 %v12822_v61, %v1422_v39  ;;  %v1459_v19 = vsub.f32 %v12818_v60, %v1419_v62 }
 0x1f9   : > { %12258 = vpow2.f32 %v1476_v0 }
 0x1fa   : > { %v1480_v18 = vmul.f32 1.442695, %v1460_v17  ;;  %v1478_v42 = vmul.f32 1.442695, %v1459_v19 }
 0x1fb   : > { %v1428_v20 = vpop.xlane.xlu1 %1427  ;;  %v1425_v21 = vpop.xlane.xlu0 %1424 }
 0x1fc   : > { %12260 = vpow2.f32 %v1480_v18  ;;  %v1462_v26 = vsub.f32 %v12834_v24, %v1428_v20  ;;  %v1461_v51 = vsub.f32 %v12830_v23, %v1425_v21 }
 0x1fd   : > { %12262 = vpow2.f32 %v1478_v42 }
 0x1fe   : > { %v12957_v50 = vpop.eup %12254  ;;  %v1484_v27 = vmul.f32 1.442695, %v1462_v26  ;;  %v1482_v28 = vmul.f32 1.442695, %v1461_v51 }
 0x1ff   : > { %v1434_v29 = vpop.xlane.xlu1 %1433  ;;  %v1431_v30 = vpop.xlane.xlu0 %1430  ;;  %v1504_v39 = vsel %vm144_vm1, %v12957_v50, 0.0 }
 0x200   : > { %12264 = vpow2.f32 %v1484_v27  ;;  %v1464_v0 = vsub.f32 %v12846_v34, %v1434_v29  ;;  %v1463_v60 = vsub.f32 %v12842_v33, %v1431_v30  ;;  %1505 = vadd.xlane.f32.xlu1 %v1504_v39 }
 0x201   : > { %12266 = vpow2.f32 %v1482_v28 }
 0x202   : > { %v12963_v61 = vpop.eup %12256  ;;  %v1488_v23 = vmul.f32 1.442695, %v1464_v0  ;;  %v1486_v24 = vmul.f32 1.442695, %v1463_v60 }
 0x203   : > { %v12965_v62 = vpop.eup %12258  ;;  %v1440_v17 = vpop.xlane.xlu1 %1439  ;;  %v1507_v19 = vsel %vm144_vm1, %v12963_v61, 0.0 }
 0x204   : > { %v1437_v18 = vpop.xlane.xlu0 %1436  ;;  %12268 = vpow2.f32 %v1488_v23  ;;  %v1466_v32 = vsub.f32 %v12858_v46, %v1440_v17  ;;  %1508 = vadd.xlane.f32.xlu0 %v1507_v19  ;;  %v1510_v33 = vsel %vm144_vm1, %v12965_v62, 0.0 }
 0x205   : > { %v1465_v34 = vsub.f32 %v12854_v45, %v1437_v18  ;;  %12270 = vpow2.f32 %v1486_v24  ;;  %1511 = vadd.xlane.f32.xlu1 %v1510_v33 }
 0x206   : > { %v12973_v42 = vpop.eup %12260  ;;  %v1492_v20 = vmul.f32 1.442695, %v1466_v32 }
 0x207   : > { %v1490_v21 = vmul.f32 1.442695, %v1465_v34  ;;  %v12975_v26 = vpop.eup %12262  ;;  %v1446_v51 = vpop.xlane.xlu1 %1445  ;;  %v1516_v28 = vsel %vm144_vm1, %v12973_v42, 0.0 }
 0x208   : > { %v1443_v27 = vpop.xlane.xlu0 %1442  ;;  %12272 = vpow2.f32 %v1492_v20  ;;  %v1468_v45 = vsub.f32 %v12870_v58, %v1446_v51  ;;  %v1513_v29 = vsel %vm144_vm1, %v12975_v26, 0.0 }
 0x209   : > { %v1467_v46 = vsub.f32 %v12866_v57, %v1443_v27  ;;  %12274 = vpow2.f32 %v1490_v21  ;;  %1517 = vadd.xlane.f32.xlu1 %v1516_v28  ;;  %1514 = vadd.xlane.f32.xlu0 %v1513_v29 }
 0x20a   : > { %v12983_v30 = vpop.eup %12264  ;;  %v1496_v39 = vmul.f32 1.442695, %v1468_v45 }
 0x20b   : > { %v1494_v0 = vmul.f32 1.442695, %v1467_v46  ;;  %v12985_v60 = vpop.eup %12266  ;;  %v1452_v23 = vpop.xlane.xlu1 %1451  ;;  %v1522_v17 = vsel %vm144_vm1, %v12983_v30, 0.0 }
 0x20c   : > { %v1449_v24 = vpop.xlane.xlu0 %1448  ;;  %12276 = vpow2.f32 %v1496_v39  ;;  %v1470_v57 = vsub.f32 %v12882_v25, %v1452_v23  ;;  %v1519_v18 = vsel %vm144_vm1, %v12985_v60, 0.0 }
 0x20d   : > { %v1469_v58 = vsub.f32 %v12878_v22, %v1449_v24  ;;  %12278 = vpow2.f32 %v1494_v0  ;;  %1523 = vadd.xlane.f32.xlu1 %v1522_v17  ;;  %1520 = vadd.xlane.f32.xlu0 %v1519_v18 }
 0x20e   : > { %v12993_v19 = vpop.eup %12268  ;;  %v1500_v32 = vmul.f32 1.442695, %v1470_v57 }
 0x20f   : > { %v1498_v34 = vmul.f32 1.442695, %v1469_v58  ;;  %v12995_v33 = vpop.eup %12270  ;;  %v1528_v21 = vsel %vm144_vm1, %v12993_v19, 0.0 }
 0x210   : > { %v1455_v20 = vpop.xlane.xlu0 %1454  ;;  %12280 = vpow2.f32 %v1500_v32  ;;  %v1525_v22 = vsel %vm144_vm1, %v12995_v33, 0.0  ;;  %v13080_v32 = vpop.permute.xlu1 %3192 }
 0x211   : > { %v1471_v25 = vsub.f32 %v12890_v31, %v1455_v20  ;;  %12282 = vpow2.f32 %v1498_v34  ;;  %1529 = vadd.xlane.f32.xlu1 %v1528_v21  ;;  %1526 = vadd.xlane.f32.xlu0 %v1525_v22 }
 0x212   : > { %v13002_v51 = vpop.eup %12272 }
 0x213   : > { %v1502_v27 = vmul.f32 1.442695, %v1471_v25  ;;  %v13004_v28 = vpop.eup %12274  ;;  %v1534_v45 = vsel %vm144_vm1, %v13002_v51, 0.0 }
 0x214   : > { %v1531_v46 = vsel %vm144_vm1, %v13004_v28, 0.0 }
 0x215   : > { %12284 = vpow2.f32 %v1502_v27  ;;  %1535 = vadd.xlane.f32.xlu1 %v1534_v45  ;;  %1532 = vadd.xlane.f32.xlu0 %v1531_v46 }
 0x216   : > { %v13010_v31 = vpop.eup %12276 }
 0x217   : > { %v13012_v29 = vpop.eup %12278  ;;  %v1540_v39 = vsel %vm144_vm1, %v13010_v31, 0.0 }
 0x218   : > { %v1537_v0 = vsel %vm144_vm1, %v13012_v29, 0.0 }
 0x219   : > { %1541 = vadd.xlane.f32.xlu1 %v1540_v39  ;;  %1538 = vadd.xlane.f32.xlu0 %v1537_v0 }
 0x21a   : > { %v13018_v23 = vpop.eup %12280 }
 0x21b   : > { %v13020_v24 = vpop.eup %12282  ;;  %v1546_v17 = vsel %vm144_vm1, %v13018_v23, 0.0 }
 0x21c   : > { %v1543_v57 = vsel %vm144_vm1, %v13020_v24, 0.0 }
 0x21d   : > { %1547 = vadd.xlane.f32.xlu1 %v1546_v17  ;;  %1544 = vadd.xlane.f32.xlu0 %v1543_v57 }
 0x21f   : > { %v13026_v58 = vpop.eup %12284 }
 0x220   : > { %v1549_v18 = vsel %vm144_vm1, %v13026_v58, 0.0 }
 0x221   : > { %1550 = vadd.xlane.f32.xlu0 %v1549_v18 }
 0x22e   : > { %3346 = vrot.lane.b32.xlu1 %v12628_v8, %s12555_s16 }
 0x232   : > { %3504 = vrot.lane.b32.xlu1 %v12636_v10, %s12554_s15 }
 0x236   : > { %3502 = vrot.lane.b32.xlu1 %v12636_v10, %s12555_s16 }
 0x237   : > { %3268 = vrot.lane.b32.xlu0 %v12625_v7, %s12555_s16 }
 0x23a   : > { %3660 = vrot.lane.b32.xlu1 %v12644_v12, %s12554_s15 }
 0x23b   : > { %3426 = vrot.lane.b32.xlu0 %v12633_v9, %s12554_s15 }
 0x23e   : > { %3658 = vrot.lane.b32.xlu1 %v12644_v12, %s12555_s16 }
 0x23f   : > { %3424 = vrot.lane.b32.xlu0 %v12633_v9, %s12555_s16 }
 0x242   : > { %3816 = vrot.lane.b32.xlu1 %v12652_v14, %s12554_s15 }
 0x243   : > { %3582 = vrot.lane.b32.xlu0 %v12641_v11, %s12554_s15 }
 0x246   : > { %3814 = vrot.lane.b32.xlu1 %v12652_v14, %s12555_s16 }
 0x247   : > { %3580 = vrot.lane.b32.xlu0 %v12641_v11, %s12555_s16 }
 0x24a   : > { %3972 = vrot.lane.b32.xlu1 %v12660_v16, %s12554_s15 }
 0x24b   : > { %3738 = vrot.lane.b32.xlu0 %v12649_v13, %s12554_s15 }
 0x24e   : > { %3970 = vrot.lane.b32.xlu1 %v12660_v16, %s12555_s16 }
 0x24f   : > { %3736 = vrot.lane.b32.xlu0 %v12649_v13, %s12555_s16 }
 0x252   : > { %4256 = vrot.lane.b32.xlu1 %v12601_v1, %s12556_s17 }
 0x253   : > { %3894 = vrot.lane.b32.xlu0 %v12657_v15, %s12554_s15 }
 0x256   : > { %4408 = vrot.lane.b32.xlu1 %v12604_v2, %s12556_s17 }
 0x257   : > { %3892 = vrot.lane.b32.xlu0 %v12657_v15, %s12555_s16 }
 0x25a   : > { %4560 = vrot.lane.b32.xlu1 %v12617_v5, %s12556_s17  ;;  %v13085_v5 = vpop.permute.xlu0 %3114 }
 0x25b   : > { %4332 = vrot.lane.b32.xlu0 %v12609_v3, %s12556_s17 }
 0x25e   : > { %4636 = vrot.lane.b32.xlu1 %v12620_v6, %s12556_s17  ;;  %v13090_v6 = vpop.permute.xlu1 %3190 }
 0x25f   : > { %4484 = vrot.lane.b32.xlu0 %v12612_v4, %s12556_s17 }
 0x262   : > { %4788 = vrot.lane.b32.xlu1 %v12628_v8, %s12556_s17  ;;  %v13098_v8 = vpop.permute.xlu1 %3348 }
 0x263   : > { %4712 = vrot.lane.b32.xlu0 %v12625_v7, %s12556_s17  ;;  %v13096_v7 = vpop.permute.xlu0 %3112 }
 0x266   : > { %4940 = vrot.lane.b32.xlu1 %v12636_v10, %s12556_s17 }
 0x267   : > { %4864 = vrot.lane.b32.xlu0 %v12633_v9, %s12556_s17  ;;  %v13104_v9 = vpop.permute.xlu0 %3270 }
 0x26a   : > { %5092 = vrot.lane.b32.xlu1 %v12644_v12, %s12556_s17 }
 0x26b   : > { %5016 = vrot.lane.b32.xlu0 %v12641_v11, %s12556_s17 }
 0x26e   : > { %5244 = vrot.lane.b32.xlu1 %v12652_v14, %s12556_s17 }
 0x26f   : > { %5168 = vrot.lane.b32.xlu0 %v12649_v13, %s12556_s17 }
 0x272   : > { %5396 = vrot.lane.b32.xlu1 %v12660_v16, %s12556_s17 }
 0x273   : > { %5320 = vrot.lane.b32.xlu0 %v12657_v15, %s12556_s17 }
 0x276   : > { %5552 = vrot.lane.b32.xlu1 %v12609_v3, %s12557_s18 }
 0x277   : > { %5474 = vrot.lane.b32.xlu0 %v12601_v1, %s12557_s18 }
 0x27a   : > { %5550 = vrot.lane.b32.xlu1 %v12609_v3, %s12558_s19 }
 0x27b   : > { %5472 = vrot.lane.b32.xlu0 %v12601_v1, %s12558_s19 }
 0x27e   : > { %5708 = vrot.lane.b32.xlu1 %v12612_v4, %s12557_s18 }
 0x27f   : > { %5630 = vrot.lane.b32.xlu0 %v12604_v2, %s12557_s18 }
 0x282   : > { %5706 = vrot.lane.b32.xlu1 %v12612_v4, %s12558_s19  ;;  %v14919_v4 = vmov 0.0  }
 0x283   : > { %5628 = vrot.lane.b32.xlu0 %v12604_v2, %s12558_s19 }
 0x28d   : > { %v1506_v1 = vpop.xlane.xlu1 %1505 }
 0x28e   : > { %12286 = vrcp.f32 %v1506_v1 }
 0x291   : > { %v1509_v10 = vpop.xlane.xlu0 %1508 }
 0x292   : > { %v1512_v11 = vpop.xlane.xlu1 %1511  ;;  %12288 = vrcp.f32 %v1509_v10 }
 0x293   : > { %12290 = vrcp.f32 %v1512_v11 }
 0x296   : > { %v1518_v12 = vpop.xlane.xlu1 %1517  ;;  %v1515_v13 = vpop.xlane.xlu0 %1514 }
 0x297   : > { %12292 = vrcp.f32 %v1518_v12 }
 0x298   : > { %v12287_v3 = vpop.eup %12286  ;;  %12294 = vrcp.f32 %v1515_v13  ;;  %v14921_v13 = vld [vmem:[#allocation3_spill] sm:$0xff] }
 0x299   : > { %v1553_v2 = vmul.f32 %v12287_v3, %v12957_v50  ;;  %v14923_v3 = vld [vmem:[#allocation6_spill] sm:$0xff] }
 0x29a   : > { %v1524_v14 = vpop.xlane.xlu1 %1523  ;;  %v1521_v15 = vpop.xlane.xlu0 %1520 }
 0x29b   : > { %12296 = vrcp.f32 %v1524_v14  ;;  %11673 = vmatmul.mubr.msk.f32.vlgmr.msra.gmra.mrb[16].mxu0 %vm144_vm1, %v1553_v2 }
 0x29c   : > { %v12289_v16 = vpop.eup %12288  ;;  %12298 = vrcp.f32 %v1521_v15  ;;  %11681 = vmatpush3.msra.mxu0 %v12906_v35  ;;  %11682 = vmatprep.mubr.msk.f32.mxu0 %vm12551_vm0, %v14919_v4 }
 0x29d   : > { %v12291_v34 = vpop.eup %12290  ;;  %11690 = vmatprep.subr.mxu0 %v14919_v4  ;;  %v1555_v20 = vmul.f32 %v12289_v16, %v12963_v61 }
 0x29e   : > { %v1530_v21 = vpop.xlane.xlu1 %1529  ;;  %v1527_v25 = vpop.xlane.xlu0 %1526  ;;  %v1557_v50 = vmul.f32 %v12291_v34, %v12965_v62 }
 0x29f   : > { %12300 = vrcp.f32 %v1530_v21  ;;  %11678 = vmatmul.mubr.msk.f32.vlgmr.msra.gmra.mrb[16].mxu1 %vm144_vm1, %v1555_v20 }
 0x2a0   : > { %12302 = vrcp.f32 %v1527_v25  ;;  %11683 = vmatmul.mubr.msk.f32.vlgmr.msra.gmra.mrb[18].mxu0 %vm144_vm1, %v1557_v50  ;;  %11686 = vmatpush3.msra.mxu1 %v12910_v37 }
 0x2a1   : > { %v12293_v35 = vpop.eup %12292  ;;  %11691 = vmatpush3.msra.mxu0 %v12908_v36  ;;  %11687 = vmatprep.mubr.msk.f32.mxu1 %vm12551_vm0, %v14919_v4 }
 0x2a2   : > { %v12295_v22 = vpop.eup %12294  ;;  %v1536_v61 = vpop.xlane.xlu1 %1535  ;;  %11692 = vmatprep.mubr.msk.f32.mxu0 %vm12551_vm0, %v14919_v4  ;;  %11695 = vmatprep.subr.mxu1 %v14919_v4  ;;  %v1561_v62 = vmul.f32 %v12293_v35, %v12973_v42 }
 0x2a3   : > { %v1533_v27 = vpop.xlane.xlu0 %1532  ;;  %12304 = vrcp.f32 %v1536_v61  ;;  %11700 = vmatprep.subr.mxu0 %v14919_v4  ;;  %v1559_v37 = vmul.f32 %v12295_v22, %v12975_v26 }
 0x2a4   : > { %12306 = vrcp.f32 %v1533_v27  ;;  %11693 = vmatmul.mubr.msk.f32.vlgmr.msra.gmra.mrb[20].mxu0 %vm144_vm1, %v1561_v62 }
 0x2a5   : > { %v12297_v36 = vpop.eup %12296  ;;  %11688 = vmatmul.mubr.msk.f32.vlgmr.msra.gmra.mrb[18].mxu1 %vm144_vm1, %v1559_v37  ;;  %11701 = vmatpush3.msra.mxu0 %v12914_v40 }
 0x2a6   : > { %v12299_v45 = vpop.eup %12298  ;;  %11696 = vmatpush3.msra.mxu1 %v12912_v38  ;;  %v1542_v46 = vpop.xlane.xlu1 %1541  ;;  %11697 = vmatprep.mubr.msk.f32.mxu1 %vm12551_vm0, %v14919_v4  ;;  %v1565_v42 = vmul.f32 %v12297_v36, %v12983_v30 }
 0x2a7   : > { %v1539_v39 = vpop.xlane.xlu0 %1538  ;;  %12308 = vrcp.f32 %v1542_v46  ;;  %11702 = vmatprep.mubr.msk.f32.mxu0 %vm12551_vm0, %v14919_v4  ;;  %11705 = vmatprep.subr.mxu1 %v14919_v4  ;;  %v1563_v26 = vmul.f32 %v12299_v45, %v12985_v60 }
 0x2a8   : > { %12310 = vrcp.f32 %v1539_v39  ;;  %11710 = vmatprep.subr.mxu0 %v14919_v4  ;;  %11703 = vmatmul.mubr.msk.f32.vlgmr.msra.gmra.mrb[22].mxu0 %vm144_vm1, %v1565_v42 }
 0x2a9   : > { %v12301_v38 = vpop.eup %12300  ;;  %11698 = vmatmul.mubr.msk.f32.vlgmr.msra.gmra.mrb[20].mxu1 %vm144_vm1, %v1563_v26  ;;  %11711 = vmatpush3.msra.mxu0 %v12918_v43 }
 0x2aa   : > { %v12303_v40 = vpop.eup %12302  ;;  %11706 = vmatpush3.msra.mxu1 %v12916_v41  ;;  %v1548_v30 = vpop.xlane.xlu1 %1547  ;;  %11707 = vmatprep.mubr.msk.f32.mxu1 %vm12551_vm0, %v14919_v4  ;;  %v1569_v60 = vmul.f32 %v12301_v38, %v12993_v19 }
 0x2ab   : > { %v1545_v0 = vpop.xlane.xlu0 %1544  ;;  %12312 = vrcp.f32 %v1548_v30  ;;  %11712 = vmatprep.mubr.msk.f32.mxu0 %vm12551_vm0, %v14919_v4  ;;  %11715 = vmatprep.subr.mxu1 %v14919_v4  ;;  %v1567_v17 = vmul.f32 %v12303_v40, %v12995_v33 }
 0x2ac   : > { %12314 = vrcp.f32 %v1545_v0  ;;  %11720 = vmatprep.subr.mxu0 %v14919_v4  ;;  %11713 = vmatmul.mubr.msk.f32.vlgmr.msra.gmra.mrb[24].mxu0 %vm144_vm1, %v1569_v60 }
 0x2ad   : > { %v12305_v41 = vpop.eup %12304  ;;  %11708 = vmatmul.mubr.msk.f32.vlgmr.msra.gmra.mrb[22].mxu1 %vm144_vm1, %v1567_v17  ;;  %11721 = vmatpush3.msra.mxu0 %v12922_v47 }
 0x2ae   : > { %v12307_v43 = vpop.eup %12306  ;;  %11716 = vmatpush3.msra.mxu1 %v12920_v44  ;;  %11717 = vmatprep.mubr.msk.f32.mxu1 %vm12551_vm0, %v14919_v4  ;;  %v1573_v57 = vmul.f32 %v12305_v41, %v13002_v51  ;;  %v13161_v33 = vpop.permute.xlu1 %3346 }
 0x2af   : > { %v1551_v19 = vpop.xlane.xlu0 %1550  ;;  %11722 = vmatprep.mubr.msk.f32.mxu0 %vm12551_vm0, %v14919_v4  ;;  %11725 = vmatprep.subr.mxu1 %v14919_v4  ;;  %v1571_v18 = vmul.f32 %v12307_v43, %v13004_v28 }
 0x2b0   : > { %12316 = vrcp.f32 %v1551_v19  ;;  %11730 = vmatprep.subr.mxu0 %v14919_v4  ;;  %11723 = vmatmul.mubr.msk.f32.vlgmr.msra.gmra.mrb[26].mxu0 %vm144_vm1, %v1573_v57 }
 0x2b1   : > { %v12309_v44 = vpop.eup %12308  ;;  %11718 = vmatmul.mubr.msk.f32.vlgmr.msra.gmra.mrb[24].mxu1 %vm144_vm1, %v1571_v18  ;;  %11731 = vmatpush3.msra.mxu0 %v12926_v49 }
 0x2b2   : > { %v12311_v47 = vpop.eup %12310  ;;  %11726 = vmatpush3.msra.mxu1 %v12924_v48  ;;  %11727 = vmatprep.mubr.msk.f32.mxu1 %vm12551_vm0, %v14919_v4  ;;  %v1577_v51 = vmul.f32 %v12309_v44, %v13010_v31  ;;  %v13179_v10 = vpop.permute.xlu1 %3504 }
 0x2b3   : > { %v3269_v1 = vpop.permute.xlu0 %3268  ;;  %11732 = vmatprep.mubr.msk.f32.mxu0 %vm12551_vm0, %v14919_v4  ;;  %11735 = vmatprep.subr.mxu1 %v14919_v4  ;;  %v1575_v28 = vmul.f32 %v12311_v47, %v13012_v29 }
 0x2b4   : > { %11740 = vmatprep.subr.mxu0 %v14919_v4  ;;  %11733 = vmatmul.mubr.msk.f32.vlgmr.msra.gmra.mrb[28].mxu0 %vm144_vm1, %v1577_v51 }
 0x2b5   : > { %v12313_v48 = vpop.eup %12312  ;;  %11728 = vmatmul.mubr.msk.f32.vlgmr.msra.gmra.mrb[26].mxu1 %vm144_vm1, %v1575_v28  ;;  %11741 = vmatpush3.msra.mxu0 %v12930_v53 }
 0x2b6   : > { %v12315_v49 = vpop.eup %12314  ;;  %11736 = vmatpush3.msra.mxu1 %v12928_v52  ;;  %11737 = vmatprep.mubr.msk.f32.mxu1 %vm12551_vm0, %v14919_v4  ;;  %v1581_v31 = vmul.f32 %v12313_v48, %v13018_v23  ;;  %v3503_v52 = vpop.permute.xlu1 %3502 }
 0x2b7   : > { %v3427_v29 = vpop.permute.xlu0 %3426  ;;  %11742 = vmatprep.mubr.msk.f32.mxu0 %vm12551_vm0, %v14919_v4  ;;  %11745 = vmatprep.subr.mxu1 %v14919_v4  ;;  %v1579_v11 = vmul.f32 %v12315_v49, %v13020_v24 }
 0x2b8   : > { %11743 = vmatmul.mubr.msk.f32.vlgmr.msra.gmra.mrb[30].mxu0 %vm144_vm1, %v1581_v31  ;;  %11750 = vmatprep.subr.mxu0 %v14919_v4 }
 0x2b9   : > { %11738 = vmatmul.mubr.msk.f32.vlgmr.msra.gmra.mrb[28].mxu1 %vm144_vm1, %v1579_v11  ;;  %11752 = vmatprep.mubr.msk.f32.mxu0 %vm12551_vm0, %v14919_v4 }
 0x2ba   : > { %v12317_v53 = vpop.eup %12316  ;;  %11746 = vmatpush3.msra.mxu1 %v12932_v54  ;;  %11747 = vmatprep.mubr.msk.f32.mxu1 %vm12551_vm0, %v14919_v4  ;;  %v3661_v54 = vpop.permute.xlu1 %3660 }
 0x2bb   : > { %v1583_v23 = vmul.f32 %v12317_v53, %v13026_v58  ;;  %v3425_v12 = vpop.permute.xlu0 %3424  ;;  %11755 = vmatprep.subr.mxu1 %v14919_v4  ;;  %v14920_v58 = vld [vmem:[#allocation5_spill] sm:$0xff] }
 0x2bc   : > { %11751 = vmatpush3.xpose.msk.msra.mxu0 %vm144_vm1, %v12934_v55 }
 0x2bd   : > { %11748 = vmatmul.mubr.msk.f32.vlgmr.msra.gmra.mrb[30].mxu1 %vm144_vm1, %v1583_v23  ;;  %11760 = vmatprep.subr.mxu0 %v14919_v4 }
 0x2be   : > { %11757 = vmatprep.mubr.msk.f32.mxu1 %vm12551_vm0, %v14919_v4 }
 0x2bf   : > { %v3583_v24 = vpop.permute.xlu0 %3582  ;;  %11753 = vmatmul.mubr.msk.f32.vlgmr.msra.gmra.mrb[32].mxu0 %vm144_vm1, %v12938_v59  ;;  %v14922_v59 = vld [vmem:[#allocation4_spill] sm:$0xff] }
 0x2c0   : > { %11761 = vmatpush3.xpose.msk.msra.mxu0 %vm144_vm1, %v12942_v63  ;;  %11762 = vmatprep.mubr.msk.f32.mxu0 %vm12551_vm0, %v14919_v4 }
 0x2c1   : > { %11756 = vmatpush3.xpose.msk.msra.mxu1 %vm144_vm1, %v12936_v56  ;;  %11770 = vmatprep.subr.mxu0 %v14919_v4  ;;  %v3659_v56 = vpop.permute.xlu1 %3658 }
 0x2c2   : > { %11765 = vmatprep.subr.mxu1 %v14919_v4 }
 0x2c3   : > { %v3581_v55 = vpop.permute.xlu0 %3580  ;;  %11763 = vmatmul.mubr.msk.f32.vlgmr.msra.gmra.mrb[34].mxu0 %vm144_vm1, %v14920_v58 }
 0x2c4   : > { %11758 = vmatmul.mubr.msk.f32.vlgmr.msra.gmra.mrb[32].mxu1 %vm144_vm1, %v14921_v13  ;;  %11771 = vmatpush3.xpose.msk.msra.mxu0 %vm144_vm1, %v13085_v5 }
 0x2c5   : > { %11766 = vmatpush3.xpose.msk.msra.mxu1 %vm144_vm1, %v14922_v59  ;;  %11772 = vmatprep.mubr.msk.f32.mxu0 %vm12551_vm0, %v14919_v4  ;;  %v3817_v5 = vpop.permute.xlu1 %3816 }
 0x2c6   : > { %11767 = vmatprep.mubr.msk.f32.mxu1 %vm12551_vm0, %v14919_v4  ;;  %11775 = vmatprep.subr.mxu1 %v14919_v4 }
 0x2c7   : > { %v3739_v63 = vpop.permute.xlu0 %3738  ;;  %11773 = vmatmul.mubr.msk.f32.vlgmr.msra.gmra.mrb[36].mxu0 %vm144_vm1, %v13096_v7  ;;  %11780 = vmatprep.subr.mxu0 %v14919_v4 }
 0x2c8   : > { %11768 = vmatmul.mubr.msk.f32.vlgmr.msra.gmra.mrb[34].mxu1 %vm144_vm1, %v14923_v3  ;;  %11781 = vmatpush3.xpose.msk.msra.mxu0 %vm144_vm1, %v13104_v9 }
 0x2c9   : > { %11776 = vmatpush3.xpose.msk.msra.mxu1 %vm144_vm1, %v13080_v32  ;;  %11777 = vmatprep.mubr.msk.f32.mxu1 %vm12551_vm0, %v14919_v4  ;;  %v3815_v32 = vpop.permute.xlu1 %3814 }
 0x2ca   : > { %11782 = vmatprep.mubr.msk.f32.mxu0 %vm12551_vm0, %v14919_v4  ;;  %11785 = vmatprep.subr.mxu1 %v14919_v4 }
 0x2cb   : > { %11783 = vmatmul.mubr.msk.f32.vlgmr.msra.gmra.mrb[38].mxu0 %vm144_vm1, %v3269_v1  ;;  %11790 = vmatprep.subr.mxu0 %v14919_v4  ;;  %v3737_v7 = vpop.permute.xlu0 %3736 }
 0x2cc   : > { %11778 = vmatmul.mubr.msk.f32.vlgmr.msra.gmra.mrb[36].mxu1 %vm144_vm1, %v13090_v6  ;;  %11791 = vmatpush3.xpose.msk.msra.mxu0 %vm144_vm1, %v3427_v29 }
 0x2cd   : > { %11786 = vmatpush3.xpose.msk.msra.mxu1 %vm144_vm1, %v13098_v8  ;;  %11787 = vmatprep.mubr.msk.f32.mxu1 %vm12551_vm0, %v14919_v4  ;;  %v3973_v8 = vpop.permute.xlu1 %3972 }
 0x2ce   : > { %11792 = vmatprep.mubr.msk.f32.mxu0 %vm12551_vm0, %v14919_v4  ;;  %11795 = vmatprep.subr.mxu1 %v14919_v4 }
 0x2cf   : > { %11793 = vmatmul.mubr.msk.f32.vlgmr.msra.gmra.mrb[40].mxu0 %vm144_vm1, %v3425_v12  ;;  %11800 = vmatprep.subr.mxu0 %v14919_v4  ;;  %v3895_v6 = vpop.permute.xlu0 %3894 }
 0x2d0   : > { %11788 = vmatmul.mubr.msk.f32.vlgmr.msra.gmra.mrb[38].mxu1 %vm144_vm1, %v13161_v33  ;;  %11801 = vmatpush3.xpose.msk.msra.mxu0 %vm144_vm1, %v3583_v24 }
 0x2d1   : > { %11796 = vmatpush3.xpose.msk.msra.mxu1 %vm144_vm1, %v13179_v10  ;;  %11797 = vmatprep.mubr.msk.f32.mxu1 %vm12551_vm0, %v14919_v4  ;;  %v3971_v2 = vpop.permute.xlu1 %3970 }
 0x2d2   : > { %11802 = vmatprep.mubr.msk.f32.mxu0 %vm12551_vm0, %v14919_v4  ;;  %11805 = vmatprep.subr.mxu1 %v14919_v4 }
 0x2d3   : > { %11803 = vmatmul.mubr.msk.f32.vlgmr.msra.gmra.mrb[42].mxu0 %vm144_vm1, %v3581_v55  ;;  %11810 = vmatprep.subr.mxu0 %v14919_v4  ;;  %v3893_v9 = vpop.permute.xlu0 %3892 }
 0x2d4   : > { %11798 = vmatmul.mubr.msk.f32.vlgmr.msra.gmra.mrb[40].mxu1 %vm144_vm1, %v3503_v52  ;;  %11811 = vmatpush3.xpose.msk.msra.mxu0 %vm144_vm1, %v3739_v63 }
 0x2d5   : > { %11806 = vmatpush3.xpose.msk.msra.mxu1 %vm144_vm1, %v3661_v54  ;;  %11807 = vmatprep.mubr.msk.f32.mxu1 %vm12551_vm0, %v14919_v4  ;;  %v4257_v14 = vpop.permute.xlu1 %4256 }
 0x2d6   : > { %11812 = vmatprep.mubr.msk.f32.mxu0 %vm12551_vm0, %v14919_v4  ;;  %11815 = vmatprep.subr.mxu1 %v14919_v4 }
 0x2d7   : > { %11813 = vmatmul.mubr.msk.f32.vlgmr.msra.gmra.mrb[44].mxu0 %vm144_vm1, %v3737_v7  ;;  %11820 = vmatprep.subr.mxu0 %v14919_v4  ;;  %v4333_v15 = vpop.permute.xlu0 %4332 }
 0x2d8   : > { %11808 = vmatmul.mubr.msk.f32.vlgmr.msra.gmra.mrb[42].mxu1 %vm144_vm1, %v3659_v56  ;;  %11821 = vmatpush3.xpose.msk.msra.mxu0 %vm144_vm1, %v3895_v6 }
 0x2d9   : > { %11816 = vmatpush3.xpose.msk.msra.mxu1 %vm144_vm1, %v3817_v5  ;;  %11817 = vmatprep.mubr.msk.f32.mxu1 %vm12551_vm0, %v14919_v4 }
 0x2da   : > { %11822 = vmatprep.mubr.msk.f32.mxu0 %vm12551_vm0, %v14919_v4  ;;  %11825 = vmatprep.subr.mxu1 %v14919_v4 }
 0x2db   : > { %11823 = vmatmul.mubr.msk.f32.vlgmr.msra.gmra.mrb[46].mxu0 %vm144_vm1, %v3893_v9  ;;  %11830 = vmatprep.subr.mxu0 %v14919_v4 }
 0x2dc   : > { %11818 = vmatmul.mubr.msk.f32.vlgmr.msra.gmra.mrb[44].mxu1 %vm144_vm1, %v3815_v32  ;;  %11832 = vmatprep.mubr.msk.f32.mxu0 %vm12551_vm0, %v14919_v4 }
 0x2dd   : > { %11826 = vmatpush3.xpose.msk.msra.mxu1 %vm144_vm1, %v3973_v8  ;;  %11827 = vmatprep.mubr.msk.f32.mxu1 %vm12551_vm0, %v14919_v4 }
 0x2de   : > { %11835 = vmatprep.subr.mxu1 %v14919_v4  ;;  %11831 = vmatpush3.msra.mxu0 %v4257_v14 }
 0x2df   : > { %11840 = vmatprep.subr.mxu0 %v14919_v4 }
 0x2e0   : > { %11828 = vmatmul.mubr.msk.f32.vlgmr.msra.gmra.mrb[46].mxu1 %vm144_vm1, %v3971_v2 }
 0x2e1   : > { %11837 = vmatprep.mubr.msk.f32.mxu1 %vm12551_vm0, %v14919_v4  ;;  %11836 = vmatpush3.msra.mxu1 %v4333_v15 }
 0x2e2   : > { %11845 = vmatprep.subr.mxu1 %v14919_v4 }
 0x36e   : > { %v13304_v16 = vpop.f32.mrb[16].mxu0 }
 0x36f   : > { %14924 = vst [vmem:[#allocation5_spill] sm:$0xff] %v13304_v16  ;;  %v11674_v34 = vpop.f32.mrb[17].mxu0 }
 0x372   : > { %v13306_v20 = vpop.f32.mrb[16].mxu1 }
 0x373   : > { %14925 = vst [vmem:[#allocation3_spill] sm:$0xff] %v13306_v20  ;;  %v13308_v21 = vpop.f32.mrb[18].mxu0  ;;  %v11679_v25 = vpop.f32.mrb[17].mxu1 }
 0x374   : > { %14926 = vst [vmem:[#allocation4_spill] sm:$0xff] %v13308_v21  ;;  %v11684_v50 = vpop.f32.mrb[19].mxu0 }
 0x377   : > { %v13310_v35 = vpop.f32.mrb[20].mxu0 }
 0x378   : > { %14927 = vst [vmem:[#allocation6_spill] sm:$0xff] %v13310_v35  ;;  %v13312_v22 = vpop.f32.mrb[18].mxu1  ;;  %v11694_v61 = vpop.f32.mrb[21].mxu0 }
 0x379   : > { %14928 = vst [vmem:[#allocation7_spill] sm:$0xff] %v13312_v22  ;;  %v11689_v27 = vpop.f32.mrb[19].mxu1 }
 0x37b   : > { %v13314_v62 = vpop.f32.mrb[22].mxu0 }
 0x37c   : > { %14929 = vst [vmem:[#allocation8_spill] sm:$0xff] %v13314_v62  ;;  %v13316_v37 = vpop.f32.mrb[20].mxu1  ;;  %v11704_v36 = vpop.f32.mrb[23].mxu0 }
 0x37d   : > { %14930 = vst [vmem:[#allocation9_spill] sm:$0xff] %v13316_v37  ;;  %v11699_v45 = vpop.f32.mrb[21].mxu1 }
 0x37f   : > { %v13318_v46 = vpop.f32.mrb[24].mxu0 }
 0x380   : > { %14931 = vst [vmem:[#allocation10_spill] sm:$0xff] %v13318_v46  ;;  %v13320_v39 = vpop.f32.mrb[22].mxu1  ;;  %v11714_v42 = vpop.f32.mrb[25].mxu0 }
 0x381   : > { %14932 = vst [vmem:[#allocation11_spill] sm:$0xff] %v13320_v39  ;;  %v11709_v26 = vpop.f32.mrb[23].mxu1 }
 0x383   : > { %v13322_v38 = vpop.f32.mrb[26].mxu0 }
 0x384   : > { %14933 = vst [vmem:[#allocation12_spill] sm:$0xff] %v13322_v38  ;;  %v13324_v40 = vpop.f32.mrb[24].mxu1  ;;  %v11724_v30 = vpop.f32.mrb[27].mxu0 }
 0x385   : > { %14934 = vst [vmem:[#allocation13_spill] sm:$0xff] %v13324_v40  ;;  %v11719_v0 = vpop.f32.mrb[25].mxu1 }
 0x387   : > { %v13326_v60 = vpop.f32.mrb[28].mxu0 }
 0x388   : > { %14935 = vst [vmem:[#allocation14_spill] sm:$0xff] %v13326_v60  ;;  %v13328_v17 = vpop.f32.mrb[26].mxu1  ;;  %v11734_v41 = vpop.f32.mrb[29].mxu0 }
 0x389   : > { %14936 = vst [vmem:[#allocation15_spill] sm:$0xff] %v13328_v17  ;;  %v11729_v43 = vpop.f32.mrb[27].mxu1 }
 0x38b   : > { %v13330_v19 = vpop.f32.mrb[30].mxu0 }
 0x38c   : > { %14937 = vst [vmem:[#allocation16_spill] sm:$0xff] %v13330_v19  ;;  %v13332_v57 = vpop.f32.mrb[28].mxu1  ;;  %v11744_v33 = vpop.f32.mrb[31].mxu0 }
 0x38d   : > { %14938 = vst [vmem:[#allocation17_spill] sm:$0xff] %v13332_v57  ;;  %v11739_v18 = vpop.f32.mrb[29].mxu1 }
 0x390   : > { %v13334_v44 = vpop.f32.mrb[30].mxu1 }
 0x391   : > { %14939 = vst [vmem:[#allocation18_spill] sm:$0xff] %v13334_v44  ;;  %v11749_v47 = vpop.f32.mrb[31].mxu1 }
 0x392   : > { %v2874_v51 = vpop.f32.mrb[32].mxu0 }
 0x393   : > { %v4048_v1 = vmul.f32 0.35355338, %v2874_v51  ;;  %v11754_v28 = vpop.f32.mrb[33].mxu0 }
 0x395   : > { %v13338_v48 = vsel %vm12794_vm2, %v4048_v1, -32767.0 }
 0x396   : > { %v3030_v49 = vpop.f32.mrb[34].mxu0  ;;  %v4080_v31 = vsel %vm144_vm1, %v13338_v48, -inf }
 0x397   : > { %v2952_v29 = vpop.f32.mrb[32].mxu1  ;;  %v4050_v11 = vmul.f32 0.35355338, %v3030_v49  ;;  %v11764_v53 = vpop.f32.mrb[35].mxu0  ;;  %4081 = vmax.xlane.f32.xlu0 %v4080_v31 }
 0x398   : > { %v4049_v52 = vmul.f32 0.35355338, %v2952_v29  ;;  %v11759_v23 = vpop.f32.mrb[33].mxu1 }
 0x399   : > { %v13344_v12 = vsel %vm12794_vm2, %v4050_v11, -32767.0 }
 0x39a   : > { %v13348_v24 = vsel %vm12794_vm2, %v4049_v52, -32767.0  ;;  %v3186_v54 = vpop.f32.mrb[36].mxu0  ;;  %v4086_v55 = vsel %vm144_vm1, %v13344_v12, -inf }
 0x39b   : > { %v3108_v58 = vpop.f32.mrb[34].mxu1  ;;  %v4052_v13 = vmul.f32 0.35355338, %v3186_v54  ;;  %4087 = vmax.xlane.f32.xlu0 %v4086_v55  ;;  %v11774_v59 = vpop.f32.mrb[37].mxu0  ;;  %v4083_v56 = vsel %vm144_vm1, %v13348_v24, -inf }
 0x39c   : > { %v4051_v63 = vmul.f32 0.35355338, %v3108_v58  ;;  %4084 = vmax.xlane.f32.xlu1 %v4083_v56  ;;  %v11769_v3 = vpop.f32.mrb[35].mxu1 }
 0x39d   : > { %v13356_v5 = vsel %vm12794_vm2, %v4052_v13, -32767.0 }
 0x39e   : > { %v13360_v7 = vsel %vm12794_vm2, %v4051_v63, -32767.0  ;;  %v3342_v32 = vpop.f32.mrb[38].mxu0  ;;  %v4092_v6 = vsel %vm144_vm1, %v13356_v5, -inf }
 0x39f   : > { %v3264_v8 = vpop.f32.mrb[36].mxu1  ;;  %v4054_v9 = vmul.f32 0.35355338, %v3342_v32  ;;  %v4089_v2 = vsel %vm144_vm1, %v13360_v7, -inf  ;;  %v11784_v14 = vpop.f32.mrb[39].mxu0 }
 0x3a0   : > { %v4053_v15 = vmul.f32 0.35355338, %v3264_v8  ;;  %4093 = vmax.xlane.f32.xlu1 %v4092_v6  ;;  %4090 = vmax.xlane.f32.xlu0 %v4089_v2  ;;  %v11779_v34 = vpop.f32.mrb[37].mxu1 }
 0x3a1   : > { %v13368_v25 = vsel %vm12794_vm2, %v4054_v9, -32767.0 }
 0x3a2   : > { %v13372_v50 = vsel %vm12794_vm2, %v4053_v15, -32767.0  ;;  %v3498_v61 = vpop.f32.mrb[40].mxu0  ;;  %v4098_v27 = vsel %vm144_vm1, %v13368_v25, -inf }
 0x3a3   : > { %v3420_v36 = vpop.f32.mrb[38].mxu1  ;;  %v4056_v45 = vmul.f32 0.35355338, %v3498_v61  ;;  %v4095_v42 = vsel %vm144_vm1, %v13372_v50, -inf  ;;  %v11794_v26 = vpop.f32.mrb[41].mxu0 }
 0x3a4   : > { %v4055_v30 = vmul.f32 0.35355338, %v3420_v36  ;;  %4096 = vmax.xlane.f32.xlu0 %v4095_v42  ;;  %v11789_v0 = vpop.f32.mrb[39].mxu1  ;;  %4099 = vmax.xlane.f32.xlu1 %v4098_v27 }
 0x3a5   : > { %v13380_v41 = vsel %vm12794_vm2, %v4056_v45, -32767.0 }
 0x3a6   : > { %v13384_v43 = vsel %vm12794_vm2, %v4055_v30, -32767.0  ;;  %v3654_v33 = vpop.f32.mrb[42].mxu0  ;;  %v4104_v18 = vsel %vm144_vm1, %v13380_v41, -inf }
 0x3a7   : > { %v3576_v47 = vpop.f32.mrb[40].mxu1  ;;  %v4058_v51 = vmul.f32 0.35355338, %v3654_v33  ;;  %v4101_v1 = vsel %vm144_vm1, %v13384_v43, -inf  ;;  %v11804_v28 = vpop.f32.mrb[43].mxu0  ;;  %v13433_v33 = vld [vmem:[%s12598_s12 + $0x28] sm:$0xff] }
 0x3a8   : > { %v4057_v49 = vmul.f32 0.35355338, %v3576_v47  ;;  %4102 = vmax.xlane.f32.xlu0 %v4101_v1  ;;  %v11799_v31 = vpop.f32.mrb[41].mxu1  ;;  %4105 = vmax.xlane.f32.xlu1 %v4104_v18  ;;  %v13440_v18 = vld [vmem:[%s12598_s12 + $0x38] sm:$0xff]  ;;  %v13445_v47 = vld [vmem:[%s12598_s12 + $0x20] sm:$0xff]  ;;  %v13456_v1 = vpop.permute.xlu1 %4408 }
 0x3a9   : > { %v13392_v29 = vsel %vm12794_vm2, %v4058_v51, -32767.0  ;;  %v13452_v51 = vld [vmem:[%s12598_s12 + $0x30] sm:$0xff] }
 0x3aa   : > { %v13396_v11 = vsel %vm12794_vm2, %v4057_v49, -32767.0  ;;  %v3810_v53 = vpop.f32.mrb[44].mxu0  ;;  %v4110_v52 = vsel %vm144_vm1, %v13392_v29, -inf  ;;  %v13460_v49 = vpop.permute.xlu0 %4484 }
 0x3ab   : > { %v3732_v23 = vpop.f32.mrb[42].mxu1  ;;  %v4060_v54 = vmul.f32 0.35355338, %v3810_v53  ;;  %v4107_v55 = vsel %vm144_vm1, %v13396_v11, -inf  ;;  %v11814_v58 = vpop.f32.mrb[45].mxu0 }
 0x3ac   : > { %v4059_v13 = vmul.f32 0.35355338, %v3732_v23  ;;  %4108 = vmax.xlane.f32.xlu0 %v4107_v55  ;;  %v11809_v59 = vpop.f32.mrb[43].mxu1  ;;  %4111 = vmax.xlane.f32.xlu1 %v4110_v52  ;;  %v13458_v28 = vpop.permute.xlu1 %4560 }
 0x3ad   : > { %v13404_v56 = vsel %vm12794_vm2, %v4060_v54, -32767.0 }
 0x3ae   : > { %v13408_v63 = vsel %vm12794_vm2, %v4059_v13, -32767.0  ;;  %v3966_v3 = vpop.f32.mrb[46].mxu0  ;;  %v4116_v32 = vsel %vm144_vm1, %v13404_v56, -inf  ;;  %v13464_v53 = vpop.permute.xlu0 %4712 }
 0x3af   : > { %v3888_v6 = vpop.f32.mrb[44].mxu1  ;;  %v4062_v8 = vmul.f32 0.35355338, %v3966_v3  ;;  %v4113_v9 = vsel %vm144_vm1, %v13408_v63, -inf  ;;  %v11824_v2 = vpop.f32.mrb[47].mxu0 }
 0x3b0   : > { %v4061_v14 = vmul.f32 0.35355338, %v3888_v6  ;;  %4114 = vmax.xlane.f32.xlu0 %v4113_v9  ;;  %v11819_v15 = vpop.f32.mrb[45].mxu1  ;;  %4117 = vmax.xlane.f32.xlu1 %v4116_v32  ;;  %v13462_v31 = vpop.permute.xlu1 %4636 }
 0x3b1   : > { %v13416_v34 = vsel %vm12794_vm2, %v4062_v8, -32767.0 }
 0x3b2   : > { %v13420_v61 = vsel %vm12794_vm2, %v4061_v14, -32767.0  ;;  %v4122_v27 = vsel %vm144_vm1, %v13416_v34, -inf  ;;  %v13468_v23 = vpop.permute.xlu0 %4864 }
 0x3b3   : > { %v4044_v36 = vpop.f32.mrb[46].mxu1  ;;  %v4119_v45 = vsel %vm144_vm1, %v13420_v61, -inf }
 0x3b4   : > { %v4063_v42 = vmul.f32 0.35355338, %v4044_v36  ;;  %4120 = vmax.xlane.f32.xlu0 %v4119_v45  ;;  %4123 = vmax.xlane.f32.xlu1 %v4122_v27  ;;  %v11829_v26 = vpop.f32.mrb[47].mxu1  ;;  %v13466_v52 = vpop.permute.xlu1 %4788 }
 0x3b6   : > { %v13428_v30 = vsel %vm12794_vm2, %v4063_v42, -32767.0  ;;  %v13472_v55 = vpop.permute.xlu0 %5016 }
 0x3b7   : > { %v4125_v0 = vsel %vm144_vm1, %v13428_v30, -inf }
 0x3b8   : > { %4126 = vmax.xlane.f32.xlu0 %v4125_v0  ;;  %v13470_v54 = vpop.permute.xlu1 %4940 }
 0x3ba   : > { %v13476_v13 = vpop.permute.xlu0 %5168 }
 0x3bc   : > { %v13474_v58 = vpop.permute.xlu1 %5092 }
 0x3be   : > { %v13480_v3 = vpop.permute.xlu0 %5320 }
 0x3c0   : > { %v13478_v59 = vpop.permute.xlu1 %5244 }
 0x3c2   : > { %v13484_v6 = vpop.permute.xlu0 %5474 }
 0x3c4   : > { %v13482_v32 = vpop.permute.xlu1 %5396 }
 0x3c5   : > { %5864 = vrot.lane.b32.xlu1 %v13433_v33, %s12557_s18 }
 0x3c6   : > { %v13488_v9 = vpop.permute.xlu0 %5472 }
 0x3c8   : > { %v13486_v8 = vpop.permute.xlu1 %5552 }
 0x3c9   : > { %5862 = vrot.lane.b32.xlu1 %v13433_v33, %s12558_s19 }
 0x3ca   : > { %v13492_v14 = vpop.permute.xlu0 %5630 }
 0x3cc   : > { %v13490_v2 = vpop.permute.xlu1 %5550 }
 0x3cd   : > { %6020 = vrot.lane.b32.xlu1 %v13440_v18, %s12557_s18 }
 0x3ce   : > { %5786 = vrot.lane.b32.xlu0 %v13445_v47, %s12557_s18  ;;  %v13496_v27 = vpop.permute.xlu0 %5628 }
 0x3d0   : > { %v13494_v15 = vpop.permute.xlu1 %5708 }
 0x3d2   : > { %5784 = vrot.lane.b32.xlu0 %v13445_v47, %s12558_s19 }
 0x3d4   : > { %v13498_v45 = vpop.permute.xlu1 %5706 }
 0x3d6   : > { %5942 = vrot.lane.b32.xlu0 %v13452_v51, %s12557_s18 }
 0x424   : > { %v4082_v36 = vpop.xlane.xlu0 %4081 }
 0x425   : > { %v4128_v42 = vsub.f32 %v13338_v48, %v4082_v36 }
 0x427   : > { %v4144_v26 = vmul.f32 1.442695, %v4128_v42 }
 0x428   : > { %v4088_v0 = vpop.xlane.xlu0 %4087 }
 0x429   : > { %12318 = vpow2.f32 %v4144_v26  ;;  %v4085_v44 = vpop.xlane.xlu1 %4084  ;;  %v4130_v57 = vsub.f32 %v13344_v12, %v4088_v0 }
 0x42a   : > { %v4129_v19 = vsub.f32 %v13348_v24, %v4085_v44 }
 0x42b   : > { %v4148_v17 = vmul.f32 1.442695, %v4130_v57 }
 0x42c   : > { %v4146_v60 = vmul.f32 1.442695, %v4129_v19 }
 0x42d   : > { %12320 = vpow2.f32 %v4148_v17  ;;  %v4094_v40 = vpop.xlane.xlu1 %4093  ;;  %v4091_v38 = vpop.xlane.xlu0 %4090 }
 0x42e   : > { %12322 = vpow2.f32 %v4146_v60  ;;  %v4132_v39 = vsub.f32 %v13356_v5, %v4094_v40  ;;  %v4131_v46 = vsub.f32 %v13360_v7, %v4091_v38 }
 0x430   : > { %v4152_v37 = vmul.f32 1.442695, %v4132_v39  ;;  %v4150_v48 = vmul.f32 1.442695, %v4131_v46 }
 0x431   : > { %v4100_v36 = vpop.xlane.xlu1 %4099  ;;  %v4097_v42 = vpop.xlane.xlu0 %4096 }
 0x432   : > { %12324 = vpow2.f32 %v4152_v37  ;;  %v4134_v26 = vsub.f32 %v13368_v25, %v4100_v36  ;;  %v4133_v12 = vsub.f32 %v13372_v50, %v4097_v42 }
 0x433   : > { %v13507_v44 = vpop.eup %12318  ;;  %12326 = vpow2.f32 %v4150_v48 }
 0x434   : > { %v4156_v17 = vmul.f32 1.442695, %v4134_v26  ;;  %v4154_v19 = vmul.f32 1.442695, %v4133_v12  ;;  %v4176_v60 = vsel %vm144_vm1, %v13507_v44, 0.0 }
 0x435   : > { %v4106_v40 = vpop.xlane.xlu1 %4105  ;;  %v4103_v57 = vpop.xlane.xlu0 %4102  ;;  %4177 = vadd.xlane.f32.xlu1 %v4176_v60 }
 0x436   : > { %12328 = vpow2.f32 %v4156_v17  ;;  %v4136_v46 = vsub.f32 %v13380_v41, %v4106_v40  ;;  %v4135_v37 = vsub.f32 %v13384_v43, %v4103_v57 }
 0x437   : > { %v13513_v39 = vpop.eup %12320  ;;  %12330 = vpow2.f32 %v4154_v19 }
 0x438   : > { %v13515_v38 = vpop.eup %12322  ;;  %v4160_v24 = vmul.f32 1.442695, %v4136_v46  ;;  %v4158_v5 = vmul.f32 1.442695, %v4135_v37  ;;  %v4182_v7 = vsel %vm144_vm1, %v13513_v39, 0.0 }
 0x439   : > { %v4112_v25 = vpop.xlane.xlu1 %4111  ;;  %v4109_v50 = vpop.xlane.xlu0 %4108  ;;  %v4179_v0 = vsel %vm144_vm1, %v13515_v38, 0.0  ;;  %4183 = vadd.xlane.f32.xlu1 %v4182_v7 }
 0x43a   : > { %12332 = vpow2.f32 %v4160_v24  ;;  %v4138_v41 = vsub.f32 %v13392_v29, %v4112_v25  ;;  %v4137_v43 = vsub.f32 %v13396_v11, %v4109_v50  ;;  %4180 = vadd.xlane.f32.xlu0 %v4179_v0 }
 0x43b   : > { %12334 = vpow2.f32 %v4158_v5 }
 0x43c   : > { %v13523_v48 = vpop.eup %12324  ;;  %v4164_v36 = vmul.f32 1.442695, %v4138_v41  ;;  %v4162_v42 = vmul.f32 1.442695, %v4137_v43 }
 0x43d   : > { %v13525_v26 = vpop.eup %12326  ;;  %v4118_v12 = vpop.xlane.xlu1 %4117  ;;  %v4188_v19 = vsel %vm144_vm1, %v13523_v48, 0.0 }
 0x43e   : > { %v4115_v17 = vpop.xlane.xlu0 %4114  ;;  %12336 = vpow2.f32 %v4164_v36  ;;  %v4140_v60 = vsub.f32 %v13404_v56, %v4118_v12  ;;  %4189 = vadd.xlane.f32.xlu1 %v4188_v19  ;;  %v4185_v11 = vsel %vm144_vm1, %v13525_v26, 0.0 }
 0x43f   : > { %v4139_v29 = vsub.f32 %v13408_v63, %v4115_v17  ;;  %12338 = vpow2.f32 %v4162_v42  ;;  %4186 = vadd.xlane.f32.xlu0 %v4185_v11 }
 0x440   : > { %v13533_v40 = vpop.eup %12328  ;;  %v4168_v57 = vmul.f32 1.442695, %v4140_v60 }
 0x441   : > { %v4166_v46 = vmul.f32 1.442695, %v4139_v29  ;;  %v13535_v37 = vpop.eup %12330  ;;  %v4124_v24 = vpop.xlane.xlu1 %4123  ;;  %v4194_v7 = vsel %vm144_vm1, %v13533_v40, 0.0 }
 0x442   : > { %v4121_v5 = vpop.xlane.xlu0 %4120  ;;  %12340 = vpow2.f32 %v4168_v57  ;;  %v4142_v56 = vsub.f32 %v13416_v34, %v4124_v24  ;;  %4195 = vadd.xlane.f32.xlu1 %v4194_v7  ;;  %v4191_v25 = vsel %vm144_vm1, %v13535_v37, 0.0 }
 0x443   : > { %v4141_v63 = vsub.f32 %v13420_v61, %v4121_v5  ;;  %12342 = vpow2.f32 %v4166_v46  ;;  %4192 = vadd.xlane.f32.xlu0 %v4191_v25 }
 0x444   : > { %v13543_v50 = vpop.eup %12332  ;;  %v4172_v0 = vmul.f32 1.442695, %v4142_v56 }
 0x445   : > { %v4170_v41 = vmul.f32 1.442695, %v4141_v63  ;;  %v13545_v43 = vpop.eup %12334  ;;  %v4200_v42 = vsel %vm144_vm1, %v13543_v50, 0.0 }
 0x446   : > { %v4127_v36 = vpop.xlane.xlu0 %4126  ;;  %12344 = vpow2.f32 %v4172_v0  ;;  %4201 = vadd.xlane.f32.xlu1 %v4200_v42  ;;  %v4197_v61 = vsel %vm144_vm1, %v13545_v43, 0.0  ;;  %v12514_v0 = vld [vmem:[%s12598_s12 + $0x48] sm:$0xff] }
 0x447   : > { %v4143_v34 = vsub.f32 %v13428_v30, %v4127_v36  ;;  %12346 = vpow2.f32 %v4170_v41  ;;  %4198 = vadd.xlane.f32.xlu0 %v4197_v61  ;;  %v12515_v41 = vld [vmem:[%s12598_s12 + $0x58] sm:$0xff]  ;;  %v12516_v36 = vld [vmem:[%s12598_s12 + $0x40] sm:$0xff]  ;;  %v12517_v42 = vld [vmem:[%s12598_s12 + $0x68] sm:$0xff] }
 0x448   : > { %v13552_v12 = vpop.eup %12336  ;;  %v12519_v61 = vld [vmem:[%s12598_s12 + $0x78] sm:$0xff] }
 0x449   : > { %v4174_v17 = vmul.f32 1.442695, %v4143_v34  ;;  %v13554_v19 = vpop.eup %12338  ;;  %v4206_v60 = vsel %vm144_vm1, %v13552_v12, 0.0  ;;  %v12518_v34 = vld [vmem:[%s12598_s12 + $0x50] sm:$0xff] }
 0x44a   : > { %4207 = vadd.xlane.f32.xlu1 %v4206_v60  ;;  %v4203_v29 = vsel %vm144_vm1, %v13554_v19, 0.0  ;;  %v12521_v60 = vld [vmem:[%s12598_s12 + $0x70] sm:$0xff] }
 0x44b   : > { %12348 = vpow2.f32 %v4174_v17  ;;  %4204 = vadd.xlane.f32.xlu0 %v4203_v29  ;;  %v12520_v17 = vld [vmem:[%s12598_s12 + $0x60] sm:$0xff] }
 0x44c   : > { %v13560_v30 = vpop.eup %12340  ;;  %v12522_v29 = vld [vmem:[%s12598_s12] sm:$0xff] }
 0x44d   : > { %v13562_v11 = vpop.eup %12342  ;;  %v4212_v57 = vsel %vm144_vm1, %v13560_v30, 0.0 }
 0x44e   : > { %4213 = vadd.xlane.f32.xlu1 %v4212_v57  ;;  %v4209_v46 = vsel %vm144_vm1, %v13562_v11, 0.0  ;;  %v12523_v57 = vld [vmem:[%s12598_s12 + $0x8] sm:$0xff] }
 0x44f   : > { %4210 = vadd.xlane.f32.xlu0 %v4209_v46  ;;  %v12524_v46 = vld [vmem:[%s12598_s12 + $0x10] sm:$0xff] }
 0x450   : > { %v13568_v24 = vpop.eup %12344 }
 0x451   : > { %v13570_v5 = vpop.eup %12346  ;;  %v4218_v7 = vsel %vm144_vm1, %v13568_v24, 0.0 }
 0x452   : > { %4219 = vadd.xlane.f32.xlu1 %v4218_v7  ;;  %v4215_v56 = vsel %vm144_vm1, %v13570_v5, 0.0  ;;  %v12525_v7 = vld [vmem:[%s12598_s12 + $0x18] sm:$0xff] }
 0x453   : > { %4216 = vadd.xlane.f32.xlu0 %v4215_v56  ;;  %v13616_v56 = vpop.permute.xlu1 %5864 }
 0x455   : > { %v13576_v63 = vpop.eup %12348 }
 0x456   : > { %v4221_v25 = vsel %vm144_vm1, %v13576_v63, 0.0 }
 0x457   : > { %4222 = vadd.xlane.f32.xlu0 %v4221_v25  ;;  %v13622_v25 = vpop.permute.xlu1 %5862 }
 0x463   : > { %6018 = vrot.lane.b32.xlu1 %v13440_v18, %s12558_s19 }
 0x467   : > { %6176 = vrot.lane.b32.xlu1 %v12514_v0, %s12557_s18 }
 0x46b   : > { %6174 = vrot.lane.b32.xlu1 %v12514_v0, %s12558_s19 }
 0x46d   : > { %5940 = vrot.lane.b32.xlu0 %v13452_v51, %s12558_s19 }
 0x46f   : > { %6332 = vrot.lane.b32.xlu1 %v12515_v41, %s12557_s18 }
 0x471   : > { %6098 = vrot.lane.b32.xlu0 %v12516_v36, %s12557_s18 }
 0x473   : > { %6330 = vrot.lane.b32.xlu1 %v12515_v41, %s12558_s19 }
 0x475   : > { %6096 = vrot.lane.b32.xlu0 %v12516_v36, %s12558_s19 }
 0x477   : > { %6488 = vrot.lane.b32.xlu1 %v12517_v42, %s12557_s18 }
 0x479   : > { %6254 = vrot.lane.b32.xlu0 %v12518_v34, %s12557_s18 }
 0x47b   : > { %6486 = vrot.lane.b32.xlu1 %v12517_v42, %s12558_s19 }
 0x47d   : > { %6252 = vrot.lane.b32.xlu0 %v12518_v34, %s12558_s19 }
 0x47f   : > { %6644 = vrot.lane.b32.xlu1 %v12519_v61, %s12557_s18 }
 0x481   : > { %6410 = vrot.lane.b32.xlu0 %v12520_v17, %s12557_s18 }
 0x483   : > { %6642 = vrot.lane.b32.xlu1 %v12519_v61, %s12558_s19 }
 0x485   : > { %6408 = vrot.lane.b32.xlu0 %v12520_v17, %s12558_s19 }
 0x487   : > { %6928 = vrot.lane.b32.xlu1 %v12522_v29, %s12559_s20 }
 0x489   : > { %6566 = vrot.lane.b32.xlu0 %v12521_v60, %s12557_s18 }
 0x48b   : > { %7080 = vrot.lane.b32.xlu1 %v12524_v46, %s12559_s20 }
 0x48d   : > { %6564 = vrot.lane.b32.xlu0 %v12521_v60, %s12558_s19 }
 0x48f   : > { %7232 = vrot.lane.b32.xlu1 %v13445_v47, %s12559_s20 }
 0x491   : > { %7004 = vrot.lane.b32.xlu0 %v12523_v57, %s12559_s20 }
 0x493   : > { %7308 = vrot.lane.b32.xlu1 %v13433_v33, %s12559_s20 }
 0x495   : > { %7156 = vrot.lane.b32.xlu0 %v12525_v7, %s12559_s20 }
 0x497   : > { %7460 = vrot.lane.b32.xlu1 %v13440_v18, %s12559_s20 }
 0x499   : > { %7384 = vrot.lane.b32.xlu0 %v13452_v51, %s12559_s20  ;;  %v13620_v51 = vpop.permute.xlu0 %5786 }
 0x49b   : > { %7612 = vrot.lane.b32.xlu1 %v12514_v0, %s12559_s20  ;;  %v13628_v0 = vpop.permute.xlu1 %6020 }
 0x49d   : > { %7536 = vrot.lane.b32.xlu0 %v12516_v36, %s12559_s20  ;;  %v13626_v18 = vpop.permute.xlu0 %5784 }
 0x49f   : > { %7764 = vrot.lane.b32.xlu1 %v12515_v41, %s12559_s20 }
 0x4a1   : > { %7688 = vrot.lane.b32.xlu0 %v12518_v34, %s12559_s20  ;;  %v13635_v36 = vpop.permute.xlu0 %5942 }
 0x4a3   : > { %7916 = vrot.lane.b32.xlu1 %v12517_v42, %s12559_s20 }
 0x4a5   : > { %7840 = vrot.lane.b32.xlu0 %v12520_v17, %s12559_s20 }
 0x4a7   : > { %8068 = vrot.lane.b32.xlu1 %v12519_v61, %s12559_s20 }
 0x4a9   : > { %7992 = vrot.lane.b32.xlu0 %v12521_v60, %s12559_s20 }
 0x4ab   : > { %8224 = vrot.lane.b32.xlu1 %v12523_v57, %s12560_s21 }
 0x4ad   : > { %8146 = vrot.lane.b32.xlu0 %v12522_v29, %s12560_s21 }
 0x4af   : > { %8222 = vrot.lane.b32.xlu1 %v12523_v57, %s12561_s22 }
 0x4b1   : > { %8144 = vrot.lane.b32.xlu0 %v12522_v29, %s12561_s22 }
 0x4b3   : > { %8380 = vrot.lane.b32.xlu1 %v12525_v7, %s12560_s21 }
 0x4b5   : > { %8302 = vrot.lane.b32.xlu0 %v12524_v46, %s12560_s21 }
 0x4b7   : > { %8378 = vrot.lane.b32.xlu1 %v12525_v7, %s12561_s22 }
 0x4b9   : > { %8300 = vrot.lane.b32.xlu0 %v12524_v46, %s12561_s22 }
 0x4bb   : > { %8536 = vrot.lane.b32.xlu1 %v13433_v33, %s12560_s21 }
 0x4bd   : > { %8458 = vrot.lane.b32.xlu0 %v13445_v47, %s12560_s21 }
 0x4bf   : > { %8534 = vrot.lane.b32.xlu1 %v13433_v33, %s12561_s22 }
 0x4c1   : > { %8456 = vrot.lane.b32.xlu0 %v13445_v47, %s12561_s22 }
 0x4c2   : > { %v4178_v41 = vpop.xlane.xlu1 %4177 }
 0x4c3   : > { %12350 = vrcp.f32 %v4178_v41 }
 0x4c6   : > { %v4184_v42 = vpop.xlane.xlu1 %4183 }
 0x4c7   : > { %12352 = vrcp.f32 %v4184_v42  ;;  %v4181_v34 = vpop.xlane.xlu0 %4180 }
 0x4c8   : > { %12354 = vrcp.f32 %v4181_v34 }
 0x4cb   : > { %v4190_v61 = vpop.xlane.xlu1 %4189 }
 0x4cc   : > { %12356 = vrcp.f32 %v4190_v61  ;;  %v4187_v17 = vpop.xlane.xlu0 %4186 }
 0x4cd   : > { %v12351_v60 = vpop.eup %12350  ;;  %12358 = vrcp.f32 %v4187_v17 }
 0x4ce   : > { %v4225_v29 = vmul.f32 %v12351_v60, %v13507_v44 }
 0x4cf   : > { %v4196_v57 = vpop.xlane.xlu1 %4195 }
 0x4d0   : > { %12360 = vrcp.f32 %v4196_v57  ;;  %v4193_v46 = vpop.xlane.xlu0 %4192  ;;  %11833 = vmatmul.mubr.msk.f32.vlgmr.msra.gmra.mrb[48].mxu0 %vm144_vm1, %v4225_v29 }
 0x4d1   : > { %v12353_v47 = vpop.eup %12352  ;;  %12362 = vrcp.f32 %v4193_v46  ;;  %11841 = vmatpush3.msra.mxu0 %v13456_v1  ;;  %11842 = vmatprep.mubr.msk.f32.mxu0 %vm12551_vm0, %v14919_v4 }
 0x4d2   : > { %v12355_v7 = vpop.eup %12354  ;;  %11850 = vmatprep.subr.mxu0 %v14919_v4  ;;  %v4229_v44 = vmul.f32 %v12353_v47, %v13513_v39 }
 0x4d3   : > { %v4202_v41 = vpop.xlane.xlu1 %4201  ;;  %v4227_v33 = vmul.f32 %v12355_v7, %v13515_v38 }
 0x4d4   : > { %12364 = vrcp.f32 %v4202_v41  ;;  %v4199_v42 = vpop.xlane.xlu0 %4198  ;;  %11843 = vmatmul.mubr.msk.f32.vlgmr.msra.gmra.mrb[50].mxu0 %vm144_vm1, %v4229_v44 }
 0x4d5   : > { %12366 = vrcp.f32 %v4199_v42  ;;  %11838 = vmatmul.mubr.msk.f32.vlgmr.msra.gmra.mrb[48].mxu1 %vm144_vm1, %v4227_v33  ;;  %11851 = vmatpush3.msra.mxu0 %v13458_v28 }
 0x4d6   : > { %v12357_v1 = vpop.eup %12356  ;;  %11846 = vmatpush3.msra.mxu1 %v13460_v49  ;;  %11847 = vmatprep.mubr.msk.f32.mxu1 %vm12551_vm0, %v14919_v4 }
 0x4d7   : > { %v12359_v34 = vpop.eup %12358  ;;  %v4208_v39 = vpop.xlane.xlu1 %4207  ;;  %11852 = vmatprep.mubr.msk.f32.mxu0 %vm12551_vm0, %v14919_v4  ;;  %11855 = vmatprep.subr.mxu1 %v14919_v4  ;;  %v4233_v38 = vmul.f32 %v12357_v1, %v13523_v48 }
 0x4d8   : > { %12368 = vrcp.f32 %v4208_v39  ;;  %v4205_v61 = vpop.xlane.xlu0 %4204  ;;  %11860 = vmatprep.subr.mxu0 %v14919_v4  ;;  %v4231_v28 = vmul.f32 %v12359_v34, %v13525_v26 }
 0x4d9   : > { %12370 = vrcp.f32 %v4205_v61  ;;  %11853 = vmatmul.mubr.msk.f32.vlgmr.msra.gmra.mrb[52].mxu0 %vm144_vm1, %v4233_v38 }
 0x4da   : > { %v12361_v49 = vpop.eup %12360  ;;  %11848 = vmatmul.mubr.msk.f32.vlgmr.msra.gmra.mrb[50].mxu1 %vm144_vm1, %v4231_v28  ;;  %11861 = vmatpush3.msra.mxu0 %v13464_v53 }
 0x4db   : > { %v12363_v17 = vpop.eup %12362  ;;  %11856 = vmatpush3.msra.mxu1 %v13462_v31  ;;  %v4214_v60 = vpop.xlane.xlu1 %4213  ;;  %11857 = vmatprep.mubr.msk.f32.mxu1 %vm12551_vm0, %v14919_v4  ;;  %v4237_v48 = vmul.f32 %v12361_v49, %v13533_v40 }
 0x4dc   : > { %12372 = vrcp.f32 %v4214_v60  ;;  %v4211_v29 = vpop.xlane.xlu0 %4210  ;;  %11862 = vmatprep.mubr.msk.f32.mxu0 %vm12551_vm0, %v14919_v4  ;;  %11865 = vmatprep.subr.mxu1 %v14919_v4  ;;  %v4235_v26 = vmul.f32 %v12363_v17, %v13535_v37 }
 0x4dd   : > { %12374 = vrcp.f32 %v4211_v29  ;;  %11870 = vmatprep.subr.mxu0 %v14919_v4  ;;  %11863 = vmatmul.mubr.msk.f32.vlgmr.msra.gmra.mrb[54].mxu0 %vm144_vm1, %v4237_v48 }
 0x4de   : > { %v12365_v31 = vpop.eup %12364  ;;  %11858 = vmatmul.mubr.msk.f32.vlgmr.msra.gmra.mrb[52].mxu1 %vm144_vm1, %v4235_v26  ;;  %11871 = vmatpush3.msra.mxu0 %v13468_v23 }
 0x4df   : > { %v12367_v53 = vpop.eup %12366  ;;  %11866 = vmatpush3.msra.mxu1 %v13466_v52  ;;  %v4220_v40 = vpop.xlane.xlu1 %4219  ;;  %11867 = vmatprep.mubr.msk.f32.mxu1 %vm12551_vm0, %v14919_v4  ;;  %v4241_v57 = vmul.f32 %v12365_v31, %v13543_v50 }
 0x4e0   : > { %12376 = vrcp.f32 %v4220_v40  ;;  %v4217_v37 = vpop.xlane.xlu0 %4216  ;;  %11872 = vmatprep.mubr.msk.f32.mxu0 %vm12551_vm0, %v14919_v4  ;;  %11875 = vmatprep.subr.mxu1 %v14919_v4  ;;  %v4239_v46 = vmul.f32 %v12367_v53, %v13545_v43 }
 0x4e1   : > { %12378 = vrcp.f32 %v4217_v37  ;;  %11880 = vmatprep.subr.mxu0 %v14919_v4  ;;  %11873 = vmatmul.mubr.msk.f32.vlgmr.msra.gmra.mrb[56].mxu0 %vm144_vm1, %v4241_v57 }
 0x4e2   : > { %v12369_v52 = vpop.eup %12368  ;;  %11868 = vmatmul.mubr.msk.f32.vlgmr.msra.gmra.mrb[54].mxu1 %vm144_vm1, %v4239_v46  ;;  %11881 = vmatpush3.msra.mxu0 %v13472_v55 }
 0x4e3   : > { %v12371_v23 = vpop.eup %12370  ;;  %11876 = vmatpush3.msra.mxu1 %v13470_v54  ;;  %11877 = vmatprep.mubr.msk.f32.mxu1 %vm12551_vm0, %v14919_v4  ;;  %v4245_v50 = vmul.f32 %v12369_v52, %v13552_v12  ;;  %v13695_v47 = vpop.permute.xlu1 %6018 }
 0x4e4   : > { %v4223_v43 = vpop.xlane.xlu0 %4222  ;;  %11882 = vmatprep.mubr.msk.f32.mxu0 %vm12551_vm0, %v14919_v4  ;;  %11885 = vmatprep.subr.mxu1 %v14919_v4  ;;  %v4243_v7 = vmul.f32 %v12371_v23, %v13554_v19 }
 0x4e5   : > { %12380 = vrcp.f32 %v4223_v43  ;;  %11890 = vmatprep.subr.mxu0 %v14919_v4  ;;  %11883 = vmatmul.mubr.msk.f32.vlgmr.msra.gmra.mrb[58].mxu0 %vm144_vm1, %v4245_v50 }
 0x4e6   : > { %v12373_v54 = vpop.eup %12372  ;;  %11878 = vmatmul.mubr.msk.f32.vlgmr.msra.gmra.mrb[56].mxu1 %vm144_vm1, %v4243_v7  ;;  %11891 = vmatpush3.msra.mxu0 %v13476_v13 }
 0x4e7   : > { %v12375_v55 = vpop.eup %12374  ;;  %11886 = vmatpush3.msra.mxu1 %v13474_v58  ;;  %11887 = vmatprep.mubr.msk.f32.mxu1 %vm12551_vm0, %v14919_v4  ;;  %v4249_v12 = vmul.f32 %v12373_v54, %v13560_v30  ;;  %v13713_v41 = vpop.permute.xlu1 %6176 }
 0x4e8   : > { %11892 = vmatprep.mubr.msk.f32.mxu0 %vm12551_vm0, %v14919_v4  ;;  %11895 = vmatprep.subr.mxu1 %v14919_v4  ;;  %v4247_v19 = vmul.f32 %v12375_v55, %v13562_v11  ;;  %v5941_v44 = vpop.permute.xlu0 %5940 }
 0x4e9   : > { %11900 = vmatprep.subr.mxu0 %v14919_v4  ;;  %11893 = vmatmul.mubr.msk.f32.vlgmr.msra.gmra.mrb[60].mxu0 %vm144_vm1, %v4249_v12 }
 0x4ea   : > { %v12377_v58 = vpop.eup %12376  ;;  %11888 = vmatmul.mubr.msk.f32.vlgmr.msra.gmra.mrb[58].mxu1 %vm144_vm1, %v4247_v19  ;;  %11901 = vmatpush3.msra.mxu0 %v13480_v3 }
 0x4eb   : > { %v12379_v13 = vpop.eup %12378  ;;  %11896 = vmatpush3.msra.mxu1 %v13478_v59  ;;  %11897 = vmatprep.mubr.msk.f32.mxu1 %vm12551_vm0, %v14919_v4  ;;  %v4253_v30 = vmul.f32 %v12377_v58, %v13568_v24  ;;  %v6175_v59 = vpop.permute.xlu1 %6174 }
 0x4ec   : > { %11902 = vmatprep.mubr.msk.f32.mxu0 %vm12551_vm0, %v14919_v4  ;;  %11905 = vmatprep.subr.mxu1 %v14919_v4  ;;  %v4251_v11 = vmul.f32 %v12379_v13, %v13570_v5  ;;  %v6099_v33 = vpop.permute.xlu0 %6098 }
 0x4ed   : > { %11903 = vmatmul.mubr.msk.f32.vlgmr.msra.gmra.mrb[62].mxu0 %vm144_vm1, %v4253_v30  ;;  %11910 = vmatprep.subr.mxu0 %v14919_v4 }
 0x4ee   : > { %11898 = vmatmul.mubr.msk.f32.vlgmr.msra.gmra.mrb[60].mxu1 %vm144_vm1, %v4251_v11  ;;  %11912 = vmatprep.mubr.msk.f32.mxu0 %vm12551_vm0, %v14919_v4 }
 0x4ef   : > { %v12381_v3 = vpop.eup %12380  ;;  %11906 = vmatpush3.msra.mxu1 %v13482_v32  ;;  %11907 = vmatprep.mubr.msk.f32.mxu1 %vm12551_vm0, %v14919_v4  ;;  %v6333_v42 = vpop.permute.xlu1 %6332 }
 0x4f0   : > { %v4255_v24 = vmul.f32 %v12381_v3, %v13576_v63  ;;  %11915 = vmatprep.subr.mxu1 %v14919_v4  ;;  %v6097_v5 = vpop.permute.xlu0 %6096 }
 0x4f1   : > { %11911 = vmatpush3.xpose.msk.msra.mxu0 %vm144_vm1, %v13484_v6 }
 0x4f2   : > { %11908 = vmatmul.mubr.msk.f32.vlgmr.msra.gmra.mrb[62].mxu1 %vm144_vm1, %v4255_v24  ;;  %11920 = vmatprep.subr.mxu0 %v14919_v4 }
 0x4f3   : > { %11917 = vmatprep.mubr.msk.f32.mxu1 %vm12551_vm0, %v14919_v4 }
 0x4f4   : > { %11913 = vmatmul.mubr.msk.f32.vlgmr.msra.gmra.mrb[64].mxu0 %vm144_vm1, %v13488_v9  ;;  %v6255_v32 = vpop.permute.xlu0 %6254 }
 0x4f5   : > { %11921 = vmatpush3.xpose.msk.msra.mxu0 %vm144_vm1, %v13492_v14  ;;  %11922 = vmatprep.mubr.msk.f32.mxu0 %vm12551_vm0, %v14919_v4 }
 0x4f6   : > { %11916 = vmatpush3.xpose.msk.msra.mxu1 %vm144_vm1, %v13486_v8  ;;  %11930 = vmatprep.subr.mxu0 %v14919_v4  ;;  %v6331_v8 = vpop.permute.xlu1 %6330 }
 0x4f7   : > { %11925 = vmatprep.subr.mxu1 %v14919_v4 }
 0x4f8   : > { %11923 = vmatmul.mubr.msk.f32.vlgmr.msra.gmra.mrb[66].mxu0 %vm144_vm1, %v13496_v27  ;;  %v6253_v6 = vpop.permute.xlu0 %6252 }
 0x4f9   : > { %11918 = vmatmul.mubr.msk.f32.vlgmr.msra.gmra.mrb[64].mxu1 %vm144_vm1, %v13490_v2  ;;  %11931 = vmatpush3.xpose.msk.msra.mxu0 %vm144_vm1, %v13620_v51 }
 0x4fa   : > { %11926 = vmatpush3.xpose.msk.msra.mxu1 %vm144_vm1, %v13494_v15  ;;  %11932 = vmatprep.mubr.msk.f32.mxu0 %vm12551_vm0, %v14919_v4  ;;  %v6489_v2 = vpop.permute.xlu1 %6488 }
 0x4fb   : > { %11927 = vmatprep.mubr.msk.f32.mxu1 %vm12551_vm0, %v14919_v4  ;;  %11935 = vmatprep.subr.mxu1 %v14919_v4 }
 0x4fc   : > { %11933 = vmatmul.mubr.msk.f32.vlgmr.msra.gmra.mrb[68].mxu0 %vm144_vm1, %v13626_v18  ;;  %11940 = vmatprep.subr.mxu0 %v14919_v4  ;;  %v6411_v9 = vpop.permute.xlu0 %6410 }
 0x4fd   : > { %11928 = vmatmul.mubr.msk.f32.vlgmr.msra.gmra.mrb[66].mxu1 %vm144_vm1, %v13498_v45  ;;  %11941 = vmatpush3.xpose.msk.msra.mxu0 %vm144_vm1, %v13635_v36 }
 0x4fe   : > { %11936 = vmatpush3.xpose.msk.msra.mxu1 %vm144_vm1, %v13616_v56  ;;  %11937 = vmatprep.mubr.msk.f32.mxu1 %vm12551_vm0, %v14919_v4  ;;  %v6487_v15 = vpop.permute.xlu1 %6486 }
 0x4ff   : > { %11942 = vmatprep.mubr.msk.f32.mxu0 %vm12551_vm0, %v14919_v4  ;;  %11945 = vmatprep.subr.mxu1 %v14919_v4 }
 0x500   : > { %11943 = vmatmul.mubr.msk.f32.vlgmr.msra.gmra.mrb[70].mxu0 %vm144_vm1, %v5941_v44  ;;  %11950 = vmatprep.subr.mxu0 %v14919_v4  ;;  %v6409_v14 = vpop.permute.xlu0 %6408 }
 0x501   : > { %11938 = vmatmul.mubr.msk.f32.vlgmr.msra.gmra.mrb[68].mxu1 %vm144_vm1, %v13622_v25  ;;  %11951 = vmatpush3.xpose.msk.msra.mxu0 %vm144_vm1, %v6099_v33 }
 0x502   : > { %11946 = vmatpush3.xpose.msk.msra.mxu1 %vm144_vm1, %v13628_v0  ;;  %11947 = vmatprep.mubr.msk.f32.mxu1 %vm12551_vm0, %v14919_v4  ;;  %v6645_v45 = vpop.permute.xlu1 %6644 }
 0x503   : > { %11952 = vmatprep.mubr.msk.f32.mxu0 %vm12551_vm0, %v14919_v4  ;;  %11955 = vmatprep.subr.mxu1 %v14919_v4 }
 0x504   : > { %11953 = vmatmul.mubr.msk.f32.vlgmr.msra.gmra.mrb[72].mxu0 %vm144_vm1, %v6097_v5  ;;  %11960 = vmatprep.subr.mxu0 %v14919_v4  ;;  %v6567_v27 = vpop.permute.xlu0 %6566 }
 0x505   : > { %11948 = vmatmul.mubr.msk.f32.vlgmr.msra.gmra.mrb[70].mxu1 %vm144_vm1, %v13695_v47  ;;  %11961 = vmatpush3.xpose.msk.msra.mxu0 %vm144_vm1, %v6255_v32 }
 0x506   : > { %11956 = vmatpush3.xpose.msk.msra.mxu1 %vm144_vm1, %v13713_v41  ;;  %11957 = vmatprep.mubr.msk.f32.mxu1 %vm12551_vm0, %v14919_v4  ;;  %v6643_v56 = vpop.permute.xlu1 %6642 }
 0x507   : > { %11962 = vmatprep.mubr.msk.f32.mxu0 %vm12551_vm0, %v14919_v4  ;;  %11965 = vmatprep.subr.mxu1 %v14919_v4 }
 0x508   : > { %11963 = vmatmul.mubr.msk.f32.vlgmr.msra.gmra.mrb[74].mxu0 %vm144_vm1, %v6253_v6  ;;  %11970 = vmatprep.subr.mxu0 %v14919_v4  ;;  %v6565_v63 = vpop.permute.xlu0 %6564 }
 0x509   : > { %11958 = vmatmul.mubr.msk.f32.vlgmr.msra.gmra.mrb[72].mxu1 %vm144_vm1, %v6175_v59  ;;  %11971 = vmatpush3.xpose.msk.msra.mxu0 %vm144_vm1, %v6411_v9 }
 0x50a   : > { %11966 = vmatpush3.xpose.msk.msra.mxu1 %vm144_vm1, %v6333_v42  ;;  %11967 = vmatprep.mubr.msk.f32.mxu1 %vm12551_vm0, %v14919_v4  ;;  %v6929_v51 = vpop.permute.xlu1 %6928 }
 0x50b   : > { %11972 = vmatprep.mubr.msk.f32.mxu0 %vm12551_vm0, %v14919_v4  ;;  %11975 = vmatprep.subr.mxu1 %v14919_v4 }
 0x50c   : > { %11973 = vmatmul.mubr.msk.f32.vlgmr.msra.gmra.mrb[76].mxu0 %vm144_vm1, %v6409_v14  ;;  %11980 = vmatprep.subr.mxu0 %v14919_v4  ;;  %v7005_v25 = vpop.permute.xlu0 %7004 }
 0x50d   : > { %11968 = vmatmul.mubr.msk.f32.vlgmr.msra.gmra.mrb[74].mxu1 %vm144_vm1, %v6331_v8  ;;  %11981 = vmatpush3.xpose.msk.msra.mxu0 %vm144_vm1, %v6567_v27 }
 0x50e   : > { %11976 = vmatpush3.xpose.msk.msra.mxu1 %vm144_vm1, %v6489_v2  ;;  %11977 = vmatprep.mubr.msk.f32.mxu1 %vm12551_vm0, %v14919_v4 }
 0x50f   : > { %11982 = vmatprep.mubr.msk.f32.mxu0 %vm12551_vm0, %v14919_v4  ;;  %11985 = vmatprep.subr.mxu1 %v14919_v4 }
 0x510   : > { %11983 = vmatmul.mubr.msk.f32.vlgmr.msra.gmra.mrb[78].mxu0 %vm144_vm1, %v6565_v63  ;;  %11990 = vmatprep.subr.mxu0 %v14919_v4 }
 0x511   : > { %11978 = vmatmul.mubr.msk.f32.vlgmr.msra.gmra.mrb[76].mxu1 %vm144_vm1, %v6487_v15  ;;  %11992 = vmatprep.mubr.msk.f32.mxu0 %vm12551_vm0, %v14919_v4 }
 0x512   : > { %11986 = vmatpush3.xpose.msk.msra.mxu1 %vm144_vm1, %v6645_v45  ;;  %11987 = vmatprep.mubr.msk.f32.mxu1 %vm12551_vm0, %v14919_v4 }
 0x513   : > { %11995 = vmatprep.subr.mxu1 %v14919_v4  ;;  %11991 = vmatpush3.msra.mxu0 %v6929_v51 }
 0x514   : > { %12000 = vmatprep.subr.mxu0 %v14919_v4 }
 0x515   : > { %11988 = vmatmul.mubr.msk.f32.vlgmr.msra.gmra.mrb[78].mxu1 %vm144_vm1, %v6643_v56 }
 0x516   : > { %11997 = vmatprep.mubr.msk.f32.mxu1 %vm12551_vm0, %v14919_v4  ;;  %11996 = vmatpush3.msra.mxu1 %v7005_v25 }
 0x517   : > { %12005 = vmatprep.subr.mxu1 %v14919_v4 }
 0x5a3   : > { %v13838_v18 = vpop.f32.mrb[48].mxu0 }
 0x5a4   : > { %14941 = vst [vmem:[#allocation2_spill] sm:$0xff] %v13838_v18  ;;  %v11834_v0 = vpop.f32.mrb[49].mxu0 }
 0x5a7   : > { %v13840_v36 = vpop.f32.mrb[50].mxu0 }
 0x5a8   : > { %14942 = vst [vmem:[#allocation19_spill] sm:$0xff] %v13840_v36  ;;  %v13842_v1 = vpop.f32.mrb[48].mxu1  ;;  %v11844_v34 = vpop.f32.mrb[51].mxu0 }
 0x5a9   : > { %14943 = vst [vmem:[#allocation20_spill] sm:$0xff] %v13842_v1  ;;  %v11839_v39 = vpop.f32.mrb[49].mxu1 }
 0x5ac   : > { %v13844_v38 = vpop.f32.mrb[52].mxu0 }
 0x5ad   : > { %14944 = vst [vmem:[#allocation21_spill] sm:$0xff] %v13844_v38  ;;  %v13846_v61 = vpop.f32.mrb[50].mxu1  ;;  %v11854_v28 = vpop.f32.mrb[53].mxu0 }
 0x5ae   : > { %14945 = vst [vmem:[#allocation22_spill] sm:$0xff] %v13846_v61  ;;  %v11849_v49 = vpop.f32.mrb[51].mxu1 }
 0x5b0   : > { %v13848_v17 = vpop.f32.mrb[54].mxu0 }
 0x5b1   : > { %14946 = vst [vmem:[#allocation23_spill] sm:$0xff] %v13848_v17  ;;  %v13850_v60 = vpop.f32.mrb[52].mxu1  ;;  %v11864_v48 = vpop.f32.mrb[55].mxu0 }
 0x5b2   : > { %14947 = vst [vmem:[#allocation24_spill] sm:$0xff] %v13850_v60  ;;  %v11859_v29 = vpop.f32.mrb[53].mxu1 }
 0x5b4   : > { %v13852_v26 = vpop.f32.mrb[56].mxu0 }
 0x5b5   : > { %14948 = vst [vmem:[#allocation25_spill] sm:$0xff] %v13852_v26  ;;  %v13854_v31 = vpop.f32.mrb[54].mxu1  ;;  %v11874_v53 = vpop.f32.mrb[57].mxu0 }
 0x5b6   : > { %14949 = vst [vmem:[#allocation26_spill] sm:$0xff] %v13854_v31  ;;  %v11869_v40 = vpop.f32.mrb[55].mxu1 }
 0x5b8   : > { %v13856_v57 = vpop.f32.mrb[58].mxu0 }
 0x5b9   : > { %14950 = vst [vmem:[#allocation27_spill] sm:$0xff] %v13856_v57  ;;  %v13858_v37 = vpop.f32.mrb[56].mxu1  ;;  %v11884_v46 = vpop.f32.mrb[59].mxu0 }
 0x5ba   : > { %14951 = vst [vmem:[#allocation28_spill] sm:$0xff] %v13858_v37  ;;  %v11879_v52 = vpop.f32.mrb[57].mxu1 }
 0x5bc   : > { %v13860_v23 = vpop.f32.mrb[60].mxu0 }
 0x5bd   : > { %14952 = vst [vmem:[#allocation29_spill] sm:$0xff] %v13860_v23  ;;  %v13862_v50 = vpop.f32.mrb[58].mxu1  ;;  %v11894_v47 = vpop.f32.mrb[61].mxu0 }
 0x5be   : > { %14953 = vst [vmem:[#allocation30_spill] sm:$0xff] %v13862_v50  ;;  %v11889_v43 = vpop.f32.mrb[59].mxu1 }
 0x5c0   : > { %v13864_v7 = vpop.f32.mrb[62].mxu0 }
 0x5c1   : > { %14954 = vst [vmem:[#allocation31_spill] sm:$0xff] %v13864_v7  ;;  %v13866_v54 = vpop.f32.mrb[60].mxu1  ;;  %v11904_v55 = vpop.f32.mrb[63].mxu0 }
 0x5c2   : > { %14955 = vst [vmem:[#allocation32_spill] sm:$0xff] %v13866_v54  ;;  %v11899_v12 = vpop.f32.mrb[61].mxu1 }
 0x5c5   : > { %v13868_v19 = vpop.f32.mrb[62].mxu1 }
 0x5c6   : > { %14956 = vst [vmem:[#allocation33_spill] sm:$0xff] %v13868_v19  ;;  %v11909_v44 = vpop.f32.mrb[63].mxu1 }
 0x5c7   : > { %v5546_v41 = vpop.f32.mrb[64].mxu0 }
 0x5c8   : > { %v6720_v58 = vmul.f32 0.35355338, %v5546_v41  ;;  %v11914_v13 = vpop.f32.mrb[65].mxu0 }
 0x5ca   : > { %v13872_v30 = vsel %vm12794_vm2, %v6720_v58, -32767.0 }
 0x5cb   : > { %v5702_v11 = vpop.f32.mrb[66].mxu0  ;;  %v6752_v33 = vsel %vm144_vm1, %v13872_v30, -inf }
 0x5cc   : > { %v5624_v59 = vpop.f32.mrb[64].mxu1  ;;  %v6722_v3 = vmul.f32 0.35355338, %v5702_v11  ;;  %v11924_v24 = vpop.f32.mrb[67].mxu0  ;;  %6753 = vmax.xlane.f32.xlu0 %v6752_v33 }
 0x5cd   : > { %v6721_v5 = vmul.f32 0.35355338, %v5624_v59  ;;  %v11919_v32 = vpop.f32.mrb[65].mxu1 }
 0x5ce   : > { %v13878_v42 = vsel %vm12794_vm2, %v6722_v3, -32767.0 }
 0x5cf   : > { %v13882_v6 = vsel %vm12794_vm2, %v6721_v5, -32767.0  ;;  %v5858_v8 = vpop.f32.mrb[68].mxu0  ;;  %v6758_v9 = vsel %vm144_vm1, %v13878_v42, -inf }
 0x5d0   : > { %v5780_v2 = vpop.f32.mrb[66].mxu1  ;;  %v6724_v14 = vmul.f32 0.35355338, %v5858_v8  ;;  %6759 = vmax.xlane.f32.xlu0 %v6758_v9  ;;  %v11934_v15 = vpop.f32.mrb[69].mxu0  ;;  %v6755_v27 = vsel %vm144_vm1, %v13882_v6, -inf }
 0x5d1   : > { %v6723_v45 = vmul.f32 0.35355338, %v5780_v2  ;;  %6756 = vmax.xlane.f32.xlu1 %v6755_v27  ;;  %v11929_v63 = vpop.f32.mrb[67].mxu1 }
 0x5d2   : > { %v13890_v56 = vsel %vm12794_vm2, %v6724_v14, -32767.0 }
 0x5d3   : > { %v13894_v51 = vsel %vm12794_vm2, %v6723_v45, -32767.0  ;;  %v6014_v25 = vpop.f32.mrb[70].mxu0  ;;  %v6764_v0 = vsel %vm144_vm1, %v13890_v56, -inf }
 0x5d4   : > { %v5936_v34 = vpop.f32.mrb[68].mxu1  ;;  %v6726_v39 = vmul.f32 0.35355338, %v6014_v25  ;;  %v6761_v28 = vsel %vm144_vm1, %v13894_v51, -inf  ;;  %v11944_v49 = vpop.f32.mrb[71].mxu0 }
 0x5d5   : > { %v6725_v48 = vmul.f32 0.35355338, %v5936_v34  ;;  %6765 = vmax.xlane.f32.xlu1 %v6764_v0  ;;  %6762 = vmax.xlane.f32.xlu0 %v6761_v28  ;;  %v11939_v29 = vpop.f32.mrb[69].mxu1 }
 0x5d6   : > { %v13902_v53 = vsel %vm12794_vm2, %v6726_v39, -32767.0 }
 0x5d7   : > { %v13906_v40 = vsel %vm12794_vm2, %v6725_v48, -32767.0  ;;  %v6170_v46 = vpop.f32.mrb[72].mxu0  ;;  %v6770_v52 = vsel %vm144_vm1, %v13902_v53, -inf }
 0x5d8   : > { %v6092_v47 = vpop.f32.mrb[70].mxu1  ;;  %v6728_v43 = vmul.f32 0.35355338, %v6170_v46  ;;  %v6767_v55 = vsel %vm144_vm1, %v13906_v40, -inf  ;;  %v11954_v12 = vpop.f32.mrb[73].mxu0 }
 0x5d9   : > { %v6727_v44 = vmul.f32 0.35355338, %v6092_v47  ;;  %6768 = vmax.xlane.f32.xlu0 %v6767_v55  ;;  %v11949_v41 = vpop.f32.mrb[71].mxu1  ;;  %6771 = vmax.xlane.f32.xlu1 %v6770_v52 }
 0x5da   : > { %v13914_v58 = vsel %vm12794_vm2, %v6728_v43, -32767.0 }
 0x5db   : > { %v13918_v13 = vsel %vm12794_vm2, %v6727_v44, -32767.0  ;;  %v6326_v11 = vpop.f32.mrb[74].mxu0  ;;  %v6776_v33 = vsel %vm144_vm1, %v13914_v58, -inf }
 0x5dc   : > { %v6248_v59 = vpop.f32.mrb[72].mxu1  ;;  %v6730_v3 = vmul.f32 0.35355338, %v6326_v11  ;;  %v6773_v24 = vsel %vm144_vm1, %v13918_v13, -inf  ;;  %v11964_v5 = vpop.f32.mrb[75].mxu0 }
 0x5dd   : > { %v6729_v32 = vmul.f32 0.35355338, %v6248_v59  ;;  %6774 = vmax.xlane.f32.xlu0 %v6773_v24  ;;  %v11959_v8 = vpop.f32.mrb[73].mxu1  ;;  %6777 = vmax.xlane.f32.xlu1 %v6776_v33 }
 0x5de   : > { %v13926_v9 = vsel %vm12794_vm2, %v6730_v3, -32767.0  ;;  %v13972_v8 = vld [vmem:[%s12598_s12 + $0x30] sm:$0xff] }
 0x5df   : > { %v13930_v2 = vsel %vm12794_vm2, %v6729_v32, -32767.0  ;;  %v6482_v14 = vpop.f32.mrb[76].mxu0  ;;  %v6782_v15 = vsel %vm144_vm1, %v13926_v9, -inf  ;;  %v13967_v32 = vld [vmem:[%s12598_s12 + $0x38] sm:$0xff] }
 0x5e0   : > { %v6404_v27 = vpop.f32.mrb[74].mxu1  ;;  %v6732_v45 = vmul.f32 0.35355338, %v6482_v14  ;;  %v6779_v63 = vsel %vm144_vm1, %v13930_v2, -inf  ;;  %v11974_v25 = vpop.f32.mrb[77].mxu0 }
 0x5e1   : > { %v6731_v0 = vmul.f32 0.35355338, %v6404_v27  ;;  %6780 = vmax.xlane.f32.xlu0 %v6779_v63  ;;  %v11969_v34 = vpop.f32.mrb[75].mxu1  ;;  %6783 = vmax.xlane.f32.xlu1 %v6782_v15  ;;  %v13976_v14 = vpop.permute.xlu1 %7080 }
 0x5e2   : > { %v13938_v39 = vsel %vm12794_vm2, %v6732_v45, -32767.0  ;;  %v13980_v27 = vpop.permute.xlu0 %7156 }
 0x5e3   : > { %v13942_v28 = vsel %vm12794_vm2, %v6731_v0, -32767.0  ;;  %v6638_v49 = vpop.f32.mrb[78].mxu0  ;;  %v6788_v48 = vsel %vm144_vm1, %v13938_v39, -inf }
 0x5e4   : > { %v6560_v29 = vpop.f32.mrb[76].mxu1  ;;  %v6734_v46 = vmul.f32 0.35355338, %v6638_v49  ;;  %v6785_v52 = vsel %vm144_vm1, %v13942_v28, -inf  ;;  %v11984_v47 = vpop.f32.mrb[79].mxu0 }
 0x5e5   : > { %v6733_v43 = vmul.f32 0.35355338, %v6560_v29  ;;  %6786 = vmax.xlane.f32.xlu0 %v6785_v52  ;;  %v11979_v55 = vpop.f32.mrb[77].mxu1  ;;  %6789 = vmax.xlane.f32.xlu1 %v6788_v48  ;;  %v13978_v15 = vpop.permute.xlu1 %7232 }
 0x5e6   : > { %v13950_v12 = vsel %vm12794_vm2, %v6734_v46, -32767.0  ;;  %v13984_v63 = vpop.permute.xlu0 %7384 }
 0x5e7   : > { %v13954_v44 = vsel %vm12794_vm2, %v6733_v43, -32767.0  ;;  %v6794_v41 = vsel %vm144_vm1, %v13950_v12, -inf }
 0x5e8   : > { %v6716_v11 = vpop.f32.mrb[78].mxu1  ;;  %v6791_v33 = vsel %vm144_vm1, %v13954_v44, -inf }
 0x5e9   : > { %v6735_v59 = vmul.f32 0.35355338, %v6716_v11  ;;  %6792 = vmax.xlane.f32.xlu0 %v6791_v33  ;;  %6795 = vmax.xlane.f32.xlu1 %v6794_v41  ;;  %v11989_v3 = vpop.f32.mrb[79].mxu1  ;;  %v13982_v45 = vpop.permute.xlu1 %7308 }
 0x5ea   : > { %v13988_v0 = vpop.permute.xlu0 %7536 }
 0x5eb   : > { %v13962_v24 = vsel %vm12794_vm2, %v6735_v59, -32767.0 }
 0x5ec   : > { %v6797_v5 = vsel %vm144_vm1, %v13962_v24, -inf }
 0x5ed   : > { %6798 = vmax.xlane.f32.xlu0 %v6797_v5  ;;  %v13986_v25 = vpop.permute.xlu1 %7460 }
 0x5ee   : > { %v13992_v49 = vpop.permute.xlu0 %7688 }
 0x5f1   : > { %v13990_v34 = vpop.permute.xlu1 %7612 }
 0x5f2   : > { %v13996_v29 = vpop.permute.xlu0 %7840 }
 0x5f5   : > { %v13994_v48 = vpop.permute.xlu1 %7764 }
 0x5f6   : > { %v14000_v52 = vpop.permute.xlu0 %7992 }
 0x5f9   : > { %v13998_v46 = vpop.permute.xlu1 %7916 }
 0x5fa   : > { %8692 = vrot.lane.b32.xlu1 %v13967_v32, %s12560_s21  ;;  %v14004_v43 = vpop.permute.xlu0 %8146 }
 0x5fd   : > { %v14002_v47 = vpop.permute.xlu1 %8068 }
 0x5fe   : > { %v14008_v41 = vpop.permute.xlu0 %8144 }
 0x601   : > { %v14006_v55 = vpop.permute.xlu1 %8224 }
 0x602   : > { %v14012_v33 = vpop.permute.xlu0 %8302 }
 0x603   : > { %8614 = vrot.lane.b32.xlu0 %v13972_v8, %s12560_s21 }
 0x605   : > { %v14010_v11 = vpop.permute.xlu1 %8222 }
 0x606   : > { %v14016_v3 = vpop.permute.xlu0 %8300 }
 0x609   : > { %v14014_v59 = vpop.permute.xlu1 %8380 }
 0x60a   : > { %v14020_v62 = vpop.permute.xlu0 %8458 }
 0x60d   : > { %v14018_v5 = vpop.permute.xlu1 %8378 }
 0x60e   : > { %v14024_v35 = vpop.permute.xlu0 %8456 }
 0x611   : > { %v14022_v22 = vpop.permute.xlu1 %8536 }
 0x615   : > { %v14026_v21 = vpop.permute.xlu1 %8534 }
 0x659   : > { %v6754_v20 = vpop.xlane.xlu0 %6753 }
 0x65a   : > { %v6800_v16 = vsub.f32 %v13872_v30, %v6754_v20 }
 0x65c   : > { %v6816_v7 = vmul.f32 1.442695, %v6800_v16 }
 0x65d   : > { %v6760_v23 = vpop.xlane.xlu0 %6759 }
 0x65e   : > { %12382 = vpow2.f32 %v6816_v7  ;;  %v6757_v57 = vpop.xlane.xlu1 %6756  ;;  %v6802_v19 = vsub.f32 %v13878_v42, %v6760_v23 }
 0x65f   : > { %v6801_v26 = vsub.f32 %v13882_v6, %v6757_v57 }
 0x660   : > { %v6820_v54 = vmul.f32 1.442695, %v6802_v19 }
 0x661   : > { %v6818_v17 = vmul.f32 1.442695, %v6801_v26 }
 0x662   : > { %12384 = vpow2.f32 %v6820_v54  ;;  %v6766_v50 = vpop.xlane.xlu1 %6765  ;;  %v6763_v38 = vpop.xlane.xlu0 %6762 }
 0x663   : > { %12386 = vpow2.f32 %v6818_v17  ;;  %v6804_v37 = vsub.f32 %v13890_v56, %v6766_v50  ;;  %v6803_v36 = vsub.f32 %v13894_v51, %v6763_v38 }
 0x665   : > { %v6824_v31 = vmul.f32 1.442695, %v6804_v37  ;;  %v6822_v20 = vmul.f32 1.442695, %v6803_v36 }
 0x666   : > { %v6772_v16 = vpop.xlane.xlu1 %6771  ;;  %v6769_v30 = vpop.xlane.xlu0 %6768 }
 0x667   : > { %12388 = vpow2.f32 %v6824_v31  ;;  %v6806_v7 = vsub.f32 %v13902_v53, %v6772_v16  ;;  %v6805_v23 = vsub.f32 %v13906_v40, %v6769_v30 }
 0x668   : > { %v14035_v57 = vpop.eup %12382  ;;  %12390 = vpow2.f32 %v6822_v20 }
 0x669   : > { %v6828_v26 = vmul.f32 1.442695, %v6806_v7  ;;  %v6826_v54 = vmul.f32 1.442695, %v6805_v23  ;;  %v6848_v17 = vsel %vm144_vm1, %v14035_v57, 0.0 }
 0x66a   : > { %v6778_v50 = vpop.xlane.xlu1 %6777  ;;  %v6775_v19 = vpop.xlane.xlu0 %6774  ;;  %6849 = vadd.xlane.f32.xlu1 %v6848_v17 }
 0x66b   : > { %12392 = vpow2.f32 %v6828_v26  ;;  %v6808_v36 = vsub.f32 %v13914_v58, %v6778_v50  ;;  %v6807_v38 = vsub.f32 %v13918_v13, %v6775_v19 }
 0x66c   : > { %v14041_v31 = vpop.eup %12384  ;;  %12394 = vpow2.f32 %v6826_v54 }
 0x66d   : > { %v14043_v37 = vpop.eup %12386  ;;  %v6832_v42 = vmul.f32 1.442695, %v6808_v36  ;;  %v6830_v6 = vmul.f32 1.442695, %v6807_v38  ;;  %v6854_v56 = vsel %vm144_vm1, %v14041_v31, 0.0 }
 0x66e   : > { %v6784_v51 = vpop.xlane.xlu1 %6783  ;;  %v6781_v53 = vpop.xlane.xlu0 %6780  ;;  %v6851_v40 = vsel %vm144_vm1, %v14043_v37, 0.0  ;;  %6855 = vadd.xlane.f32.xlu1 %v6854_v56 }
 0x66f   : > { %12396 = vpow2.f32 %v6832_v42  ;;  %v6810_v58 = vsub.f32 %v13926_v9, %v6784_v51  ;;  %v6809_v13 = vsub.f32 %v13930_v2, %v6781_v53  ;;  %6852 = vadd.xlane.f32.xlu0 %v6851_v40 }
 0x670   : > { %12398 = vpow2.f32 %v6830_v6 }
 0x671   : > { %v14051_v20 = vpop.eup %12388  ;;  %v6836_v16 = vmul.f32 1.442695, %v6810_v58  ;;  %v6834_v30 = vmul.f32 1.442695, %v6809_v13 }
 0x672   : > { %v14053_v7 = vpop.eup %12390  ;;  %v6790_v23 = vpop.xlane.xlu1 %6789  ;;  %v6860_v54 = vsel %vm144_vm1, %v14051_v20, 0.0 }
 0x673   : > { %v6787_v26 = vpop.xlane.xlu0 %6786  ;;  %12400 = vpow2.f32 %v6836_v16  ;;  %v6812_v17 = vsub.f32 %v13938_v39, %v6790_v23  ;;  %6861 = vadd.xlane.f32.xlu1 %v6860_v54  ;;  %v6857_v2 = vsel %vm144_vm1, %v14053_v7, 0.0 }
 0x674   : > { %v6811_v9 = vsub.f32 %v13942_v28, %v6787_v26  ;;  %12402 = vpow2.f32 %v6834_v30  ;;  %6858 = vadd.xlane.f32.xlu0 %v6857_v2 }
 0x675   : > { %v14061_v50 = vpop.eup %12392  ;;  %v6840_v19 = vmul.f32 1.442695, %v6812_v17 }
 0x676   : > { %v6838_v36 = vmul.f32 1.442695, %v6811_v9  ;;  %v14063_v38 = vpop.eup %12394  ;;  %v6866_v6 = vsel %vm144_vm1, %v14061_v50, 0.0 }
 0x677   : > { %v6793_v42 = vpop.xlane.xlu0 %6792  ;;  %12404 = vpow2.f32 %v6840_v19  ;;  %6867 = vadd.xlane.f32.xlu1 %v6866_v6  ;;  %v6863_v28 = vsel %vm144_vm1, %v14063_v38, 0.0  ;;  %v6796_v19 = vpop.xlane.xlu1 %6795 }
 0x678   : > { %v6813_v39 = vsub.f32 %v13954_v44, %v6793_v42  ;;  %12406 = vpow2.f32 %v6838_v36  ;;  %6864 = vadd.xlane.f32.xlu0 %v6863_v28  ;;  %v6814_v36 = vsub.f32 %v13950_v12, %v6796_v19  ;;  %v14153_v19 = vld [vmem:[%s12598_s12 + $0x60] sm:$0xff] }
 0x679   : > { %v14070_v56 = vpop.eup %12396 }
 0x67a   : > { %v6842_v51 = vmul.f32 1.442695, %v6813_v39  ;;  %v14072_v53 = vpop.eup %12398  ;;  %v6872_v40 = vsel %vm144_vm1, %v14070_v56, 0.0  ;;  %v6844_v6 = vmul.f32 1.442695, %v6814_v36  ;;  %v14162_v36 = vld [vmem:[%s12598_s12 + $0x70] sm:$0xff] }
 0x67b   : > { %6873 = vadd.xlane.f32.xlu1 %v6872_v40  ;;  %v6869_v58 = vsel %vm144_vm1, %v14072_v53, 0.0  ;;  %v6799_v42 = vpop.xlane.xlu0 %6798  ;;  %14958 = vst [vmem:[#allocation35_spill] sm:$0xff] %v14162_v36 }
 0x67c   : > { %12408 = vpow2.f32 %v6842_v51  ;;  %6870 = vadd.xlane.f32.xlu0 %v6869_v58  ;;  %v6815_v39 = vsub.f32 %v13962_v24, %v6799_v42  ;;  %v14120_v24 = vld [vmem:[%s12598_s12 + $0x58] sm:$0xff]  ;;  %v14168_v42 = vpop.permute.xlu1 %8692 }
 0x67d   : > { %v14078_v44 = vpop.eup %12400  ;;  %12410 = vpow2.f32 %v6844_v6 }
 0x67e   : > { %v14080_v13 = vpop.eup %12402  ;;  %v6878_v16 = vsel %vm144_vm1, %v14078_v44, 0.0  ;;  %v6846_v28 = vmul.f32 1.442695, %v6815_v39 }
 0x67f   : > { %6879 = vadd.xlane.f32.xlu1 %v6878_v16  ;;  %v6875_v30 = vsel %vm144_vm1, %v14080_v13, 0.0  ;;  %v14113_v16 = vld [vmem:[%s12598_s12 + $0x48] sm:$0xff]  ;;  %v14170_v39 = vpop.permute.xlu0 %8614 }
 0x680   : > { %6876 = vadd.xlane.f32.xlu0 %v6875_v30  ;;  %12412 = vpow2.f32 %v6846_v28  ;;  %v14125_v30 = vld [vmem:[%s12598_s12 + $0x40] sm:$0xff] }
 0x681   : > { %v14086_v23 = vpop.eup %12404 }
 0x682   : > { %v14088_v26 = vpop.eup %12406  ;;  %v6884_v54 = vsel %vm144_vm1, %v14086_v23, 0.0 }
 0x683   : > { %6885 = vadd.xlane.f32.xlu1 %v6884_v54  ;;  %v6881_v17 = vsel %vm144_vm1, %v14088_v26, 0.0  ;;  %v14134_v54 = vld [vmem:[%s12598_s12 + $0x68] sm:$0xff] }
 0x684   : > { %6882 = vadd.xlane.f32.xlu0 %v6881_v17  ;;  %v14139_v17 = vld [vmem:[%s12598_s12 + $0x50] sm:$0xff] }
 0x686   : > { %v14094_v9 = vpop.eup %12408 }
 0x687   : > { %v6887_v2 = vsel %vm144_vm1, %v14094_v9, 0.0  ;;  %v14104_v51 = vpop.eup %12410 }
 0x688   : > { %6888 = vadd.xlane.f32.xlu0 %v6887_v2  ;;  %v6890_v40 = vsel %vm144_vm1, %v14104_v51, 0.0  ;;  %v14148_v2 = vld [vmem:[%s12598_s12 + $0x78] sm:$0xff] }
 0x689   : > { %14957 = vst [vmem:[#allocation34_spill] sm:$0xff] %v14148_v2 }
 0x68a   : > { %v14108_v58 = vpop.eup %12412 }
 0x68b   : > { %v6893_v12 = vsel %vm144_vm1, %v14108_v58, 0.0 }
 0x694   : > { %8690 = vrot.lane.b32.xlu1 %v13967_v32, %s12561_s22 }
 0x69e   : > { %8612 = vrot.lane.b32.xlu0 %v13972_v8, %s12561_s22 }
 0x6b8   : > { %6891 = vadd.xlane.f32.xlu1 %v6890_v40 }
 0x6bd   : > { %6894 = vadd.xlane.f32.xlu0 %v6893_v12 }
 0x6c9   : > { %8848 = vrot.lane.b32.xlu1 %v14113_v16, %s12560_s21 }
 0x6cd   : > { %8846 = vrot.lane.b32.xlu1 %v14113_v16, %s12561_s22 }
 0x6d1   : > { %9004 = vrot.lane.b32.xlu1 %v14120_v24, %s12560_s21 }
 0x6d3   : > { %8770 = vrot.lane.b32.xlu0 %v14125_v30, %s12560_s21 }
 0x6d5   : > { %9002 = vrot.lane.b32.xlu1 %v14120_v24, %s12561_s22 }
 0x6d7   : > { %8768 = vrot.lane.b32.xlu0 %v14125_v30, %s12561_s22 }
 0x6d9   : > { %9160 = vrot.lane.b32.xlu1 %v14134_v54, %s12560_s21 }
 0x6db   : > { %8926 = vrot.lane.b32.xlu0 %v14139_v17, %s12560_s21 }
 0x6dd   : > { %9158 = vrot.lane.b32.xlu1 %v14134_v54, %s12561_s22 }
 0x6df   : > { %8924 = vrot.lane.b32.xlu0 %v14139_v17, %s12561_s22 }
 0x6e1   : > { %9316 = vrot.lane.b32.xlu1 %v14148_v2, %s12560_s21 }
 0x6e3   : > { %9082 = vrot.lane.b32.xlu0 %v14153_v19, %s12560_s21 }
 0x6e5   : > { %9314 = vrot.lane.b32.xlu1 %v14148_v2, %s12561_s22 }
 0x6e7   : > { %9080 = vrot.lane.b32.xlu0 %v14153_v19, %s12561_s22 }
 0x6eb   : > { %9238 = vrot.lane.b32.xlu0 %v14162_v36, %s12560_s21 }
 0x6ef   : > { %9236 = vrot.lane.b32.xlu0 %v14162_v36, %s12561_s22 }
 0x6f7   : > { %v6850_v6 = vpop.xlane.xlu1 %6849 }
 0x6f8   : > { %12414 = vrcp.f32 %v6850_v6 }
 0x6fb   : > { %v6856_v28 = vpop.xlane.xlu1 %6855 }
 0x6fc   : > { %12416 = vrcp.f32 %v6856_v28  ;;  %v6853_v40 = vpop.xlane.xlu0 %6852 }
 0x6fd   : > { %12418 = vrcp.f32 %v6853_v40 }
 0x700   : > { %v6862_v12 = vpop.xlane.xlu1 %6861 }
 0x701   : > { %12420 = vrcp.f32 %v6862_v12  ;;  %v6859_v18 = vpop.xlane.xlu0 %6858 }
 0x702   : > { %v12415_v60 = vpop.eup %12414  ;;  %12422 = vrcp.f32 %v6859_v18 }
 0x703   : > { %v6897_v61 = vmul.f32 %v12415_v60, %v14035_v57 }
 0x704   : > { %v6868_v1 = vpop.xlane.xlu1 %6867 }
 0x705   : > { %12424 = vrcp.f32 %v6868_v1  ;;  %v6865_v36 = vpop.xlane.xlu0 %6864  ;;  %11993 = vmatmul.mubr.msk.f32.vlgmr.msra.gmra.mrb[80].mxu0 %vm144_vm1, %v6897_v61 }
 0x706   : > { %v12417_v2 = vpop.eup %12416  ;;  %12426 = vrcp.f32 %v6865_v36  ;;  %12001 = vmatpush3.msra.mxu0 %v13976_v14  ;;  %12002 = vmatprep.mubr.msk.f32.mxu0 %vm12551_vm0, %v14919_v4 }
 0x707   : > { %v12419_v6 = vpop.eup %12418  ;;  %12010 = vmatprep.subr.mxu0 %v14919_v4  ;;  %v6901_v28 = vmul.f32 %v12417_v2, %v14041_v31 }
 0x708   : > { %v6874_v18 = vpop.xlane.xlu1 %6873  ;;  %v6899_v60 = vmul.f32 %v12419_v6, %v14043_v37 }
 0x709   : > { %12428 = vrcp.f32 %v6874_v18  ;;  %v6871_v1 = vpop.xlane.xlu0 %6870  ;;  %12003 = vmatmul.mubr.msk.f32.vlgmr.msra.gmra.mrb[82].mxu0 %vm144_vm1, %v6901_v28 }
 0x70a   : > { %12430 = vrcp.f32 %v6871_v1  ;;  %11998 = vmatmul.mubr.msk.f32.vlgmr.msra.gmra.mrb[80].mxu1 %vm144_vm1, %v6899_v60  ;;  %12011 = vmatpush3.msra.mxu0 %v13978_v15 }
 0x70b   : > { %v12421_v61 = vpop.eup %12420  ;;  %12006 = vmatpush3.msra.mxu1 %v13980_v27  ;;  %12007 = vmatprep.mubr.msk.f32.mxu1 %vm12551_vm0, %v14919_v4 }
 0x70c   : > { %v12423_v14 = vpop.eup %12422  ;;  %v6880_v57 = vpop.xlane.xlu1 %6879  ;;  %12012 = vmatprep.mubr.msk.f32.mxu0 %vm12551_vm0, %v14919_v4  ;;  %12015 = vmatprep.subr.mxu1 %v14919_v4  ;;  %v6905_v31 = vmul.f32 %v12421_v61, %v14051_v20 }
 0x70d   : > { %12432 = vrcp.f32 %v6880_v57  ;;  %v6877_v37 = vpop.xlane.xlu0 %6876  ;;  %12020 = vmatprep.subr.mxu0 %v14919_v4  ;;  %v6903_v15 = vmul.f32 %v12423_v14, %v14053_v7  ;;  %v12541_v57 = vld [vmem:[%s12598_s12 + $0x28] sm:$0xff] }
 0x70e   : > { %12434 = vrcp.f32 %v6877_v37  ;;  %12013 = vmatmul.mubr.msk.f32.vlgmr.msra.gmra.mrb[84].mxu0 %vm144_vm1, %v6905_v31 }
 0x70f   : > { %v12425_v27 = vpop.eup %12424  ;;  %12008 = vmatmul.mubr.msk.f32.vlgmr.msra.gmra.mrb[82].mxu1 %vm144_vm1, %v6903_v15  ;;  %12021 = vmatpush3.msra.mxu0 %v13984_v63 }
 0x710   : > { %v12427_v2 = vpop.eup %12426  ;;  %12016 = vmatpush3.msra.mxu1 %v13982_v45  ;;  %v6886_v36 = vpop.xlane.xlu1 %6885  ;;  %12017 = vmatprep.mubr.msk.f32.mxu1 %vm12551_vm0, %v14919_v4  ;;  %v6909_v20 = vmul.f32 %v12425_v27, %v14061_v50 }
 0x711   : > { %12436 = vrcp.f32 %v6886_v36  ;;  %v6883_v40 = vpop.xlane.xlu0 %6882  ;;  %12022 = vmatprep.mubr.msk.f32.mxu0 %vm12551_vm0, %v14919_v4  ;;  %12025 = vmatprep.subr.mxu1 %v14919_v4  ;;  %v6907_v7 = vmul.f32 %v12427_v2, %v14063_v38 }
 0x712   : > { %12438 = vrcp.f32 %v6883_v40  ;;  %12030 = vmatprep.subr.mxu0 %v14919_v4  ;;  %12023 = vmatmul.mubr.msk.f32.vlgmr.msra.gmra.mrb[86].mxu0 %vm144_vm1, %v6909_v20 }
 0x713   : > { %v12429_v45 = vpop.eup %12428  ;;  %12018 = vmatmul.mubr.msk.f32.vlgmr.msra.gmra.mrb[84].mxu1 %vm144_vm1, %v6907_v7  ;;  %12031 = vmatpush3.msra.mxu0 %v13988_v0 }
 0x714   : > { %v12431_v63 = vpop.eup %12430  ;;  %12026 = vmatpush3.msra.mxu1 %v13986_v25  ;;  %12027 = vmatprep.mubr.msk.f32.mxu1 %vm12551_vm0, %v14919_v4  ;;  %v6913_v50 = vmul.f32 %v12429_v45, %v14070_v56 }
 0x715   : > { %v6889_v12 = vpop.xlane.xlu0 %6888  ;;  %12032 = vmatprep.mubr.msk.f32.mxu0 %vm12551_vm0, %v14919_v4  ;;  %12035 = vmatprep.subr.mxu1 %v14919_v4  ;;  %v6911_v38 = vmul.f32 %v12431_v63, %v14072_v53 }
 0x716   : > { %12440 = vrcp.f32 %v6889_v12  ;;  %12040 = vmatprep.subr.mxu0 %v14919_v4  ;;  %12033 = vmatmul.mubr.msk.f32.vlgmr.msra.gmra.mrb[88].mxu0 %vm144_vm1, %v6913_v50 }
 0x717   : > { %v12433_v0 = vpop.eup %12432  ;;  %12028 = vmatmul.mubr.msk.f32.vlgmr.msra.gmra.mrb[86].mxu1 %vm144_vm1, %v6911_v38  ;;  %12041 = vmatpush3.msra.mxu0 %v13992_v49 }
 0x718   : > { %v12435_v25 = vpop.eup %12434  ;;  %12036 = vmatpush3.msra.mxu1 %v13990_v34  ;;  %12037 = vmatprep.mubr.msk.f32.mxu1 %vm12551_vm0, %v14919_v4  ;;  %v6917_v56 = vmul.f32 %v12433_v0, %v14078_v44 }
 0x719   : > { %12042 = vmatprep.mubr.msk.f32.mxu0 %vm12551_vm0, %v14919_v4  ;;  %12045 = vmatprep.subr.mxu1 %v14919_v4  ;;  %v6915_v53 = vmul.f32 %v12435_v25, %v14080_v13 }
 0x71a   : > { %12050 = vmatprep.subr.mxu0 %v14919_v4  ;;  %12043 = vmatmul.mubr.msk.f32.vlgmr.msra.gmra.mrb[90].mxu0 %vm144_vm1, %v6917_v56 }
 0x71b   : > { %v12437_v49 = vpop.eup %12436  ;;  %12038 = vmatmul.mubr.msk.f32.vlgmr.msra.gmra.mrb[88].mxu1 %vm144_vm1, %v6915_v53  ;;  %12051 = vmatpush3.msra.mxu0 %v13996_v29 }
 0x71c   : > { %v12439_v34 = vpop.eup %12438  ;;  %12046 = vmatpush3.msra.mxu1 %v13994_v48  ;;  %12047 = vmatprep.mubr.msk.f32.mxu1 %vm12551_vm0, %v14919_v4  ;;  %v6921_v44 = vmul.f32 %v12437_v49, %v14086_v23  ;;  %v8613_v23 = vpop.permute.xlu0 %8612 }
 0x71d   : > { %12052 = vmatprep.mubr.msk.f32.mxu0 %vm12551_vm0, %v14919_v4  ;;  %12055 = vmatprep.subr.mxu1 %v14919_v4  ;;  %v6919_v13 = vmul.f32 %v12439_v34, %v14088_v26 }
 0x71e   : > { %12060 = vmatprep.subr.mxu0 %v14919_v4  ;;  %12053 = vmatmul.mubr.msk.f32.vlgmr.msra.gmra.mrb[92].mxu0 %vm144_vm1, %v6921_v44 }
 0x71f   : > { %12048 = vmatmul.mubr.msk.f32.vlgmr.msra.gmra.mrb[90].mxu1 %vm144_vm1, %v6919_v13  ;;  %12061 = vmatpush3.msra.mxu0 %v14000_v52 }
 0x720   : > { %v12441_v48 = vpop.eup %12440  ;;  %12056 = vmatpush3.msra.mxu1 %v13998_v46  ;;  %12057 = vmatprep.mubr.msk.f32.mxu1 %vm12551_vm0, %v14919_v4  ;;  %v8691_v46 = vpop.permute.xlu1 %8690 }
 0x721   : > { %12065 = vmatprep.subr.mxu1 %v14919_v4  ;;  %v6923_v29 = vmul.f32 %v12441_v48, %v14094_v9  ;;  %12062 = vmatprep.mubr.msk.f32.mxu0 %vm12551_vm0, %v14919_v4 }
 0x722   : > { %12070 = vmatprep.subr.mxu0 %v14919_v4 }
 0x723   : > { %12058 = vmatmul.mubr.msk.f32.vlgmr.msra.gmra.mrb[92].mxu1 %vm144_vm1, %v6923_v29 }
 0x724   : > { %12066 = vmatpush3.msra.mxu1 %v14002_v47  ;;  %12067 = vmatprep.mubr.msk.f32.mxu1 %vm12551_vm0, %v14919_v4 }
 0x725   : > { %12075 = vmatprep.subr.mxu1 %v14919_v4 }
 0x745   : > { %v6892_v52 = vpop.xlane.xlu1 %6891 }
 0x746   : > { %12442 = vrcp.f32 %v6892_v52 }
 0x749   : > { %v8849_v9 = vpop.permute.xlu1 %8848 }
 0x74a   : > { %v6895_v26 = vpop.xlane.xlu0 %6894 }
 0x74b   : > { %12444 = vrcp.f32 %v6895_v26 }
 0x74d   : > { %v8847_v60 = vpop.permute.xlu1 %8846 }
 0x74e   : > { %v8771_v6 = vpop.permute.xlu0 %8770 }
 0x750   : > { %v12443_v28 = vpop.eup %12442 }
 0x751   : > { %v6925_v18 = vmul.f32 %v12443_v28, %v14104_v51  ;;  %v9005_v51 = vpop.permute.xlu1 %9004 }
 0x752   : > { %v8769_v1 = vpop.permute.xlu0 %8768 }
 0x753   : > { %12063 = vmatmul.mubr.msk.f32.vlgmr.msra.gmra.mrb[94].mxu0 %vm144_vm1, %v6925_v18 }
 0x754   : > { %12071 = vmatpush3.xpose.msk.msra.mxu0 %vm144_vm1, %v14004_v43  ;;  %12072 = vmatprep.mubr.msk.f32.mxu0 %vm12551_vm0, %v14919_v4 }
 0x755   : > { %v12445_v47 = vpop.eup %12444  ;;  %12080 = vmatprep.subr.mxu0 %v14919_v4 }
 0x756   : > { %v6927_v61 = vmul.f32 %v12445_v47, %v14108_v58  ;;  %v8927_v14 = vpop.permute.xlu0 %8926  ;;  %v12538_v58 = vld [vmem:[%s12598_s12 + $0x10] sm:$0xff] }
 0x757   : > { %12073 = vmatmul.mubr.msk.f32.vlgmr.msra.gmra.mrb[96].mxu0 %vm144_vm1, %v14008_v41 }
 0x758   : > { %12068 = vmatmul.mubr.msk.f32.vlgmr.msra.gmra.mrb[94].mxu1 %vm144_vm1, %v6927_v61  ;;  %12081 = vmatpush3.xpose.msk.msra.mxu0 %vm144_vm1, %v14012_v33 }
 0x759   : > { %12076 = vmatpush3.xpose.msk.msra.mxu1 %vm144_vm1, %v14006_v55  ;;  %12082 = vmatprep.mubr.msk.f32.mxu0 %vm12551_vm0, %v14919_v4  ;;  %v9003_v55 = vpop.permute.xlu1 %9002 }
 0x75a   : > { %12090 = vmatprep.subr.mxu0 %v14919_v4  ;;  %12077 = vmatprep.mubr.msk.f32.mxu1 %vm12551_vm0, %v14919_v4  ;;  %v8925_v43 = vpop.permute.xlu0 %8924 }
 0x75b   : > { %12085 = vmatprep.subr.mxu1 %v14919_v4  ;;  %12083 = vmatmul.mubr.msk.f32.vlgmr.msra.gmra.mrb[98].mxu0 %vm144_vm1, %v14016_v3  ;;  %v12536_v3 = vld [vmem:[%s12598_s12] sm:$0xff] }
 0x75c   : > { %12078 = vmatmul.mubr.msk.f32.vlgmr.msra.gmra.mrb[96].mxu1 %vm144_vm1, %v14010_v11  ;;  %12091 = vmatpush3.xpose.msk.msra.mxu0 %vm144_vm1, %v14020_v62 }
 0x75d   : > { %12086 = vmatpush3.xpose.msk.msra.mxu1 %vm144_vm1, %v14014_v59  ;;  %12092 = vmatprep.mubr.msk.f32.mxu0 %vm12551_vm0, %v14919_v4 }
 0x75e   : > { %12100 = vmatprep.subr.mxu0 %v14919_v4  ;;  %12087 = vmatprep.mubr.msk.f32.mxu1 %vm12551_vm0, %v14919_v4  ;;  %v9083_v41 = vpop.permute.xlu0 %9082 }
 0x75f   : > { %12095 = vmatprep.subr.mxu1 %v14919_v4  ;;  %12093 = vmatmul.mubr.msk.f32.vlgmr.msra.gmra.mrb[100].mxu0 %vm144_vm1, %v14024_v35  ;;  %v9161_v35 = vpop.permute.xlu1 %9160 }
 0x760   : > { %12088 = vmatmul.mubr.msk.f32.vlgmr.msra.gmra.mrb[98].mxu1 %vm144_vm1, %v14018_v5  ;;  %12101 = vmatpush3.xpose.msk.msra.mxu0 %vm144_vm1, %v14170_v39  ;;  %v12537_v5 = vld [vmem:[%s12598_s12 + $0x8] sm:$0xff]  ;;  %v12540_v39 = vld [vmem:[%s12598_s12 + $0x20] sm:$0xff] }
 0x761   : > { %12096 = vmatpush3.xpose.msk.msra.mxu1 %vm144_vm1, %v14022_v22  ;;  %12102 = vmatprep.mubr.msk.f32.mxu0 %vm12551_vm0, %v14919_v4 }
 0x762   : > { %12097 = vmatprep.mubr.msk.f32.mxu1 %vm12551_vm0, %v14919_v4  ;;  %12105 = vmatprep.subr.mxu1 %v14919_v4  ;;  %v9081_v62 = vpop.permute.xlu0 %9080 }
 0x763   : > { %12110 = vmatprep.subr.mxu0 %v14919_v4  ;;  %12103 = vmatmul.mubr.msk.f32.vlgmr.msra.gmra.mrb[102].mxu0 %vm144_vm1, %v8613_v23 }
 0x764   : > { %12098 = vmatmul.mubr.msk.f32.vlgmr.msra.gmra.mrb[100].mxu1 %vm144_vm1, %v14026_v21  ;;  %12111 = vmatpush3.xpose.msk.msra.mxu0 %vm144_vm1, %v8771_v6  ;;  %v9159_v21 = vpop.permute.xlu1 %9158 }
 0x765   : > { %12106 = vmatpush3.xpose.msk.msra.mxu1 %vm144_vm1, %v14168_v42  ;;  %12107 = vmatprep.mubr.msk.f32.mxu1 %vm12551_vm0, %v14919_v4  ;;  %v12539_v42 = vld [vmem:[%s12598_s12 + $0x18] sm:$0xff] }
 0x766   : > { %12112 = vmatprep.mubr.msk.f32.mxu0 %vm12551_vm0, %v14919_v4  ;;  %12115 = vmatprep.subr.mxu1 %v14919_v4  ;;  %v9239_v22 = vpop.permute.xlu0 %9238 }
 0x767   : > { %12120 = vmatprep.subr.mxu0 %v14919_v4  ;;  %12113 = vmatmul.mubr.msk.f32.vlgmr.msra.gmra.mrb[104].mxu0 %vm144_vm1, %v8769_v1 }
 0x768   : > { %12108 = vmatmul.mubr.msk.f32.vlgmr.msra.gmra.mrb[102].mxu1 %vm144_vm1, %v8691_v46  ;;  %12121 = vmatpush3.xpose.msk.msra.mxu0 %vm144_vm1, %v8927_v14  ;;  %v9317_v11 = vpop.permute.xlu1 %9316 }
 0x769   : > { %12116 = vmatpush3.xpose.msk.msra.mxu1 %vm144_vm1, %v8849_v9  ;;  %12117 = vmatprep.mubr.msk.f32.mxu1 %vm12551_vm0, %v14919_v4 }
 0x76a   : > { %12122 = vmatprep.mubr.msk.f32.mxu0 %vm12551_vm0, %v14919_v4  ;;  %12125 = vmatprep.subr.mxu1 %v14919_v4  ;;  %v9237_v33 = vpop.permute.xlu0 %9236 }
 0x76b   : > { %12123 = vmatmul.mubr.msk.f32.vlgmr.msra.gmra.mrb[106].mxu0 %vm144_vm1, %v8925_v43  ;;  %12130 = vmatprep.subr.mxu0 %v14919_v4 }
 0x76c   : > { %12118 = vmatmul.mubr.msk.f32.vlgmr.msra.gmra.mrb[104].mxu1 %vm144_vm1, %v8847_v60  ;;  %12131 = vmatpush3.xpose.msk.msra.mxu0 %vm144_vm1, %v9083_v41  ;;  %v9315_v59 = vpop.permute.xlu1 %9314 }
 0x76d   : > { %12126 = vmatpush3.xpose.msk.msra.mxu1 %vm144_vm1, %v9005_v51  ;;  %12127 = vmatprep.mubr.msk.f32.mxu1 %vm12551_vm0, %v14919_v4 }
 0x76e   : > { %12132 = vmatprep.mubr.msk.f32.mxu0 %vm12551_vm0, %v14919_v4  ;;  %12135 = vmatprep.subr.mxu1 %v14919_v4 }
 0x76f   : > { %12133 = vmatmul.mubr.msk.f32.vlgmr.msra.gmra.mrb[108].mxu0 %vm144_vm1, %v9081_v62  ;;  %12140 = vmatprep.subr.mxu0 %v14919_v4 }
 0x770   : > { %12128 = vmatmul.mubr.msk.f32.vlgmr.msra.gmra.mrb[106].mxu1 %vm144_vm1, %v9003_v55  ;;  %12141 = vmatpush3.xpose.msk.msra.mxu0 %vm144_vm1, %v9239_v22 }
 0x771   : > { %12136 = vmatpush3.xpose.msk.msra.mxu1 %vm144_vm1, %v9161_v35  ;;  %12137 = vmatprep.mubr.msk.f32.mxu1 %vm12551_vm0, %v14919_v4 }
 0x772   : > { %12142 = vmatprep.mubr.msk.f32.mxu0 %vm12551_vm0, %v14919_v4  ;;  %12145 = vmatprep.subr.mxu1 %v14919_v4 }
 0x773   : > { %12143 = vmatmul.mubr.msk.f32.vlgmr.msra.gmra.mrb[110].mxu0 %vm144_vm1, %v9237_v33  ;;  %12150 = vmatprep.subr.mxu0 %v14919_v4 }
 0x774   : > { %12138 = vmatmul.mubr.msk.f32.vlgmr.msra.gmra.mrb[108].mxu1 %vm144_vm1, %v9159_v21  ;;  %12152 = vmatprep.mubr.msk.f32.mxu0 %vm12551_vm0, %v14919_v4 }
 0x775   : > { %12146 = vmatpush3.xpose.msk.msra.mxu1 %vm144_vm1, %v9317_v11  ;;  %12147 = vmatprep.mubr.msk.f32.mxu1 %vm12551_vm0, %v14919_v4 }
 0x776   : > { %12155 = vmatprep.subr.mxu1 %v14919_v4  ;;  %9600 = vrot.lane.b32.xlu1 %v12536_v3, %s12562_s23 }
 0x777   : > { %9676 = vrot.lane.b32.xlu0 %v12537_v5, %s12562_s23 }
 0x778   : > { %12148 = vmatmul.mubr.msk.f32.vlgmr.msra.gmra.mrb[110].mxu1 %vm144_vm1, %v9315_v59 }
 0x779   : > { %12157 = vmatprep.mubr.msk.f32.mxu1 %vm12551_vm0, %v14919_v4 }
 0x77a   : > { %9752 = vrot.lane.b32.xlu1 %v12538_v58, %s12562_s23 }
 0x77b   : > { %9828 = vrot.lane.b32.xlu0 %v12539_v42, %s12562_s23 }
 0x77e   : > { %9904 = vrot.lane.b32.xlu1 %v12540_v39, %s12562_s23 }
 0x77f   : > { %10056 = vrot.lane.b32.xlu0 %v13972_v8, %s12562_s23 }
 0x782   : > { %9980 = vrot.lane.b32.xlu1 %v12541_v57, %s12562_s23 }
 0x783   : > { %10208 = vrot.lane.b32.xlu0 %v14125_v30, %s12562_s23 }
 0x786   : > { %10132 = vrot.lane.b32.xlu1 %v13967_v32, %s12562_s23 }
 0x78a   : > { %10284 = vrot.lane.b32.xlu1 %v14113_v16, %s12562_s23 }
 0x7d8   : > { %v14378_v31 = vpop.f32.mrb[80].mxu0 }
 0x7d9   : > { %v11994_v37 = vpop.f32.mrb[81].mxu0 }
 0x7dc   : > { %v14380_v15 = vpop.f32.mrb[82].mxu0 }
 0x7dd   : > { %v14382_v27 = vpop.f32.mrb[80].mxu1  ;;  %v12004_v8 = vpop.f32.mrb[83].mxu0 }
 0x7de   : > { %v11999_v2 = vpop.f32.mrb[81].mxu1 }
 0x7e1   : > { %v14384_v36 = vpop.f32.mrb[84].mxu0 }
 0x7e2   : > { %v14386_v20 = vpop.f32.mrb[82].mxu1  ;;  %v12014_v30 = vpop.f32.mrb[85].mxu0 }
 0x7e3   : > { %v12009_v40 = vpop.f32.mrb[83].mxu1 }
 0x7e5   : > { %v14388_v7 = vpop.f32.mrb[86].mxu0 }
 0x7e6   : > { %v14390_v32 = vpop.f32.mrb[84].mxu1  ;;  %v12024_v16 = vpop.f32.mrb[87].mxu0 }
 0x7e7   : > { %v12019_v45 = vpop.f32.mrb[85].mxu1 }
 0x7e8   : > { %v9601_v0 = vpop.permute.xlu1 %9600 }
 0x7e9   : > { %v14392_v63 = vpop.f32.mrb[88].mxu0  ;;  %12151 = vmatpush3.msra.mxu0 %v9601_v0  ;;  %v9677_v25 = vpop.permute.xlu0 %9676 }
 0x7ea   : > { %v14394_v50 = vpop.f32.mrb[86].mxu1  ;;  %v12034_v12 = vpop.f32.mrb[89].mxu0  ;;  %12156 = vmatpush3.msra.mxu1 %v9677_v25  ;;  %12160 = vmatprep.subr.mxu0 %v14919_v4 }
 0x7eb   : > { %v12029_v38 = vpop.f32.mrb[87].mxu1  ;;  %12165 = vmatprep.subr.mxu1 %v14919_v4 }
 0x7ed   : > { %v14396_v56 = vpop.f32.mrb[90].mxu0 }
 0x7ee   : > { %v14399_v53 = vpop.f32.mrb[88].mxu1  ;;  %v12044_v49 = vpop.f32.mrb[91].mxu0 }
 0x7ef   : > { %v12039_v34 = vpop.f32.mrb[89].mxu1 }
 0x7f1   : > { %v14402_v44 = vpop.f32.mrb[92].mxu0 }
 0x7f2   : > { %v14404_v13 = vpop.f32.mrb[90].mxu1  ;;  %v12054_v48 = vpop.f32.mrb[93].mxu0 }
 0x7f3   : > { %v12049_v29 = vpop.f32.mrb[91].mxu1 }
 0x7f6   : > { %v14406_v46 = vpop.f32.mrb[92].mxu1 }
 0x7f7   : > { %v12059_v52 = vpop.f32.mrb[93].mxu1 }
 0x826   : > { %v14408_v23 = vpop.f32.mrb[94].mxu0 }
 0x827   : > { %v12064_v26 = vpop.f32.mrb[95].mxu0 }
 0x82a   : > { %v8218_v9 = vpop.f32.mrb[96].mxu0 }
 0x82b   : > { %v14410_v6 = vpop.f32.mrb[94].mxu1  ;;  %v9392_v28 = vmul.f32 0.35355338, %v8218_v9  ;;  %v12074_v18 = vpop.f32.mrb[97].mxu0 }
 0x82c   : > { %v12069_v60 = vpop.f32.mrb[95].mxu1 }
 0x82d   : > { %v14414_v1 = vsel %vm12794_vm2, %v9392_v28, -32767.0 }
 0x82e   : > { %v8374_v47 = vpop.f32.mrb[98].mxu0  ;;  %v9424_v61 = vsel %vm144_vm1, %v14414_v1, -inf }
 0x82f   : > { %v8296_v14 = vpop.f32.mrb[96].mxu1  ;;  %v9394_v51 = vmul.f32 0.35355338, %v8374_v47  ;;  %v12084_v43 = vpop.f32.mrb[99].mxu0  ;;  %9425 = vmax.xlane.f32.xlu0 %v9424_v61 }
 0x830   : > { %v9393_v55 = vmul.f32 0.35355338, %v8296_v14  ;;  %v12079_v41 = vpop.f32.mrb[97].mxu1 }
 0x831   : > { %v14420_v35 = vsel %vm12794_vm2, %v9394_v51, -32767.0 }
 0x832   : > { %v14424_v62 = vsel %vm12794_vm2, %v9393_v55, -32767.0  ;;  %v8530_v21 = vpop.f32.mrb[100].mxu0  ;;  %v9430_v22 = vsel %vm144_vm1, %v14420_v35, -inf }
 0x833   : > { %v8452_v11 = vpop.f32.mrb[98].mxu1  ;;  %v9396_v33 = vmul.f32 0.35355338, %v8530_v21  ;;  %v12094_v59 = vpop.f32.mrb[101].mxu0  ;;  %9431 = vmax.xlane.f32.xlu0 %v9430_v22  ;;  %v9427_v3 = vsel %vm144_vm1, %v14424_v62, -inf }
 0x834   : > { %v9395_v5 = vmul.f32 0.35355338, %v8452_v11  ;;  %9428 = vmax.xlane.f32.xlu1 %v9427_v3  ;;  %v12089_v58 = vpop.f32.mrb[99].mxu1 }
 0x835   : > { %v14432_v42 = vsel %vm12794_vm2, %v9396_v33, -32767.0 }
 0x836   : > { %v14436_v39 = vsel %vm12794_vm2, %v9395_v5, -32767.0  ;;  %v8686_v57 = vpop.f32.mrb[102].mxu0  ;;  %v9436_v37 = vsel %vm144_vm1, %v14432_v42, -inf }
 0x837   : > { %v8608_v8 = vpop.f32.mrb[100].mxu1  ;;  %v9398_v2 = vmul.f32 0.35355338, %v8686_v57  ;;  %v12104_v30 = vpop.f32.mrb[103].mxu0  ;;  %v9433_v40 = vsel %vm144_vm1, %v14436_v39, -inf }
 0x838   : > { %v9397_v16 = vmul.f32 0.35355338, %v8608_v8  ;;  %9437 = vmax.xlane.f32.xlu1 %v9436_v37  ;;  %9434 = vmax.xlane.f32.xlu0 %v9433_v40  ;;  %v12099_v45 = vpop.f32.mrb[101].mxu1 }
 0x839   : > { %v14444_v12 = vsel %vm12794_vm2, %v9398_v2, -32767.0 }
 0x83a   : > { %v14448_v38 = vsel %vm12794_vm2, %v9397_v16, -32767.0  ;;  %v8842_v0 = vpop.f32.mrb[104].mxu0  ;;  %v9442_v25 = vsel %vm144_vm1, %v14444_v12, -inf }
 0x83b   : > { %v8764_v49 = vpop.f32.mrb[102].mxu1  ;;  %v9400_v34 = vmul.f32 0.35355338, %v8842_v0  ;;  %v9439_v48 = vsel %vm144_vm1, %v14448_v38, -inf  ;;  %v12114_v29 = vpop.f32.mrb[105].mxu0 }
 0x83c   : > { %v9399_v52 = vmul.f32 0.35355338, %v8764_v49  ;;  %9443 = vmax.xlane.f32.xlu1 %v9442_v25  ;;  %9440 = vmax.xlane.f32.xlu0 %v9439_v48  ;;  %v12109_v26 = vpop.f32.mrb[103].mxu1 }
 0x83d   : > { %v14456_v9 = vsel %vm12794_vm2, %v9400_v34, -32767.0 }
 0x83e   : > { %v14460_v28 = vsel %vm12794_vm2, %v9399_v52, -32767.0  ;;  %v8998_v18 = vpop.f32.mrb[106].mxu0  ;;  %v9448_v60 = vsel %vm144_vm1, %v14456_v9, -inf }
 0x83f   : > { %v8920_v47 = vpop.f32.mrb[104].mxu1  ;;  %v9402_v61 = vmul.f32 0.35355338, %v8998_v18  ;;  %v9445_v14 = vsel %vm144_vm1, %v14460_v28, -inf  ;;  %v12124_v51 = vpop.f32.mrb[107].mxu0 }
 0x840   : > { %v9401_v43 = vmul.f32 0.35355338, %v8920_v47  ;;  %9446 = vmax.xlane.f32.xlu0 %v9445_v14  ;;  %v12119_v55 = vpop.f32.mrb[105].mxu1  ;;  %9449 = vmax.xlane.f32.xlu1 %v9448_v60  ;;  %v14516_v14 = vpop.permute.xlu1 %9752 }
 0x841   : > { %v14468_v41 = vsel %vm12794_vm2, %v9402_v61, -32767.0  ;;  %v14520_v51 = vpop.permute.xlu0 %9828 }
 0x842   : > { %v14472_v21 = vsel %vm12794_vm2, %v9401_v43, -32767.0  ;;  %v9154_v22 = vpop.f32.mrb[108].mxu0  ;;  %v9454_v11 = vsel %vm144_vm1, %v14468_v41, -inf }
 0x843   : > { %v9076_v33 = vpop.f32.mrb[106].mxu1  ;;  %v9404_v59 = vmul.f32 0.35355338, %v9154_v22  ;;  %v9451_v3 = vsel %vm144_vm1, %v14472_v21, -inf  ;;  %v12134_v5 = vpop.f32.mrb[109].mxu0 }
 0x844   : > { %v9403_v58 = vmul.f32 0.35355338, %v9076_v33  ;;  %9452 = vmax.xlane.f32.xlu0 %v9451_v3  ;;  %v12129_v57 = vpop.f32.mrb[107].mxu1  ;;  %9455 = vmax.xlane.f32.xlu1 %v9454_v11  ;;  %v14518_v10 = vpop.permute.xlu1 %9904 }
 0x845   : > { %v14480_v37 = vsel %vm12794_vm2, %v9404_v59, -32767.0  ;;  %v14524_v55 = vpop.permute.xlu0 %10056 }
 0x846   : > { %v14484_v8 = vsel %vm12794_vm2, %v9403_v58, -32767.0  ;;  %v9310_v2 = vpop.f32.mrb[110].mxu0  ;;  %v9460_v30 = vsel %vm144_vm1, %v14480_v37, -inf }
 0x847   : > { %v9232_v40 = vpop.f32.mrb[108].mxu1  ;;  %v9406_v16 = vmul.f32 0.35355338, %v9310_v2  ;;  %v9457_v45 = vsel %vm144_vm1, %v14484_v8, -inf  ;;  %v12144_v0 = vpop.f32.mrb[111].mxu0 }
 0x848   : > { %v9405_v25 = vmul.f32 0.35355338, %v9232_v40  ;;  %9458 = vmax.xlane.f32.xlu0 %v9457_v45  ;;  %v12139_v49 = vpop.f32.mrb[109].mxu1  ;;  %9461 = vmax.xlane.f32.xlu1 %v9460_v30  ;;  %v14522_v43 = vpop.permute.xlu1 %9980 }
 0x849   : > { %v14492_v34 = vsel %vm12794_vm2, %v9406_v16, -32767.0  ;;  %v14528_v22 = vpop.permute.xlu0 %10208 }
 0x84a   : > { %v14496_v48 = vsel %vm12794_vm2, %v9405_v25, -32767.0  ;;  %v9466_v29 = vsel %vm144_vm1, %v14492_v34, -inf }
 0x84b   : > { %v9388_v52 = vpop.f32.mrb[110].mxu1  ;;  %v9463_v26 = vsel %vm144_vm1, %v14496_v48, -inf }
 0x84c   : > { %v9407_v18 = vmul.f32 0.35355338, %v9388_v52  ;;  %9464 = vmax.xlane.f32.xlu0 %v9463_v26  ;;  %v12149_v60 = vpop.f32.mrb[111].mxu1  ;;  %9467 = vmax.xlane.f32.xlu1 %v9466_v29 }
 0x84e   : > { %v14504_v47 = vsel %vm12794_vm2, %v9407_v18, -32767.0 }
 0x84f   : > { %v9469_v61 = vsel %vm144_vm1, %v14504_v47, -inf }
 0x850   : > { %9470 = vmax.xlane.f32.xlu0 %v9469_v61 }
 0x85d   : > { %10436 = vrot.lane.b32.xlu1 %v14120_v24, %s12562_s23  ;;  %v14526_v24 = vpop.permute.xlu1 %10132 }
 0x861   : > { %10588 = vrot.lane.b32.xlu1 %v14134_v54, %s12562_s23  ;;  %v14530_v11 = vpop.permute.xlu1 %10284 }
 0x866   : > { %10360 = vrot.lane.b32.xlu0 %v14139_v17, %s12562_s23 }
 0x86a   : > { %10512 = vrot.lane.b32.xlu0 %v14153_v19, %s12562_s23 }
 0x8bc   : > { %v9426_v54 = vpop.xlane.xlu0 %9425 }
 0x8bd   : > { %v9472_v17 = vsub.f32 %v14414_v1, %v9426_v54 }
 0x8bf   : > { %v9488_v19 = vmul.f32 1.442695, %v9472_v17 }
 0x8c0   : > { %v9432_v33 = vpop.xlane.xlu0 %9431 }
 0x8c1   : > { %12446 = vpow2.f32 %v9488_v19  ;;  %v9429_v59 = vpop.xlane.xlu1 %9428  ;;  %v9474_v3 = vsub.f32 %v14420_v35, %v9432_v33 }
 0x8c2   : > { %v9473_v5 = vsub.f32 %v14424_v62, %v9429_v59 }
 0x8c3   : > { %v9492_v58 = vmul.f32 1.442695, %v9474_v3 }
 0x8c4   : > { %v9490_v57 = vmul.f32 1.442695, %v9473_v5 }
 0x8c5   : > { %12448 = vpow2.f32 %v9492_v58  ;;  %v9438_v2 = vpop.xlane.xlu1 %9437  ;;  %v9435_v30 = vpop.xlane.xlu0 %9434 }
 0x8c6   : > { %12450 = vpow2.f32 %v9490_v57  ;;  %v9476_v40 = vsub.f32 %v14432_v42, %v9438_v2  ;;  %v9475_v16 = vsub.f32 %v14436_v39, %v9435_v30 }
 0x8c8   : > { %v9496_v45 = vmul.f32 1.442695, %v9476_v40  ;;  %v9494_v1 = vmul.f32 1.442695, %v9475_v16 }
 0x8c9   : > { %v9444_v0 = vpop.xlane.xlu1 %9443  ;;  %v9441_v25 = vpop.xlane.xlu0 %9440 }
 0x8ca   : > { %12452 = vpow2.f32 %v9496_v45  ;;  %v9478_v49 = vsub.f32 %v14444_v12, %v9444_v0  ;;  %v9477_v35 = vsub.f32 %v14448_v38, %v9441_v25 }
 0x8cb   : > { %v14539_v62 = vpop.eup %12446  ;;  %12454 = vpow2.f32 %v9494_v1 }
 0x8cc   : > { %v9500_v29 = vmul.f32 1.442695, %v9478_v49  ;;  %v9498_v52 = vmul.f32 1.442695, %v9477_v35  ;;  %v9520_v26 = vsel %vm144_vm1, %v14539_v62, 0.0 }
 0x8cd   : > { %v9450_v42 = vpop.xlane.xlu1 %9449  ;;  %v9447_v18 = vpop.xlane.xlu0 %9446  ;;  %9521 = vadd.xlane.f32.xlu1 %v9520_v26 }
 0x8ce   : > { %12456 = vpow2.f32 %v9500_v29  ;;  %v9480_v39 = vsub.f32 %v14456_v9, %v9450_v42  ;;  %v9479_v60 = vsub.f32 %v14460_v28, %v9447_v18 }
 0x8cf   : > { %v14545_v61 = vpop.eup %12448  ;;  %12458 = vpow2.f32 %v9498_v52 }
 0x8d0   : > { %v14547_v12 = vpop.eup %12450  ;;  %v9504_v38 = vmul.f32 1.442695, %v9480_v39  ;;  %v9502_v54 = vmul.f32 1.442695, %v9479_v60  ;;  %v9526_v17 = vsel %vm144_vm1, %v14545_v61, 0.0 }
 0x8d1   : > { %v9456_v19 = vpop.xlane.xlu1 %9455  ;;  %v9453_v33 = vpop.xlane.xlu0 %9452  ;;  %v9523_v59 = vsel %vm144_vm1, %v14547_v12, 0.0  ;;  %9527 = vadd.xlane.f32.xlu1 %v9526_v17 }
 0x8d2   : > { %12460 = vpow2.f32 %v9504_v38  ;;  %v9482_v9 = vsub.f32 %v14468_v41, %v9456_v19  ;;  %v9481_v28 = vsub.f32 %v14472_v21, %v9453_v33  ;;  %9524 = vadd.xlane.f32.xlu0 %v9523_v59 }
 0x8d3   : > { %12462 = vpow2.f32 %v9502_v54 }
 0x8d4   : > { %v14555_v3 = vpop.eup %12452  ;;  %v9508_v5 = vmul.f32 1.442695, %v9482_v9  ;;  %v9506_v58 = vmul.f32 1.442695, %v9481_v28 }
 0x8d5   : > { %v14557_v57 = vpop.eup %12454  ;;  %v9462_v2 = vpop.xlane.xlu1 %9461  ;;  %v9532_v40 = vsel %vm144_vm1, %v14555_v3, 0.0 }
 0x8d6   : > { %v9459_v30 = vpop.xlane.xlu0 %9458  ;;  %12464 = vpow2.f32 %v9508_v5  ;;  %v9484_v16 = vsub.f32 %v14480_v37, %v9462_v2  ;;  %9533 = vadd.xlane.f32.xlu1 %v9532_v40  ;;  %v9529_v21 = vsel %vm144_vm1, %v14557_v57, 0.0 }
 0x8d7   : > { %v9483_v41 = vsub.f32 %v14484_v8, %v9459_v30  ;;  %12466 = vpow2.f32 %v9506_v58  ;;  %9530 = vadd.xlane.f32.xlu0 %v9529_v21  ;;  %v14959_v21 = vld [vmem:[#allocation34_spill] sm:$0xff] }
 0x8d8   : > { %v14565_v45 = vpop.eup %12456  ;;  %v9512_v1 = vmul.f32 1.442695, %v9484_v16 }
 0x8d9   : > { %v9510_v0 = vmul.f32 1.442695, %v9483_v41  ;;  %v14567_v25 = vpop.eup %12458  ;;  %v9468_v49 = vpop.xlane.xlu1 %9467  ;;  %v9538_v29 = vsel %vm144_vm1, %v14565_v45, 0.0 }
 0x8da   : > { %v9465_v35 = vpop.xlane.xlu0 %9464  ;;  %12468 = vpow2.f32 %v9512_v1  ;;  %v9486_v37 = vsub.f32 %v14492_v34, %v9468_v49  ;;  %9539 = vadd.xlane.f32.xlu1 %v9538_v29  ;;  %v9535_v52 = vsel %vm144_vm1, %v14567_v25, 0.0  ;;  %v14960_v1 = vld [vmem:[#allocation20_spill] sm:$0xff]  ;;  %v14962_v49 = vld [vmem:[#allocation35_spill] sm:$0xff]  ;;  %v14964_v29 = vld [vmem:[#allocation2_spill] sm:$0xff] }
 0x8db   : > { %v9485_v8 = vsub.f32 %v14496_v48, %v9465_v35  ;;  %12470 = vpow2.f32 %v9510_v0  ;;  %9536 = vadd.xlane.f32.xlu0 %v9535_v52  ;;  %v14961_v0 = vld [vmem:[#allocation22_spill] sm:$0xff]  ;;  %v14963_v35 = vld [vmem:[#allocation24_spill] sm:$0xff] }
 0x8dc   : > { %v14575_v26 = vpop.eup %12460  ;;  %v9516_v42 = vmul.f32 1.442695, %v9486_v37  ;;  %v14965_v37 = vld [vmem:[#allocation26_spill] sm:$0xff]  ;;  %v14967_v52 = vld [vmem:[#allocation28_spill] sm:$0xff] }
 0x8dd   : > { %v9514_v18 = vmul.f32 1.442695, %v9485_v8  ;;  %v14577_v39 = vpop.eup %12462  ;;  %v9544_v38 = vsel %vm144_vm1, %v14575_v26, 0.0  ;;  %v14966_v8 = vld [vmem:[#allocation19_spill] sm:$0xff] }
 0x8de   : > { %v9471_v60 = vpop.xlane.xlu0 %9470  ;;  %12472 = vpow2.f32 %v9516_v42  ;;  %9545 = vadd.xlane.f32.xlu1 %v9544_v38  ;;  %v9541_v48 = vsel %vm144_vm1, %v14577_v39, 0.0  ;;  %v14968_v42 = vld [vmem:[#allocation21_spill] sm:$0xff]  ;;  %v14971_v38 = vld [vmem:[#allocation32_spill] sm:$0xff] }
 0x8df   : > { %v9487_v34 = vsub.f32 %v14504_v47, %v9471_v60  ;;  %12474 = vpow2.f32 %v9514_v18  ;;  %9542 = vadd.xlane.f32.xlu0 %v9541_v48  ;;  %v14969_v18 = vld [vmem:[#allocation30_spill] sm:$0xff]  ;;  %v14970_v60 = vld [vmem:[#allocation23_spill] sm:$0xff]  ;;  %v14973_v48 = vld [vmem:[#allocation33_spill] sm:$0xff] }
 0x8e0   : > { %v14584_v54 = vpop.eup %12464 }
 0x8e1   : > { %v9518_v17 = vmul.f32 1.442695, %v9487_v34  ;;  %v14586_v19 = vpop.eup %12466  ;;  %v9550_v33 = vsel %vm144_vm1, %v14584_v54, 0.0  ;;  %v14972_v34 = vld [vmem:[#allocation25_spill] sm:$0xff] }
 0x8e2   : > { %9551 = vadd.xlane.f32.xlu1 %v9550_v33  ;;  %v9547_v59 = vsel %vm144_vm1, %v14586_v19, 0.0  ;;  %v14975_v33 = vld [vmem:[#allocation29_spill] sm:$0xff] }
 0x8e3   : > { %12476 = vpow2.f32 %v9518_v17  ;;  %9548 = vadd.xlane.f32.xlu0 %v9547_v59  ;;  %v14974_v17 = vld [vmem:[#allocation27_spill] sm:$0xff] }
 0x8e4   : > { %v14592_v47 = vpop.eup %12468  ;;  %v14976_v59 = vld [vmem:[#allocation31_spill] sm:$0xff] }
 0x8e5   : > { %v14594_v9 = vpop.eup %12470  ;;  %v9556_v28 = vsel %vm144_vm1, %v14592_v47, 0.0 }
 0x8e6   : > { %9557 = vadd.xlane.f32.xlu1 %v9556_v28  ;;  %v9553_v5 = vsel %vm144_vm1, %v14594_v9, 0.0 }
 0x8e7   : > { %9554 = vadd.xlane.f32.xlu0 %v9553_v5 }
 0x8e8   : > { %v14600_v58 = vpop.eup %12472 }
 0x8e9   : > { %v14602_v2 = vpop.eup %12474  ;;  %v9562_v30 = vsel %vm144_vm1, %v14600_v58, 0.0 }
 0x8ea   : > { %9563 = vadd.xlane.f32.xlu1 %v9562_v30  ;;  %v9559_v40 = vsel %vm144_vm1, %v14602_v2, 0.0 }
 0x8eb   : > { %9560 = vadd.xlane.f32.xlu0 %v9559_v40 }
 0x8ed   : > { %v14608_v16 = vpop.eup %12476 }
 0x8ee   : > { %v9565_v41 = vsel %vm144_vm1, %v14608_v16, 0.0 }
 0x8ef   : > { %9566 = vadd.xlane.f32.xlu0 %v9565_v41 }
 0x8fb   : > { %10740 = vrot.lane.b32.xlu1 %v14959_v21, %s12562_s23 }
 0x8ff   : > { %10834 = vrot.lane.b32.xlu1 %v14960_v1, %s12563_s24 }
 0x903   : > { %10838 = vrot.lane.b32.xlu1 %v14961_v0, %s12563_s24 }
 0x905   : > { %10664 = vrot.lane.b32.xlu0 %v14962_v49, %s12562_s23 }
 0x907   : > { %10842 = vrot.lane.b32.xlu1 %v14963_v35, %s12563_s24 }
 0x909   : > { %10832 = vrot.lane.b32.xlu0 %v14964_v29, %s12563_s24 }
 0x90b   : > { %10846 = vrot.lane.b32.xlu1 %v14965_v37, %s12563_s24 }
 0x90d   : > { %10836 = vrot.lane.b32.xlu0 %v14966_v8, %s12563_s24 }
 0x90f   : > { %10850 = vrot.lane.b32.xlu1 %v14967_v52, %s12563_s24 }
 0x911   : > { %10840 = vrot.lane.b32.xlu0 %v14968_v42, %s12563_s24 }
 0x913   : > { %10854 = vrot.lane.b32.xlu1 %v14969_v18, %s12563_s24 }
 0x915   : > { %10844 = vrot.lane.b32.xlu0 %v14970_v60, %s12563_s24 }
 0x917   : > { %10858 = vrot.lane.b32.xlu1 %v14971_v38, %s12563_s24 }
 0x919   : > { %10848 = vrot.lane.b32.xlu0 %v14972_v34, %s12563_s24 }
 0x91b   : > { %10862 = vrot.lane.b32.xlu1 %v14973_v48, %s12563_s24 }
 0x91d   : > { %10852 = vrot.lane.b32.xlu0 %v14974_v17, %s12563_s24 }
 0x91f   : > { %10898 = vrot.lane.b32.xlu1 %v14382_v27, %s12564_s25 }
 0x921   : > { %10856 = vrot.lane.b32.xlu0 %v14975_v33, %s12563_s24 }
 0x923   : > { %10902 = vrot.lane.b32.xlu1 %v14386_v20, %s12564_s25 }
 0x925   : > { %10860 = vrot.lane.b32.xlu0 %v14976_v59, %s12563_s24 }
 0x927   : > { %10906 = vrot.lane.b32.xlu1 %v14390_v32, %s12564_s25 }
 0x929   : > { %10896 = vrot.lane.b32.xlu0 %v14378_v31, %s12564_s25  ;;  %v14648_v31 = vpop.permute.xlu1 %10436 }
 0x92b   : > { %10910 = vrot.lane.b32.xlu1 %v14394_v50, %s12564_s25 }
 0x92d   : > { %10900 = vrot.lane.b32.xlu0 %v14380_v15, %s12564_s25  ;;  %v14650_v15 = vpop.permute.xlu0 %10360  ;;  %v14652_v27 = vpop.permute.xlu1 %10588 }
 0x92f   : > { %10914 = vrot.lane.b32.xlu1 %v14399_v53, %s12564_s25 }
 0x931   : > { %10904 = vrot.lane.b32.xlu0 %v14384_v36, %s12564_s25  ;;  %v14654_v20 = vpop.permute.xlu0 %10512 }
 0x933   : > { %10918 = vrot.lane.b32.xlu1 %v14404_v13, %s12564_s25 }
 0x935   : > { %10908 = vrot.lane.b32.xlu0 %v14388_v7, %s12564_s25 }
 0x937   : > { %10922 = vrot.lane.b32.xlu1 %v14406_v46, %s12564_s25 }
 0x939   : > { %10912 = vrot.lane.b32.xlu0 %v14392_v63, %s12564_s25 }
 0x93b   : > { %10926 = vrot.lane.b32.xlu1 %v14410_v6, %s12564_s25 }
 0x93d   : > { %10916 = vrot.lane.b32.xlu0 %v14396_v56, %s12564_s25 }
 0x941   : > { %10920 = vrot.lane.b32.xlu0 %v14402_v44, %s12564_s25 }
 0x945   : > { %10924 = vrot.lane.b32.xlu0 %v14408_v23, %s12564_s25 }
 0x95a   : > { %v9522_v36 = vpop.xlane.xlu1 %9521 }
 0x95b   : > { %12478 = vrcp.f32 %v9522_v36 }
 0x95e   : > { %v9528_v7 = vpop.xlane.xlu1 %9527 }
 0x95f   : > { %12480 = vrcp.f32 %v9528_v7  ;;  %v9525_v32 = vpop.xlane.xlu0 %9524 }
 0x960   : > { %12482 = vrcp.f32 %v9525_v32 }
 0x963   : > { %v9534_v63 = vpop.xlane.xlu1 %9533 }
 0x964   : > { %12484 = vrcp.f32 %v9534_v63  ;;  %v9531_v50 = vpop.xlane.xlu0 %9530 }
 0x965   : > { %v12479_v56 = vpop.eup %12478  ;;  %12486 = vrcp.f32 %v9531_v50 }
 0x966   : > { %v9569_v53 = vmul.f32 %v12479_v56, %v14539_v62 }
 0x967   : > { %v9540_v44 = vpop.xlane.xlu1 %9539 }
 0x968   : > { %12488 = vrcp.f32 %v9540_v44  ;;  %v9537_v13 = vpop.xlane.xlu0 %9536  ;;  %12153 = vmatmul.mubr.msk.f32.vlgmr.msra.gmra.mrb[112].mxu0 %vm144_vm1, %v9569_v53 }
 0x969   : > { %v12481_v46 = vpop.eup %12480  ;;  %12490 = vrcp.f32 %v9537_v13  ;;  %12161 = vmatpush3.msra.mxu0 %v14516_v14  ;;  %12162 = vmatprep.mubr.msk.f32.mxu0 %vm12551_vm0, %v14919_v4 }
 0x96a   : > { %v12483_v23 = vpop.eup %12482  ;;  %v9573_v6 = vmul.f32 %v12481_v46, %v14545_v61  ;;  %12170 = vmatprep.subr.mxu0 %v14919_v4 }
 0x96b   : > { %v9571_v28 = vmul.f32 %v12483_v23, %v14547_v12  ;;  %v9546_v62 = vpop.xlane.xlu1 %9545 }
 0x96c   : > { %12492 = vrcp.f32 %v9546_v62  ;;  %v9543_v5 = vpop.xlane.xlu0 %9542  ;;  %12163 = vmatmul.mubr.msk.f32.vlgmr.msra.gmra.mrb[114].mxu0 %vm144_vm1, %v9573_v6 }
 0x96d   : > { %12494 = vrcp.f32 %v9543_v5  ;;  %12158 = vmatmul.mubr.msk.f32.vlgmr.msra.gmra.mrb[112].mxu1 %vm144_vm1, %v9571_v28  ;;  %12171 = vmatpush3.msra.mxu0 %v14518_v10 }
 0x96e   : > { %v12485_v14 = vpop.eup %12484  ;;  %12166 = vmatpush3.msra.mxu1 %v14520_v51  ;;  %12167 = vmatprep.mubr.msk.f32.mxu1 %vm12551_vm0, %v14919_v4 }
 0x96f   : > { %v12487_v61 = vpop.eup %12486  ;;  %v9577_v30 = vmul.f32 %v12485_v14, %v14555_v3  ;;  %v9552_v12 = vpop.xlane.xlu1 %9551  ;;  %12172 = vmatprep.mubr.msk.f32.mxu0 %vm12551_vm0, %v14919_v4  ;;  %12175 = vmatprep.subr.mxu1 %v14919_v4 }
 0x970   : > { %v9575_v40 = vmul.f32 %v12487_v61, %v14557_v57  ;;  %12496 = vrcp.f32 %v9552_v12  ;;  %v9549_v41 = vpop.xlane.xlu0 %9548  ;;  %12180 = vmatprep.subr.mxu0 %v14919_v4 }
 0x971   : > { %12498 = vrcp.f32 %v9549_v41  ;;  %12173 = vmatmul.mubr.msk.f32.vlgmr.msra.gmra.mrb[116].mxu0 %vm144_vm1, %v9577_v30 }
 0x972   : > { %v12489_v10 = vpop.eup %12488  ;;  %12168 = vmatmul.mubr.msk.f32.vlgmr.msra.gmra.mrb[114].mxu1 %vm144_vm1, %v9575_v40  ;;  %12181 = vmatpush3.msra.mxu0 %v14524_v55 }
 0x973   : > { %v12491_v51 = vpop.eup %12490  ;;  %v9581_v3 = vmul.f32 %v12489_v10, %v14565_v45  ;;  %12176 = vmatpush3.msra.mxu1 %v14522_v43  ;;  %v9558_v21 = vpop.xlane.xlu1 %9557  ;;  %12177 = vmatprep.mubr.msk.f32.mxu1 %vm12551_vm0, %v14919_v4 }
 0x974   : > { %v9579_v57 = vmul.f32 %v12491_v51, %v14567_v25  ;;  %12500 = vrcp.f32 %v9558_v21  ;;  %v9555_v1 = vpop.xlane.xlu0 %9554  ;;  %12182 = vmatprep.mubr.msk.f32.mxu0 %vm12551_vm0, %v14919_v4  ;;  %12185 = vmatprep.subr.mxu1 %v14919_v4 }
 0x975   : > { %12502 = vrcp.f32 %v9555_v1  ;;  %12190 = vmatprep.subr.mxu0 %v14919_v4  ;;  %12183 = vmatmul.mubr.msk.f32.vlgmr.msra.gmra.mrb[118].mxu0 %vm144_vm1, %v9581_v3 }
 0x976   : > { %v12493_v55 = vpop.eup %12492  ;;  %12178 = vmatmul.mubr.msk.f32.vlgmr.msra.gmra.mrb[116].mxu1 %vm144_vm1, %v9579_v57  ;;  %12191 = vmatpush3.msra.mxu0 %v14528_v22 }
 0x977   : > { %v12495_v43 = vpop.eup %12494  ;;  %v9585_v45 = vmul.f32 %v12493_v55, %v14575_v26  ;;  %12186 = vmatpush3.msra.mxu1 %v14526_v24  ;;  %v9564_v25 = vpop.xlane.xlu1 %9563  ;;  %12187 = vmatprep.mubr.msk.f32.mxu1 %vm12551_vm0, %v14919_v4 }
 0x978   : > { %v9583_v0 = vmul.f32 %v12495_v43, %v14577_v39  ;;  %12504 = vrcp.f32 %v9564_v25  ;;  %v9561_v49 = vpop.xlane.xlu0 %9560  ;;  %12192 = vmatprep.mubr.msk.f32.mxu0 %vm12551_vm0, %v14919_v4  ;;  %12195 = vmatprep.subr.mxu1 %v14919_v4 }
 0x979   : > { %12506 = vrcp.f32 %v9561_v49  ;;  %12200 = vmatprep.subr.mxu0 %v14919_v4  ;;  %12193 = vmatmul.mubr.msk.f32.vlgmr.msra.gmra.mrb[120].mxu0 %vm144_vm1, %v9585_v45 }
 0x97a   : > { %v12497_v22 = vpop.eup %12496  ;;  %12188 = vmatmul.mubr.msk.f32.vlgmr.msra.gmra.mrb[118].mxu1 %vm144_vm1, %v9583_v0  ;;  %12201 = vmatpush3.msra.mxu0 %v14650_v15 }
 0x97b   : > { %v12499_v24 = vpop.eup %12498  ;;  %v9589_v26 = vmul.f32 %v12497_v22, %v14584_v54  ;;  %12196 = vmatpush3.msra.mxu1 %v14530_v11  ;;  %12197 = vmatprep.mubr.msk.f32.mxu1 %vm12551_vm0, %v14919_v4  ;;  %v10741_v42 = vpop.permute.xlu1 %10740 }
 0x97c   : > { %v9587_v39 = vmul.f32 %v12499_v24, %v14586_v19  ;;  %v9567_v35 = vpop.xlane.xlu0 %9566  ;;  %12202 = vmatprep.mubr.msk.f32.mxu0 %vm12551_vm0, %v14919_v4  ;;  %12205 = vmatprep.subr.mxu1 %v14919_v4 }
 0x97d   : > { %12508 = vrcp.f32 %v9567_v35  ;;  %12210 = vmatprep.subr.mxu0 %v14919_v4  ;;  %12203 = vmatmul.mubr.msk.f32.vlgmr.msra.gmra.mrb[122].mxu0 %vm144_vm1, %v9589_v26 }
 0x97e   : > { %v12501_v29 = vpop.eup %12500  ;;  %12198 = vmatmul.mubr.msk.f32.vlgmr.msra.gmra.mrb[120].mxu1 %vm144_vm1, %v9587_v39  ;;  %12211 = vmatpush3.msra.mxu0 %v14654_v20 }
 0x97f   : > { %v12503_v11 = vpop.eup %12502  ;;  %v9593_v54 = vmul.f32 %v12501_v29, %v14592_v47  ;;  %12206 = vmatpush3.msra.mxu1 %v14648_v31  ;;  %12207 = vmatprep.mubr.msk.f32.mxu1 %vm12551_vm0, %v14919_v4  ;;  %v10835_v46 = vpop.permute.xlu1 %10834 }
 0x980   : > { %v9591_v19 = vmul.f32 %v12503_v11, %v14594_v9  ;;  %12212 = vmatprep.mubr.msk.f32.mxu0 %vm12551_vm0, %v14919_v4  ;;  %12215 = vmatprep.subr.mxu1 %v14919_v4  ;;  %v10665_v37 = vpop.permute.xlu0 %10664 }
 0x981   : > { %12213 = vmatmul.mubr.msk.f32.vlgmr.msra.gmra.mrb[124].mxu0 %vm144_vm1, %v9593_v54  ;;  %12220 = vmatprep.subr.mxu0 %v14919_v4 }
 0x982   : > { %v12505_v8 = vpop.eup %12504  ;;  %12208 = vmatmul.mubr.msk.f32.vlgmr.msra.gmra.mrb[122].mxu1 %vm144_vm1, %v9591_v19  ;;  %12221 = vmatpush3.msra.mxu0 %v10665_v37 }
 0x983   : > { %v12507_v47 = vpop.eup %12506  ;;  %v9597_v52 = vmul.f32 %v12505_v8, %v14600_v58  ;;  %12216 = vmatpush3.msra.mxu1 %v14652_v27  ;;  %12217 = vmatprep.mubr.msk.f32.mxu1 %vm12551_vm0, %v14919_v4  ;;  %v10839_v40 = vpop.permute.xlu1 %10838 }
 0x984   : > { %v9595_v9 = vmul.f32 %v12507_v47, %v14602_v2  ;;  %12222 = vmatprep.mubr.msk.f32.mxu0 %vm12551_vm0, %v14919_v4  ;;  %12225 = vmatprep.subr.mxu1 %v14919_v4  ;;  %v10833_v50 = vpop.permute.xlu0 %10832 }
 0x985   : > { %12223 = vmatmul.mubr.msk.f32.vlgmr.msra.gmra.mrb[126].mxu0 %vm144_vm1, %v9597_v52 }
 0x986   : > { %12218 = vmatmul.mubr.msk.f32.vlgmr.msra.gmra.mrb[124].mxu1 %vm144_vm1, %v9595_v9 }
 0x987   : > { %v12509_v18 = vpop.eup %12508  ;;  %12226 = vmatpush3.msra.mxu1 %v10741_v42  ;;  %12227 = vmatprep.mubr.msk.f32.mxu1 %vm12551_vm0, %v14919_v4  ;;  %v10843_v3 = vpop.permute.xlu1 %10842 }
 0x988   : > { %v9599_v58 = vmul.f32 %v12509_v18, %v14608_v16  ;;  %v10837_v62 = vpop.permute.xlu0 %10836 }
 0x98a   : > { %12228 = vmatmul.mubr.msk.f32.vlgmr.msra.gmra.mrb[126].mxu1 %vm144_vm1, %v9599_v58  ;;  %v14977_v58 = vld [vmem:[#allocation5_spill] sm:$0xff] }
 0x98b   : > { %v14756_v57 = vpop.permute.xlu1 %10846 }
 0x98c   : > { %v10841_v41 = vpop.permute.xlu0 %10840 }
 0x98f   : > { %v14760_v55 = vpop.permute.xlu1 %10850 }
 0x990   : > { %v10845_v21 = vpop.permute.xlu0 %10844 }
 0x993   : > { %v14764_v45 = vpop.permute.xlu1 %10854 }
 0x994   : > { %v14758_v1 = vpop.permute.xlu0 %10848 }
 0x997   : > { %v14768_v0 = vpop.permute.xlu1 %10858 }
 0x998   : > { %v14762_v43 = vpop.permute.xlu0 %10852 }
 0x99b   : > { %v14772_v22 = vpop.permute.xlu1 %10862 }
 0x99c   : > { %v14766_v25 = vpop.permute.xlu0 %10856 }
 0x99f   : > { %v10899_v26 = vpop.permute.xlu1 %10898 }
 0x9a0   : > { %v14770_v49 = vpop.permute.xlu0 %10860 }
 0x9a3   : > { %v10903_v35 = vpop.permute.xlu1 %10902 }
 0x9a4   : > { %v10897_v24 = vpop.permute.xlu0 %10896 }
 0x9a7   : > { %v10907_v11 = vpop.permute.xlu1 %10906 }
 0x9a8   : > { %v10901_v39 = vpop.permute.xlu0 %10900 }
 0x9ab   : > { %v10911_v19 = vpop.permute.xlu1 %10910 }
 0x9ac   : > { %v10905_v29 = vpop.permute.xlu0 %10904 }
 0x9af   : > { %v10915_v8 = vpop.permute.xlu1 %10914 }
 0x9b0   : > { %v10909_v54 = vpop.permute.xlu0 %10908 }
 0x9b3   : > { %v14774_v52 = vpop.permute.xlu1 %10918 }
 0x9b4   : > { %v10913_v37 = vpop.permute.xlu0 %10912 }
 0x9b7   : > { %v14778_v42 = vpop.permute.xlu1 %10922 }
 0x9b8   : > { %v10917_v47 = vpop.permute.xlu0 %10916 }
 0x9bc   : > { %v14776_v9 = vpop.permute.xlu0 %10920 }
 0x9c0   : > { %v14780_v18 = vpop.permute.xlu0 %10924 }
 0xa3b   : > { %v9672_v2 = vpop.f32.mrb[112].mxu0 }
 0xa3c   : > { %v12154_v60 = vpop.f32.mrb[113].mxu0  ;;  %10960 = vrot.lane.b32.xlu0 %v9672_v2, %s12565_s26  ;;  %v11008_v2 = vsel %vm144_vm1, %v14977_v58, %v10833_v50 }
 0xa3d   : > { %v11025_v60 = vsel %vm11024_vm4, %v11008_v2, %v10897_v24 }
 0xa3f   : > { %v9824_v38 = vpop.f32.mrb[114].mxu0 }
 0xa40   : > { %v9748_v34 = vpop.f32.mrb[112].mxu1  ;;  %v12164_v48 = vpop.f32.mrb[115].mxu0  ;;  %10964 = vrot.lane.b32.xlu0 %v9824_v38, %s12565_s26 }
 0xa41   : > { %10962 = vrot.lane.b32.xlu1 %v9748_v34, %s12565_s26  ;;  %v12159_v17 = vpop.f32.mrb[113].mxu1  ;;  %v14792_v34 = vpop.permute.xlu1 %10926 }
 0xa42   : > { %v14978_v17 = vld [vmem:[#allocation4_spill] sm:$0xff] }
 0xa44   : > { %v9976_v33 = vpop.f32.mrb[116].mxu0 }
 0xa45   : > { %v9900_v59 = vpop.f32.mrb[114].mxu1  ;;  %v12174_v4 = vpop.f32.mrb[117].mxu0  ;;  %10968 = vrot.lane.b32.xlu0 %v9976_v33, %s12565_s26  ;;  %v11010_v33 = vsel %vm144_vm1, %v14978_v17, %v10837_v62  ;;  %v14983_v62 = vld [vmem:[#allocation9_spill] sm:$0xff] }
 0xa46   : > { %10966 = vrot.lane.b32.xlu1 %v9900_v59, %s12565_s26  ;;  %v12169_v16 = vpop.f32.mrb[115].mxu1  ;;  %v14979_v59 = vld [vmem:[#allocation3_spill] sm:$0xff] }
 0xa47   : > { %v11009_v4 = vsel %vm144_vm1, %v14979_v59, %v10835_v46  ;;  %v11027_v16 = vsel %vm11024_vm4, %v11010_v33, %v10901_v39 }
 0xa48   : > { %v10128_v31 = vpop.f32.mrb[118].mxu0 }
 0xa49   : > { %v10052_v15 = vpop.f32.mrb[116].mxu1  ;;  %v12184_v27 = vpop.f32.mrb[119].mxu0  ;;  %10972 = vrot.lane.b32.xlu0 %v10128_v31, %s12565_s26 }
 0xa4a   : > { %10970 = vrot.lane.b32.xlu1 %v10052_v15, %s12565_s26  ;;  %v12179_v36 = vpop.f32.mrb[117].mxu1  ;;  %v11026_v15 = vsel %vm11024_vm4, %v11009_v4, %v10899_v26 }
 0xa4c   : > { %v10280_v20 = vpop.f32.mrb[120].mxu0 }
 0xa4d   : > { %v10204_v7 = vpop.f32.mrb[118].mxu1  ;;  %v12194_v32 = vpop.f32.mrb[121].mxu0  ;;  %10976 = vrot.lane.b32.xlu0 %v10280_v20, %s12565_s26 }
 0xa4e   : > { %10974 = vrot.lane.b32.xlu1 %v10204_v7, %s12565_s26  ;;  %v12189_v63 = vpop.f32.mrb[119].mxu1  ;;  %v14980_v7 = vld [vmem:[#allocation6_spill] sm:$0xff] }
 0xa4f   : > { %v11012_v32 = vsel %vm144_vm1, %v14980_v7, %v10841_v41  ;;  %v14981_v63 = vld [vmem:[#allocation7_spill] sm:$0xff] }
 0xa50   : > { %v10432_v56 = vpop.f32.mrb[122].mxu0  ;;  %v11011_v50 = vsel %vm144_vm1, %v14981_v63, %v10839_v40 }
 0xa51   : > { %v10356_v53 = vpop.f32.mrb[120].mxu1  ;;  %10980 = vrot.lane.b32.xlu0 %v10432_v56, %s12565_s26  ;;  %v12204_v44 = vpop.f32.mrb[123].mxu0  ;;  %v11029_v56 = vsel %vm11024_vm4, %v11012_v32, %v10905_v29 }
 0xa52   : > { %10978 = vrot.lane.b32.xlu1 %v10356_v53, %s12565_s26  ;;  %v12199_v13 = vpop.f32.mrb[121].mxu1  ;;  %v11028_v44 = vsel %vm11024_vm4, %v11011_v50, %v10903_v35 }
 0xa54   : > { %v10584_v23 = vpop.f32.mrb[124].mxu0 }
 0xa55   : > { %v10508_v6 = vpop.f32.mrb[122].mxu1  ;;  %10984 = vrot.lane.b32.xlu0 %v10584_v23, %s12565_s26  ;;  %v12214_v28 = vpop.f32.mrb[125].mxu0 }
 0xa56   : > { %10982 = vrot.lane.b32.xlu1 %v10508_v6, %s12565_s26  ;;  %v12209_v5 = vpop.f32.mrb[123].mxu1  ;;  %v14982_v6 = vld [vmem:[#allocation8_spill] sm:$0xff] }
 0xa57   : > { %v11014_v28 = vsel %vm144_vm1, %v14982_v6, %v10845_v21  ;;  %v11013_v5 = vsel %vm144_vm1, %v14983_v62, %v10843_v3  ;;  %v14985_v3 = vld [vmem:[#allocation11_spill] sm:$0xff] }
 0xa58   : > { %v10736_v14 = vpop.f32.mrb[126].mxu0  ;;  %v11015_v21 = vsel %vm144_vm1, %v14985_v3, %v14756_v57  ;;  %v14987_v57 = vld [vmem:[#allocation13_spill] sm:$0xff] }
 0xa59   : > { %v10660_v61 = vpop.f32.mrb[124].mxu1  ;;  %10988 = vrot.lane.b32.xlu0 %v10736_v14, %s12565_s26  ;;  %v12224_v30 = vpop.f32.mrb[127].mxu0  ;;  %v11031_v14 = vsel %vm11024_vm4, %v11014_v28, %v10909_v54  ;;  %v11032_v39 = vsel %vm11024_vm4, %v11015_v21, %v10911_v19 }
 0xa5a   : > { %10986 = vrot.lane.b32.xlu1 %v10660_v61, %s12565_s26  ;;  %v12219_v12 = vpop.f32.mrb[125].mxu1  ;;  %v11030_v30 = vsel %vm11024_vm4, %v11013_v5, %v10907_v11 }
 0xa5d   : > { %v10812_v10 = vpop.f32.mrb[126].mxu1 }
 0xa5e   : > { %10990 = vrot.lane.b32.xlu1 %v10812_v10, %s12565_s26  ;;  %v12229_v51 = vpop.f32.mrb[127].mxu1  ;;  %v14984_v10 = vld [vmem:[#allocation10_spill] sm:$0xff] }
 0xa5f   : > { %v11016_v51 = vsel %vm144_vm1, %v14984_v10, %v14758_v1  ;;  %v14986_v1 = vld [vmem:[#allocation12_spill] sm:$0xff] }
 0xa60   : > { %v11033_v24 = vsel %vm11024_vm4, %v11016_v51, %v10913_v37  ;;  %v11018_v54 = vsel %vm144_vm1, %v14986_v1, %v14762_v43  ;;  %v11017_v37 = vsel %vm144_vm1, %v14987_v57, %v14760_v55  ;;  %v14988_v43 = vld [vmem:[#allocation14_spill] sm:$0xff]  ;;  %v14989_v55 = vld [vmem:[#allocation15_spill] sm:$0xff] }
 0xa61   : > { %v11035_v19 = vsel %vm11024_vm4, %v11018_v54, %v10917_v47  ;;  %v11034_v2 = vsel %vm11024_vm4, %v11017_v37, %v10915_v8  ;;  %v11020_v17 = vsel %vm144_vm1, %v14988_v43, %v14766_v25  ;;  %v11019_v47 = vsel %vm144_vm1, %v14989_v55, %v14764_v45 }
 0xa62   : > { %v11037_v8 = vsel %vm11024_vm4, %v11020_v17, %v14776_v9  ;;  %v11036_v59 = vsel %vm11024_vm4, %v11019_v47, %v14774_v52  ;;  %v14991_v9 = vld [vmem:[#allocation17_spill] sm:$0xff] }
 0xaae   : > { %v10961_v38 = vpop.permute.xlu0 %10960 }
 0xaaf   : > { %v11042_v48 = vsel %vm11041_vm3, %v11025_v60, %v10961_v38 }
 0xab0   : > { %11059 = vst.msk [vmem:[%s14789_s29] sm:$0xff] %vm11058_vm5, %v11042_v48 }
 0xab2   : > { %v10965_v31 = vpop.permute.xlu0 %10964 }
 0xab3   : > { %v10963_v27 = vpop.permute.xlu1 %10962  ;;  %v11044_v36 = vsel %vm11041_vm3, %v11027_v16, %v10965_v31  ;;  %v14990_v31 = vld [vmem:[#allocation16_spill] sm:$0xff] }
 0xab4   : > { %v11043_v20 = vsel %vm11041_vm3, %v11026_v15, %v10963_v27  ;;  %11061 = vst.msk [vmem:[%s14789_s29 + $0x10] sm:$0xff] %vm11058_vm5, %v11044_v36  ;;  %v11022_v45 = vsel %vm144_vm1, %v14990_v31, %v14770_v49  ;;  %v11021_v15 = vsel %vm144_vm1, %v14991_v9, %v14768_v0  ;;  %v14992_v49 = vld [vmem:[#allocation18_spill] sm:$0xff] }
 0xab5   : > { %11060 = vst.msk [vmem:[%s14789_s29 + $0x8] sm:$0xff] %vm11058_vm5, %v11043_v20  ;;  %v11039_v52 = vsel %vm11024_vm4, %v11022_v45, %v14780_v18  ;;  %v11038_v36 = vsel %vm11024_vm4, %v11021_v15, %v14778_v42  ;;  %v11023_v0 = vsel %vm144_vm1, %v14992_v49, %v14772_v22 }
 0xab6   : > { %v11040_v18 = vsel %vm11024_vm4, %v11023_v0, %v14792_v34 }
 0xab7   : > { %v10969_v53 = vpop.permute.xlu0 %10968 }
 0xab8   : > { %v10967_v13 = vpop.permute.xlu1 %10966  ;;  %v11046_v46 = vsel %vm11041_vm3, %v11029_v56, %v10969_v53 }
 0xab9   : > { %v11045_v23 = vsel %vm11041_vm3, %v11028_v44, %v10967_v13  ;;  %11063 = vst.msk [vmem:[%s14789_s29 + $0x20] sm:$0xff] %vm11058_vm5, %v11046_v46 }
 0xaba   : > { %11062 = vst.msk [vmem:[%s14789_s29 + $0x18] sm:$0xff] %vm11058_vm5, %v11045_v23 }
 0xabb   : > { %v10973_v61 = vpop.permute.xlu0 %10972 }
 0xabc   : > { %v10971_v12 = vpop.permute.xlu1 %10970  ;;  %v11048_v40 = vsel %vm11041_vm3, %v11031_v14, %v10973_v61 }
 0xabd   : > { %v11047_v41 = vsel %vm11041_vm3, %v11030_v30, %v10971_v12  ;;  %11065 = vst.msk [vmem:[%s14789_s29 + $0x30] sm:$0xff] %vm11058_vm5, %v11048_v40 }
 0xabe   : > { %11064 = vst.msk [vmem:[%s14789_s29 + $0x28] sm:$0xff] %vm11058_vm5, %v11047_v41 }
 0xabf   : > { %v10977_v26 = vpop.permute.xlu0 %10976 }
 0xac0   : > { %v10975_v35 = vpop.permute.xlu1 %10974  ;;  %v11050_v29 = vsel %vm11041_vm3, %v11033_v24, %v10977_v26 }
 0xac1   : > { %v11049_v11 = vsel %vm11041_vm3, %v11032_v39, %v10975_v35  ;;  %11067 = vst.msk [vmem:[%s14789_s29 + $0x40] sm:$0xff] %vm11058_vm5, %v11050_v29 }
 0xac2   : > { %11066 = vst.msk [vmem:[%s14789_s29 + $0x38] sm:$0xff] %vm11058_vm5, %v11049_v11 }
 0xac3   : > { %v10981_v58 = vpop.permute.xlu0 %10980 }
 0xac4   : > { %v10979_v60 = vpop.permute.xlu1 %10978  ;;  %v11052_v38 = vsel %vm11041_vm3, %v11035_v19, %v10981_v58 }
 0xac5   : > { %v11051_v48 = vsel %vm11041_vm3, %v11034_v2, %v10979_v60  ;;  %11069 = vst.msk [vmem:[%s14789_s29 + $0x50] sm:$0xff] %vm11058_vm5, %v11052_v38 }
 0xac6   : > { %11068 = vst.msk [vmem:[%s14789_s29 + $0x48] sm:$0xff] %vm11058_vm5, %v11051_v48 }
 0xac7   : > { %v10985_v33 = vpop.permute.xlu0 %10984 }
 0xac8   : > { %v10983_v4 = vpop.permute.xlu1 %10982  ;;  %v11054_v16 = vsel %vm11041_vm3, %v11037_v8, %v10985_v33 }
 0xac9   : > { %v11053_v25 = vsel %vm11041_vm3, %v11036_v59, %v10983_v4  ;;  %11071 = vst.msk [vmem:[%s14789_s29 + $0x60] sm:$0xff] %vm11058_vm5, %v11054_v16 }
 0xaca   : > { %11070 = vst.msk [vmem:[%s14789_s29 + $0x58] sm:$0xff] %vm11058_vm5, %v11053_v25 }
 0xacb   : > { %v10989_v27 = vpop.permute.xlu0 %10988 }
 0xacc   : > { %v10987_v20 = vpop.permute.xlu1 %10986  ;;  %v11056_v7 = vsel %vm11041_vm3, %v11039_v52, %v10989_v27 }
 0xacd   : > { %v11055_v32 = vsel %vm11041_vm3, %v11038_v36, %v10987_v20  ;;  %11073 = vst.msk [vmem:[%s14789_s29 + $0x70] sm:$0xff] %vm11058_vm5, %v11056_v7 }
 0xace   : > { %11072 = vst.msk [vmem:[%s14789_s29 + $0x68] sm:$0xff] %vm11058_vm5, %v11055_v32 }
 0xad0   : > { %v10991_v63 = vpop.permute.xlu1 %10990 }
 0xad1   : > { %v11057_v50 = vsel %vm11041_vm3, %v11040_v18, %v10991_v63 }
 0xad2   : > { %11074 = vst.msk [vmem:[%s14789_s29 + $0x78] sm:$0xff] %vm11058_vm5, %v11057_v50 }
 0xad3 PF: > { %s11_s6 = sadd.s32 1, %s12548_s6  }
 0xad4   : > { %p8_p4 = scmp.ge.s32.totalorder %s11_s6, 4  }
 0xad6   :  { %10 = sbr.rel (!%p8_p4) target bundleno = 1 (0x1), region = 54 }

</bundles_post_ra>
